<compile_context>
chip_gen: v7x
topology: tpu7x:2x2x1
jax: 0.10.0
libtpu: 0.0.40
codegen_flags: <defaults>
</compile_context>

<pallas_src>
import functools

import jax
import jax.numpy as jnp
from jax import lax
from jax.experimental import pallas as pl
from jax.experimental.pallas import tpu as pltpu


# ------------------------------ helpers (wrapper) -----------------------------
def _col_upsample_matrix(W):
    """Fixed (W+2, 2W+2) matrix: edge-padded row of width W+2 -> bilinear x2 upsampled
    row of width 2W, with one zero column on each side (the conv's zero padding)."""
    U = jnp.zeros((W + 2, 2 * W + 2), jnp.float32)
    j = jnp.arange(W)
    # even output col 2j  -> xwu col 1+2j = 0.25*xp[j]   + 0.75*xp[j+1]
    U = U.at[j, 2 * j + 1].set(0.25).at[j + 1, 2 * j + 1].set(0.75)
    # odd  output col 2j+1-> xwu col 2j+2 = 0.75*xp[j+1] + 0.25*xp[j+2]
    U = U.at[j + 1, 2 * j + 2].set(0.75).at[j + 2, 2 * j + 2].set(0.25)
    return U


def _pick_tile_h(H, W, Cin, Cout, budget_bytes=8 * 1024 * 1024):
    """Input rows per grid step.  Prefer the whole image (big blocks amortize per-step
    overhead); split H only when the estimated per-step VMEM exceeds the budget
    (budget chosen to be safe on v7x's 64 MiB VMEM with double buffering)."""

    def vmem_est(th):
        inp = 2 * Cin * (th + 2) * (W + 2) * 4        # double-buffered input block
        ups = Cin * (th + 2) * (2 * W + 2) * 4        # column-upsampled value
        acc = 2 * Cout * th * 2 * W * 4               # even/odd accumulators
        out = 2 * Cout * 2 * th * 2 * W * 4           # double-buffered output block
        tmp = 8 * th * (2 * W + 2) * 4                # per-channel row-combo temporaries
        return inp + ups + acc + out + tmp

    if vmem_est(H) <= budget_bytes:
        return H
    divisors = [d for d in range(4, H + 1, 4) if H % d == 0]   # keeps 2*TH % 8 == 0
    for th in sorted(divisors, reverse=True):
        if vmem_est(th) <= budget_bytes:
            return th
    return divisors[0] if divisors else H


# ------------------------------- Pallas kernels --------------------------------
def _upconv_vpu_kernel(x_ref, u_ref, w_ref, shift_ref, o_ref, *, Cin, Cout, TH, W):
    """Small-channel path (Cin <= 16): conv as VPU broadcast-MACs with scalar SMEM
    weights; the MXU is not used at all (it would be <1% utilized at these shapes)."""
    # x_ref:     (1, 1, Cin*(TH+2), W+2)  edge-padded rows, per-channel groups of TH+2 rows
    # u_ref:     (W+2, 2W+2)              fixed bilinear column-upsample matrix
    # w_ref:     SMEM (Cout*Cin*9,)       BN-folded weights, idx = ((co*Cin+ci)*3+dy)*3+dx
    # shift_ref: SMEM (Cout,)             folded conv-bias / BN shift
    # o_ref:     (1, Cout, 2*TH, 2*W)
    TW = 2 * W
    x2d = x_ref[0, 0]                                       # (Cin*(TH+2), W+2)

    # W-direction bilinear x2 upsample + conv zero-pad cols, as an outer-product
    # accumulation (no lane interleave / reshape, exact f32).
    xwu = x2d[:, 0:1] * u_ref[0:1, :]
    for r in range(1, W + 2):
        xwu = xwu + x2d[:, r:r + 1] * u_ref[r:r + 1, :]     # (Cin*(TH+2), 2W+2)

    t = pl.program_id(1)
    row = lax.broadcasted_iota(jnp.int32, (TH, 1), 0)
    # Conv zero padding of the (virtual) upsampled tensor at rows -1 and 2H:
    keep_first = jnp.logical_or(row > 0, t > 0)
    keep_last = jnp.logical_or(row < TH - 1, t < pl.num_programs(1) - 1)

    even_acc = [jnp.full((TH, TW), shift_ref[co], jnp.float32) for co in range(Cout)]
    odd_acc = [jnp.full((TH, TW), shift_ref[co], jnp.float32) for co in range(Cout)]

    for ci in range(Cin):
        base = ci * (TH + 2)
        xa = xwu[base:base + TH, :]           # col-upsampled x row i-1
        xb = xwu[base + 1:base + TH + 1, :]   # col-upsampled x row i
        xc = xwu[base + 2:base + TH + 2, :]   # col-upsampled x row i+1
        # H-direction upsample folded into the conv's dy taps (output-row phases):
        r_m1 = jnp.where(keep_first, 0.75 * xa + 0.25 * xb, 0.0)   # upsampled row 2i-1
        r_0 = 0.25 * xa + 0.75 * xb                                # upsampled row 2i
        r_p1 = 0.75 * xb + 0.25 * xc                               # upsampled row 2i+1
        r_p2 = jnp.where(keep_last, 0.25 * xb + 0.75 * xc, 0.0)    # upsampled row 2i+2
        for dx in range(3):
            t_m1 = r_m1[:, dx:dx + TW]
            t_0 = r_0[:, dx:dx + TW]
            t_p1 = r_p1[:, dx:dx + TW]
            t_p2 = r_p2[:, dx:dx + TW]
            for co in range(Cout):
                k = (co * Cin + ci) * 9 + dx
                w0 = w_ref[k]
                w1 = w_ref[k + 3]
                w2 = w_ref[k + 6]
                even_acc[co] = even_acc[co] + w0 * t_m1 + w1 * t_0 + w2 * t_p1
                odd_acc[co] = odd_acc[co] + w0 * t_0 + w1 * t_p1 + w2 * t_p2

    for co in range(Cout):
        ye = even_acc[co]
        yo = odd_acc[co]
        ye = jnp.maximum(ye, 0.1 * ye)                      # LeakyReLU(0.1)
        yo = jnp.maximum(yo, 0.1 * yo)
        rows = []
        for a in range(TH):                                 # interleave even/odd output rows
            rows.append(ye[a:a + 1, :])
            rows.append(yo[a:a + 1, :])
        o_ref[0, co] = jnp.concatenate(rows, axis=0).astype(o_ref.dtype)


def _upconv_mxu_kernel(x_ref, u_ref, w_ref, shift_ref, o_ref, *, Cin, Cout, TH, W):
    """Large-channel path (Cin > 16): same fused upsample, conv as per-tap
    (Cout,Cin)x(Cin, TH*2W) MXU matmuls accumulated into f32 (no im2col concat)."""
    TW = 2 * W
    x2d = x_ref[0, 0]                                       # (Cin*(TH+2), W+2)
    xwu = jnp.dot(x2d, u_ref[...], preferred_element_type=jnp.float32)
    xwu = xwu.reshape(Cin, TH + 2, TW + 2)

    t = pl.program_id(1)
    row = lax.broadcasted_iota(jnp.int32, (1, TH, 1), 1)
    keep_first = jnp.logical_or(row > 0, t > 0)
    keep_last = jnp.logical_or(row < TH - 1, t < pl.num_programs(1) - 1)
    xa = xwu[:, 0:TH, :]
    xb = xwu[:, 1:TH + 1, :]
    xc = xwu[:, 2:TH + 2, :]
    rrows = [jnp.where(keep_first, 0.75 * xa + 0.25 * xb, 0.0),
             0.25 * xa + 0.75 * xb,
             0.75 * xb + 0.25 * xc,
             jnp.where(keep_last, 0.25 * xb + 0.75 * xc, 0.0)]

    acc_e = jnp.zeros((Cout, TH * TW), jnp.float32)
    acc_o = jnp.zeros((Cout, TH * TW), jnp.float32)
    for dx in range(3):
        taps = [r[:, :, dx:dx + TW].reshape(Cin, TH * TW) for r in rrows]
        for dy in range(3):
            wmat = w_ref[dy, dx]                            # (Cout, Cin)
            acc_e = acc_e + jnp.dot(wmat, taps[dy], preferred_element_type=jnp.float32)
            acc_o = acc_o + jnp.dot(wmat, taps[dy + 1], preferred_element_type=jnp.float32)

    sh = shift_ref[...]                                     # (Cout, 1)
    ye = acc_e + sh
    yo = acc_o + sh
    ye = jnp.maximum(ye, 0.1 * ye).reshape(Cout, TH, TW)
    yo = jnp.maximum(yo, 0.1 * yo).reshape(Cout, TH, TW)
    y = jnp.stack([ye, yo], axis=2).reshape(Cout, 2 * TH, TW)
    o_ref[0] = y.astype(o_ref.dtype)


def _upconv_call(xt, U, w_arg, s_arg, *, N, n_tiles, Cin, Cout, TH, W, use_mxu):
    in_specs = [
        pl.BlockSpec((1, 1, Cin * (TH + 2), W + 2), lambda n, t: (n, t, 0, 0)),
        pl.BlockSpec((W + 2, 2 * W + 2), lambda n, t: (0, 0)),
    ]
    if use_mxu:
        kern = functools.partial(_upconv_mxu_kernel, Cin=Cin, Cout=Cout, TH=TH, W=W)
        in_specs += [pl.BlockSpec((3, 3, Cout, Cin), lambda n, t: (0, 0, 0, 0)),
                     pl.BlockSpec((Cout, 1), lambda n, t: (0, 0))]
    else:
        kern = functools.partial(_upconv_vpu_kernel, Cin=Cin, Cout=Cout, TH=TH, W=W)
        smem = pl.BlockSpec(memory_space=pltpu.MemorySpace.SMEM)
        in_specs += [smem, smem]
    return pl.pallas_call(
        kern,
        out_shape=jax.ShapeDtypeStruct((N, Cout, 2 * n_tiles * TH, 2 * W), jnp.float32),
        grid=(N, n_tiles),
        in_specs=in_specs,
        out_specs=pl.BlockSpec((1, Cout, 2 * TH, 2 * W), lambda n, t: (n, 0, t, 0)),
        compiler_params=pltpu.CompilerParams(
            dimension_semantics=("parallel", "parallel"),
            vmem_limit_bytes=32 * 1024 * 1024),
    )(xt, U, w_arg, s_arg)


# ------------------------------ reference (pure JAX) ---------------------------
def _bilinear_upsample_x2_nchw(x):
    """Exact PyTorch F.interpolate(scale_factor=2, mode='bilinear', align_corners=False)."""
    N, C, H, W = x.shape

    def idx_and_weights(in_size, out_size):
        dst = jnp.arange(out_size, dtype=jnp.float32)
        src = jnp.maximum((dst + 0.5) * (in_size / out_size) - 0.5, 0.0)
        i0 = jnp.minimum(jnp.floor(src).astype(jnp.int32), in_size - 1)
        i1 = jnp.minimum(i0 + 1, in_size - 1)
        w1 = src - i0.astype(jnp.float32)
        return i0, i1, 1.0 - w1, w1

    h0, h1, wh0, wh1 = idx_and_weights(H, 2 * H)
    w0, w1, ww0, ww1 = idx_and_weights(W, 2 * W)
    xr = (x[:, :, h0, :] * wh0[None, None, :, None]
          + x[:, :, h1, :] * wh1[None, None, :, None])
    return xr[:, :, :, w0] * ww0 + xr[:, :, :, w1] * ww1


# --------------------------------- module wrapper -------------------------------
class UpsampleLayerPallas:
    """Parameters are created deterministically (synthetic); BatchNorm runs in eval mode
    with its running statistics folded into the conv weights / a per-channel shift."""

    def __init__(self, in_channels, key):
        out_channels = in_channels // 2
        k_w, k_b, k_g, k_beta, k_m, k_v = jax.random.split(key, 6)
        fan_in = in_channels * 9
        bound = 1.0 / jnp.sqrt(fan_in)
        # PyTorch conv weight layout: (Cout, Cin, 3, 3)
        self.conv_w = jax.random.uniform(
            k_w, (out_channels, in_channels, 3, 3), jnp.float32, -bound, bound)
        self.conv_b = jax.random.uniform(
            k_b, (out_channels,), jnp.float32, -bound, bound)
        self.bn_gamma = 1.0 + 0.1 * jax.random.normal(k_g, (out_channels,), jnp.float32)
        self.bn_beta = 0.1 * jax.random.normal(k_beta, (out_channels,), jnp.float32)
        self.bn_mean = 0.1 * jax.random.normal(k_m, (out_channels,), jnp.float32)
        self.bn_var = jnp.abs(1.0 + 0.1 * jax.random.normal(k_v, (out_channels,), jnp.float32))
        self.eps = 1e-5
        self.in_channels = in_channels
        self.out_channels = out_channels
        self._jit_forward = jax.jit(self._forward)

    def _forward(self, x_nchw):
        x = x_nchw.astype(jnp.float32)
        N, Cin, H, W = x.shape
        Cout = self.out_channels

        TH = _pick_tile_h(H, W, Cin, Cout)
        n_tiles = H // TH

        # Edge-replicate pad implements the bilinear source-index clamp of
        # align_corners=False; the conv's zero padding is applied inside the kernel.
        xpad = jnp.pad(x, ((0, 0), (0, 0), (1, 1), (1, 1)), mode="edge")
        if n_tiles == 1:
            xt = xpad[:, None]
        else:  # overlapping (halo=1) H windows of the *small* pre-upsample tensor
            xt = jnp.stack(
                [xpad[:, :, t * TH:t * TH + TH + 2, :] for t in range(n_tiles)], axis=1)
        xt = xt.reshape(N, n_tiles, Cin * (TH + 2), W + 2)

        U = _col_upsample_matrix(W)

        # Fold conv bias + BatchNorm(eval) into the weights (scale) and a per-channel shift.
        scale = self.bn_gamma / jnp.sqrt(self.bn_var + self.eps)
        w_fold = self.conv_w * scale[:, None, None, None]            # (Cout, Cin, 3, 3)
        shift = (self.conv_b - self.bn_mean) * scale + self.bn_beta  # (Cout,)

        use_mxu = Cin > 16
        if use_mxu:
            w_arg = jnp.transpose(w_fold, (2, 3, 0, 1))              # (3, 3, Cout, Cin)
            s_arg = shift.reshape(Cout, 1)
        else:
            w_arg = w_fold.reshape(-1)                               # (Cout*Cin*9,) -> SMEM
            s_arg = shift                                            # (Cout,)       -> SMEM
        return _upconv_call(xt, U, w_arg, s_arg, N=N, n_tiles=n_tiles, Cin=Cin,
                            Cout=Cout, TH=TH, W=W, use_mxu=use_mxu)

    def __call__(self, x_nchw):
        return self._jit_forward(x_nchw)

    def reference(self, x_nchw):
        """Pure-JAX reference of the same forward (for correctness checking)."""
        x = x_nchw.astype(jnp.float32)
        xu = _bilinear_upsample_x2_nchw(x)
        y = lax.conv_general_dilated(
            xu, self.conv_w, window_strides=(1, 1), padding=((1, 1), (1, 1)),
            dimension_numbers=("NCHW", "OIHW", "NCHW"),
            precision=lax.Precision.HIGHEST)
        y = y + self.conv_b[None, :, None, None]
        inv = (self.bn_gamma / jnp.sqrt(self.bn_var + self.eps))[None, :, None, None]
        y = (y - self.bn_mean[None, :, None, None]) * inv + self.bn_beta[None, :, None, None]
        return jnp.where(y >= 0, y, 0.1 * y)


if __name__ == "__main__":
    key = jax.random.PRNGKey(0)
    k_param, k_x = jax.random.split(key)

    batch, in_channels, spatial = 2, 4, 16
    layer = UpsampleLayerPallas(in_channels, k_param)
    x = jax.random.normal(k_x, (batch, in_channels, spatial, spatial), jnp.float32)

    out = jax.block_until_ready(layer(x))
    ref = jax.block_until_ready(layer.reference(x))

    assert out.shape == (batch, in_channels // 2, 2 * spatial, 2 * spatial), out.shape
    err = float(jnp.max(jnp.abs(out - ref)))
    assert err < 2e-4, err

    print("KERNEL_OK")
</pallas_src>

<mosaic_0001>
module attributes {stable_mosaic.version = 11 : i64} {
  func.func @_upconv_vpu_kernel(%arg0: i32, %arg1: i32, %arg2: memref<1x1x72x18xf32, #tpu.memory_space<vmem>>, %arg3: memref<18x34xf32, #tpu.memory_space<vmem>>, %arg4: memref<72xf32, #tpu.memory_space<smem>>, %arg5: memref<2xf32, #tpu.memory_space<smem>>, %arg6: memref<1x2x32x32xf32, #tpu.memory_space<vmem>>) attributes {dimension_semantics = [#tpu.dimension_semantics<parallel>, #tpu.dimension_semantics<parallel>], iteration_bounds = array<i64: 2, 1>, scalar_prefetch = 0 : i64, scratch_operands = 0 : i64, tpu.core_type = #tpu.core_type<tc>, window_params = [{transform_indices = @transform_0, window_bounds = array<i64: 1, 1, 72, 18>}, {pipeline_mode = #tpu.pipeline_mode<synchronous>, transform_indices = @transform_1, window_bounds = array<i64: 18, 34>}, {transform_indices = @transform_2, window_bounds = array<i64: 72>}, {transform_indices = @transform_3, window_bounds = array<i64: 2>}, {transform_indices = @transform_4, window_bounds = array<i64: 1, 2, 32, 32>}]} {
    %c0 = arith.constant 0 : index
    %c0_0 = arith.constant 0 : index
    %c0_1 = arith.constant 0 : index
    %c0_2 = arith.constant 0 : index
    %0 = vector.load %arg2[%c0, %c0_0, %c0_1, %c0_2] : memref<1x1x72x18xf32, #tpu.memory_space<vmem>>, vector<1x1x72x18xf32>
    %1 = vector.shape_cast %0 : vector<1x1x72x18xf32> to vector<72x18xf32>
    %2 = vector.extract_strided_slice %1 {offsets = [0, 0], sizes = [72, 1], strides = [1, 1]} : vector<72x18xf32> to vector<72x1xf32>
    %c0_3 = arith.constant 0 : index
    %c0_4 = arith.constant 0 : index
    %3 = vector.load %arg3[%c0_3, %c0_4] : memref<18x34xf32, #tpu.memory_space<vmem>>, vector<1x34xf32>
    %4 = vector.broadcast %2 : vector<72x1xf32> to vector<72x34xf32>
    %5 = vector.broadcast %3 : vector<1x34xf32> to vector<72x34xf32>
    %6 = arith.mulf %4, %5 : vector<72x34xf32>
    %7 = vector.extract_strided_slice %1 {offsets = [0, 1], sizes = [72, 1], strides = [1, 1]} : vector<72x18xf32> to vector<72x1xf32>
    %c1 = arith.constant 1 : index
    %c0_5 = arith.constant 0 : index
    %8 = vector.load %arg3[%c1, %c0_5] : memref<18x34xf32, #tpu.memory_space<vmem>>, vector<1x34xf32>
    %9 = vector.broadcast %7 : vector<72x1xf32> to vector<72x34xf32>
    %10 = vector.broadcast %8 : vector<1x34xf32> to vector<72x34xf32>
    %11 = arith.mulf %9, %10 : vector<72x34xf32>
    %12 = arith.addf %6, %11 : vector<72x34xf32>
    %13 = vector.extract_strided_slice %1 {offsets = [0, 2], sizes = [72, 1], strides = [1, 1]} : vector<72x18xf32> to vector<72x1xf32>
    %c2 = arith.constant 2 : index
    %c0_6 = arith.constant 0 : index
    %14 = vector.load %arg3[%c2, %c0_6] : memref<18x34xf32, #tpu.memory_space<vmem>>, vector<1x34xf32>
    %15 = vector.broadcast %13 : vector<72x1xf32> to vector<72x34xf32>
    %16 = vector.broadcast %14 : vector<1x34xf32> to vector<72x34xf32>
    %17 = arith.mulf %15, %16 : vector<72x34xf32>
    %18 = arith.addf %12, %17 : vector<72x34xf32>
    %19 = vector.extract_strided_slice %1 {offsets = [0, 3], sizes = [72, 1], strides = [1, 1]} : vector<72x18xf32> to vector<72x1xf32>
    %c3 = arith.constant 3 : index
    %c0_7 = arith.constant 0 : index
    %20 = vector.load %arg3[%c3, %c0_7] : memref<18x34xf32, #tpu.memory_space<vmem>>, vector<1x34xf32>
    %21 = vector.broadcast %19 : vector<72x1xf32> to vector<72x34xf32>
    %22 = vector.broadcast %20 : vector<1x34xf32> to vector<72x34xf32>
    %23 = arith.mulf %21, %22 : vector<72x34xf32>
    %24 = arith.addf %18, %23 : vector<72x34xf32>
    %25 = vector.extract_strided_slice %1 {offsets = [0, 4], sizes = [72, 1], strides = [1, 1]} : vector<72x18xf32> to vector<72x1xf32>
    %c4 = arith.constant 4 : index
    %c0_8 = arith.constant 0 : index
    %26 = vector.load %arg3[%c4, %c0_8] : memref<18x34xf32, #tpu.memory_space<vmem>>, vector<1x34xf32>
    %27 = vector.broadcast %25 : vector<72x1xf32> to vector<72x34xf32>
    %28 = vector.broadcast %26 : vector<1x34xf32> to vector<72x34xf32>
    %29 = arith.mulf %27, %28 : vector<72x34xf32>
    %30 = arith.addf %24, %29 : vector<72x34xf32>
    %31 = vector.extract_strided_slice %1 {offsets = [0, 5], sizes = [72, 1], strides = [1, 1]} : vector<72x18xf32> to vector<72x1xf32>
    %c5 = arith.constant 5 : index
    %c0_9 = arith.constant 0 : index
    %32 = vector.load %arg3[%c5, %c0_9] : memref<18x34xf32, #tpu.memory_space<vmem>>, vector<1x34xf32>
    %33 = vector.broadcast %31 : vector<72x1xf32> to vector<72x34xf32>
    %34 = vector.broadcast %32 : vector<1x34xf32> to vector<72x34xf32>
    %35 = arith.mulf %33, %34 : vector<72x34xf32>
    %36 = arith.addf %30, %35 : vector<72x34xf32>
    %37 = vector.extract_strided_slice %1 {offsets = [0, 6], sizes = [72, 1], strides = [1, 1]} : vector<72x18xf32> to vector<72x1xf32>
    %c6 = arith.constant 6 : index
    %c0_10 = arith.constant 0 : index
    %38 = vector.load %arg3[%c6, %c0_10] : memref<18x34xf32, #tpu.memory_space<vmem>>, vector<1x34xf32>
    %39 = vector.broadcast %37 : vector<72x1xf32> to vector<72x34xf32>
    %40 = vector.broadcast %38 : vector<1x34xf32> to vector<72x34xf32>
    %41 = arith.mulf %39, %40 : vector<72x34xf32>
    %42 = arith.addf %36, %41 : vector<72x34xf32>
    %43 = vector.extract_strided_slice %1 {offsets = [0, 7], sizes = [72, 1], strides = [1, 1]} : vector<72x18xf32> to vector<72x1xf32>
    %c7 = arith.constant 7 : index
    %c0_11 = arith.constant 0 : index
    %44 = vector.load %arg3[%c7, %c0_11] : memref<18x34xf32, #tpu.memory_space<vmem>>, vector<1x34xf32>
    %45 = vector.broadcast %43 : vector<72x1xf32> to vector<72x34xf32>
    %46 = vector.broadcast %44 : vector<1x34xf32> to vector<72x34xf32>
    %47 = arith.mulf %45, %46 : vector<72x34xf32>
    %48 = arith.addf %42, %47 : vector<72x34xf32>
    %49 = vector.extract_strided_slice %1 {offsets = [0, 8], sizes = [72, 1], strides = [1, 1]} : vector<72x18xf32> to vector<72x1xf32>
    %c8 = arith.constant 8 : index
    %c0_12 = arith.constant 0 : index
    %50 = vector.load %arg3[%c8, %c0_12] : memref<18x34xf32, #tpu.memory_space<vmem>>, vector<1x34xf32>
    %51 = vector.broadcast %49 : vector<72x1xf32> to vector<72x34xf32>
    %52 = vector.broadcast %50 : vector<1x34xf32> to vector<72x34xf32>
    %53 = arith.mulf %51, %52 : vector<72x34xf32>
    %54 = arith.addf %48, %53 : vector<72x34xf32>
    %55 = vector.extract_strided_slice %1 {offsets = [0, 9], sizes = [72, 1], strides = [1, 1]} : vector<72x18xf32> to vector<72x1xf32>
    %c9 = arith.constant 9 : index
    %c0_13 = arith.constant 0 : index
    %56 = vector.load %arg3[%c9, %c0_13] : memref<18x34xf32, #tpu.memory_space<vmem>>, vector<1x34xf32>
    %57 = vector.broadcast %55 : vector<72x1xf32> to vector<72x34xf32>
    %58 = vector.broadcast %56 : vector<1x34xf32> to vector<72x34xf32>
    %59 = arith.mulf %57, %58 : vector<72x34xf32>
    %60 = arith.addf %54, %59 : vector<72x34xf32>
    %61 = vector.extract_strided_slice %1 {offsets = [0, 10], sizes = [72, 1], strides = [1, 1]} : vector<72x18xf32> to vector<72x1xf32>
    %c10 = arith.constant 10 : index
    %c0_14 = arith.constant 0 : index
    %62 = vector.load %arg3[%c10, %c0_14] : memref<18x34xf32, #tpu.memory_space<vmem>>, vector<1x34xf32>
    %63 = vector.broadcast %61 : vector<72x1xf32> to vector<72x34xf32>
    %64 = vector.broadcast %62 : vector<1x34xf32> to vector<72x34xf32>
    %65 = arith.mulf %63, %64 : vector<72x34xf32>
    %66 = arith.addf %60, %65 : vector<72x34xf32>
    %67 = vector.extract_strided_slice %1 {offsets = [0, 11], sizes = [72, 1], strides = [1, 1]} : vector<72x18xf32> to vector<72x1xf32>
    %c11 = arith.constant 11 : index
    %c0_15 = arith.constant 0 : index
    %68 = vector.load %arg3[%c11, %c0_15] : memref<18x34xf32, #tpu.memory_space<vmem>>, vector<1x34xf32>
    %69 = vector.broadcast %67 : vector<72x1xf32> to vector<72x34xf32>
    %70 = vector.broadcast %68 : vector<1x34xf32> to vector<72x34xf32>
    %71 = arith.mulf %69, %70 : vector<72x34xf32>
    %72 = arith.addf %66, %71 : vector<72x34xf32>
    %73 = vector.extract_strided_slice %1 {offsets = [0, 12], sizes = [72, 1], strides = [1, 1]} : vector<72x18xf32> to vector<72x1xf32>
    %c12 = arith.constant 12 : index
    %c0_16 = arith.constant 0 : index
    %74 = vector.load %arg3[%c12, %c0_16] : memref<18x34xf32, #tpu.memory_space<vmem>>, vector<1x34xf32>
    %75 = vector.broadcast %73 : vector<72x1xf32> to vector<72x34xf32>
    %76 = vector.broadcast %74 : vector<1x34xf32> to vector<72x34xf32>
    %77 = arith.mulf %75, %76 : vector<72x34xf32>
    %78 = arith.addf %72, %77 : vector<72x34xf32>
    %79 = vector.extract_strided_slice %1 {offsets = [0, 13], sizes = [72, 1], strides = [1, 1]} : vector<72x18xf32> to vector<72x1xf32>
    %c13 = arith.constant 13 : index
    %c0_17 = arith.constant 0 : index
    %80 = vector.load %arg3[%c13, %c0_17] : memref<18x34xf32, #tpu.memory_space<vmem>>, vector<1x34xf32>
    %81 = vector.broadcast %79 : vector<72x1xf32> to vector<72x34xf32>
    %82 = vector.broadcast %80 : vector<1x34xf32> to vector<72x34xf32>
    %83 = arith.mulf %81, %82 : vector<72x34xf32>
    %84 = arith.addf %78, %83 : vector<72x34xf32>
    %85 = vector.extract_strided_slice %1 {offsets = [0, 14], sizes = [72, 1], strides = [1, 1]} : vector<72x18xf32> to vector<72x1xf32>
    %c14 = arith.constant 14 : index
    %c0_18 = arith.constant 0 : index
    %86 = vector.load %arg3[%c14, %c0_18] : memref<18x34xf32, #tpu.memory_space<vmem>>, vector<1x34xf32>
    %87 = vector.broadcast %85 : vector<72x1xf32> to vector<72x34xf32>
    %88 = vector.broadcast %86 : vector<1x34xf32> to vector<72x34xf32>
    %89 = arith.mulf %87, %88 : vector<72x34xf32>
    %90 = arith.addf %84, %89 : vector<72x34xf32>
    %91 = vector.extract_strided_slice %1 {offsets = [0, 15], sizes = [72, 1], strides = [1, 1]} : vector<72x18xf32> to vector<72x1xf32>
    %c15 = arith.constant 15 : index
    %c0_19 = arith.constant 0 : index
    %92 = vector.load %arg3[%c15, %c0_19] : memref<18x34xf32, #tpu.memory_space<vmem>>, vector<1x34xf32>
    %93 = vector.broadcast %91 : vector<72x1xf32> to vector<72x34xf32>
    %94 = vector.broadcast %92 : vector<1x34xf32> to vector<72x34xf32>
    %95 = arith.mulf %93, %94 : vector<72x34xf32>
    %96 = arith.addf %90, %95 : vector<72x34xf32>
    %97 = vector.extract_strided_slice %1 {offsets = [0, 16], sizes = [72, 1], strides = [1, 1]} : vector<72x18xf32> to vector<72x1xf32>
    %c16 = arith.constant 16 : index
    %c0_20 = arith.constant 0 : index
    %98 = vector.load %arg3[%c16, %c0_20] : memref<18x34xf32, #tpu.memory_space<vmem>>, vector<1x34xf32>
    %99 = vector.broadcast %97 : vector<72x1xf32> to vector<72x34xf32>
    %100 = vector.broadcast %98 : vector<1x34xf32> to vector<72x34xf32>
    %101 = arith.mulf %99, %100 : vector<72x34xf32>
    %102 = arith.addf %96, %101 : vector<72x34xf32>
    %103 = vector.extract_strided_slice %1 {offsets = [0, 17], sizes = [72, 1], strides = [1, 1]} : vector<72x18xf32> to vector<72x1xf32>
    %c17 = arith.constant 17 : index
    %c0_21 = arith.constant 0 : index
    %104 = vector.load %arg3[%c17, %c0_21] : memref<18x34xf32, #tpu.memory_space<vmem>>, vector<1x34xf32>
    %105 = vector.broadcast %103 : vector<72x1xf32> to vector<72x34xf32>
    %106 = vector.broadcast %104 : vector<1x34xf32> to vector<72x34xf32>
    %107 = arith.mulf %105, %106 : vector<72x34xf32>
    %108 = arith.addf %102, %107 : vector<72x34xf32>
    %109 = tpu.iota {dimensions = array<i32: 0>} : vector<16x1xi32>
    %c0_i32 = arith.constant 0 : i32
    %110 = vector.broadcast %c0_i32 : i32 to vector<16x1xi32>
    %111 = arith.cmpi sgt, %109, %110 : vector<16x1xi32>
    %c0_i32_22 = arith.constant 0 : i32
    %112 = arith.cmpi sgt, %arg1, %c0_i32_22 : i32
    %113 = vector.broadcast %112 : i1 to vector<16x1xi1>
    %114 = arith.ori %111, %113 : vector<16x1xi1>
    %c15_i32 = arith.constant 15 : i32
    %115 = vector.broadcast %c15_i32 : i32 to vector<16x1xi32>
    %116 = arith.cmpi slt, %109, %115 : vector<16x1xi32>
    %c0_i32_23 = arith.constant 0 : i32
    %117 = arith.cmpi slt, %arg1, %c0_i32_23 : i32
    %118 = vector.broadcast %117 : i1 to vector<16x1xi1>
    %119 = arith.ori %116, %118 : vector<16x1xi1>
    %c0_24 = arith.constant 0 : index
    %120 = memref.load %arg5[%c0_24] : memref<2xf32, #tpu.memory_space<smem>>
    %121 = vector.broadcast %120 : f32 to vector<16x32xf32>
    %c1_25 = arith.constant 1 : index
    %122 = memref.load %arg5[%c1_25] : memref<2xf32, #tpu.memory_space<smem>>
    %123 = vector.broadcast %122 : f32 to vector<16x32xf32>
    %c0_26 = arith.constant 0 : index
    %124 = memref.load %arg5[%c0_26] : memref<2xf32, #tpu.memory_space<smem>>
    %125 = vector.broadcast %124 : f32 to vector<16x32xf32>
    %c1_27 = arith.constant 1 : index
    %126 = memref.load %arg5[%c1_27] : memref<2xf32, #tpu.memory_space<smem>>
    %127 = vector.broadcast %126 : f32 to vector<16x32xf32>
    %128 = vector.extract_strided_slice %108 {offsets = [0, 0], sizes = [16, 34], strides = [1, 1]} : vector<72x34xf32> to vector<16x34xf32>
    %129 = vector.extract_strided_slice %108 {offsets = [1, 0], sizes = [16, 34], strides = [1, 1]} : vector<72x34xf32> to vector<16x34xf32>
    %130 = vector.extract_strided_slice %108 {offsets = [2, 0], sizes = [16, 34], strides = [1, 1]} : vector<72x34xf32> to vector<16x34xf32>
    %cst = arith.constant 7.500000e-01 : f32
    %131 = vector.broadcast %cst : f32 to vector<16x34xf32>
    %132 = arith.mulf %131, %128 : vector<16x34xf32>
    %cst_28 = arith.constant 2.500000e-01 : f32
    %133 = vector.broadcast %cst_28 : f32 to vector<16x34xf32>
    %134 = arith.mulf %133, %129 : vector<16x34xf32>
    %135 = arith.addf %132, %134 : vector<16x34xf32>
    %cst_29 = arith.constant 0.000000e+00 : f32
    %136 = vector.shape_cast %114 : vector<16x1xi1> to vector<16x1xi1>
    %137 = vector.broadcast %136 : vector<16x1xi1> to vector<16x34xi1>
    %138 = vector.broadcast %cst_29 : f32 to vector<16x34xf32>
    %139 = arith.select %137, %135, %138 : vector<16x34xi1>, vector<16x34xf32>
    %cst_30 = arith.constant 2.500000e-01 : f32
    %140 = vector.broadcast %cst_30 : f32 to vector<16x34xf32>
    %141 = arith.mulf %140, %128 : vector<16x34xf32>
    %cst_31 = arith.constant 7.500000e-01 : f32
    %142 = vector.broadcast %cst_31 : f32 to vector<16x34xf32>
    %143 = arith.mulf %142, %129 : vector<16x34xf32>
    %144 = arith.addf %141, %143 : vector<16x34xf32>
    %cst_32 = arith.constant 7.500000e-01 : f32
    %145 = vector.broadcast %cst_32 : f32 to vector<16x34xf32>
    %146 = arith.mulf %145, %129 : vector<16x34xf32>
    %cst_33 = arith.constant 2.500000e-01 : f32
    %147 = vector.broadcast %cst_33 : f32 to vector<16x34xf32>
    %148 = arith.mulf %147, %130 : vector<16x34xf32>
    %149 = arith.addf %146, %148 : vector<16x34xf32>
    %cst_34 = arith.constant 2.500000e-01 : f32
    %150 = vector.broadcast %cst_34 : f32 to vector<16x34xf32>
    %151 = arith.mulf %150, %129 : vector<16x34xf32>
    %cst_35 = arith.constant 7.500000e-01 : f32
    %152 = vector.broadcast %cst_35 : f32 to vector<16x34xf32>
    %153 = arith.mulf %152, %130 : vector<16x34xf32>
    %154 = arith.addf %151, %153 : vector<16x34xf32>
    %cst_36 = arith.constant 0.000000e+00 : f32
    %155 = vector.shape_cast %119 : vector<16x1xi1> to vector<16x1xi1>
    %156 = vector.broadcast %155 : vector<16x1xi1> to vector<16x34xi1>
    %157 = vector.broadcast %cst_36 : f32 to vector<16x34xf32>
    %158 = arith.select %156, %154, %157 : vector<16x34xi1>, vector<16x34xf32>
    %159 = vector.extract_strided_slice %139 {offsets = [0, 0], sizes = [16, 32], strides = [1, 1]} : vector<16x34xf32> to vector<16x32xf32>
    %160 = vector.extract_strided_slice %144 {offsets = [0, 0], sizes = [16, 32], strides = [1, 1]} : vector<16x34xf32> to vector<16x32xf32>
    %161 = vector.extract_strided_slice %149 {offsets = [0, 0], sizes = [16, 32], strides = [1, 1]} : vector<16x34xf32> to vector<16x32xf32>
    %162 = vector.extract_strided_slice %158 {offsets = [0, 0], sizes = [16, 32], strides = [1, 1]} : vector<16x34xf32> to vector<16x32xf32>
    %c0_37 = arith.constant 0 : index
    %163 = memref.load %arg4[%c0_37] : memref<72xf32, #tpu.memory_space<smem>>
    %c3_38 = arith.constant 3 : index
    %164 = memref.load %arg4[%c3_38] : memref<72xf32, #tpu.memory_space<smem>>
    %c6_39 = arith.constant 6 : index
    %165 = memref.load %arg4[%c6_39] : memref<72xf32, #tpu.memory_space<smem>>
    %166 = vector.broadcast %163 : f32 to vector<16x32xf32>
    %167 = arith.mulf %166, %159 : vector<16x32xf32>
    %168 = arith.addf %121, %167 : vector<16x32xf32>
    %169 = vector.broadcast %164 : f32 to vector<16x32xf32>
    %170 = arith.mulf %169, %160 : vector<16x32xf32>
    %171 = arith.addf %168, %170 : vector<16x32xf32>
    %172 = vector.broadcast %165 : f32 to vector<16x32xf32>
    %173 = arith.mulf %172, %161 : vector<16x32xf32>
    %174 = arith.addf %171, %173 : vector<16x32xf32>
    %175 = vector.broadcast %163 : f32 to vector<16x32xf32>
    %176 = arith.mulf %175, %160 : vector<16x32xf32>
    %177 = arith.addf %125, %176 : vector<16x32xf32>
    %178 = vector.broadcast %164 : f32 to vector<16x32xf32>
    %179 = arith.mulf %178, %161 : vector<16x32xf32>
    %180 = arith.addf %177, %179 : vector<16x32xf32>
    %181 = vector.broadcast %165 : f32 to vector<16x32xf32>
    %182 = arith.mulf %181, %162 : vector<16x32xf32>
    %183 = arith.addf %180, %182 : vector<16x32xf32>
    %c36 = arith.constant 36 : index
    %184 = memref.load %arg4[%c36] : memref<72xf32, #tpu.memory_space<smem>>
    %c39 = arith.constant 39 : index
    %185 = memref.load %arg4[%c39] : memref<72xf32, #tpu.memory_space<smem>>
    %c42 = arith.constant 42 : index
    %186 = memref.load %arg4[%c42] : memref<72xf32, #tpu.memory_space<smem>>
    %187 = vector.broadcast %184 : f32 to vector<16x32xf32>
    %188 = arith.mulf %187, %159 : vector<16x32xf32>
    %189 = arith.addf %123, %188 : vector<16x32xf32>
    %190 = vector.broadcast %185 : f32 to vector<16x32xf32>
    %191 = arith.mulf %190, %160 : vector<16x32xf32>
    %192 = arith.addf %189, %191 : vector<16x32xf32>
    %193 = vector.broadcast %186 : f32 to vector<16x32xf32>
    %194 = arith.mulf %193, %161 : vector<16x32xf32>
    %195 = arith.addf %192, %194 : vector<16x32xf32>
    %196 = vector.broadcast %184 : f32 to vector<16x32xf32>
    %197 = arith.mulf %196, %160 : vector<16x32xf32>
    %198 = arith.addf %127, %197 : vector<16x32xf32>
    %199 = vector.broadcast %185 : f32 to vector<16x32xf32>
    %200 = arith.mulf %199, %161 : vector<16x32xf32>
    %201 = arith.addf %198, %200 : vector<16x32xf32>
    %202 = vector.broadcast %186 : f32 to vector<16x32xf32>
    %203 = arith.mulf %202, %162 : vector<16x32xf32>
    %204 = arith.addf %201, %203 : vector<16x32xf32>
    %205 = vector.extract_strided_slice %139 {offsets = [0, 1], sizes = [16, 32], strides = [1, 1]} : vector<16x34xf32> to vector<16x32xf32>
    %206 = vector.extract_strided_slice %144 {offsets = [0, 1], sizes = [16, 32], strides = [1, 1]} : vector<16x34xf32> to vector<16x32xf32>
    %207 = vector.extract_strided_slice %149 {offsets = [0, 1], sizes = [16, 32], strides = [1, 1]} : vector<16x34xf32> to vector<16x32xf32>
    %208 = vector.extract_strided_slice %158 {offsets = [0, 1], sizes = [16, 32], strides = [1, 1]} : vector<16x34xf32> to vector<16x32xf32>
    %c1_40 = arith.constant 1 : index
    %209 = memref.load %arg4[%c1_40] : memref<72xf32, #tpu.memory_space<smem>>
    %c4_41 = arith.constant 4 : index
    %210 = memref.load %arg4[%c4_41] : memref<72xf32, #tpu.memory_space<smem>>
    %c7_42 = arith.constant 7 : index
    %211 = memref.load %arg4[%c7_42] : memref<72xf32, #tpu.memory_space<smem>>
    %212 = vector.broadcast %209 : f32 to vector<16x32xf32>
    %213 = arith.mulf %212, %205 : vector<16x32xf32>
    %214 = arith.addf %174, %213 : vector<16x32xf32>
    %215 = vector.broadcast %210 : f32 to vector<16x32xf32>
    %216 = arith.mulf %215, %206 : vector<16x32xf32>
    %217 = arith.addf %214, %216 : vector<16x32xf32>
    %218 = vector.broadcast %211 : f32 to vector<16x32xf32>
    %219 = arith.mulf %218, %207 : vector<16x32xf32>
    %220 = arith.addf %217, %219 : vector<16x32xf32>
    %221 = vector.broadcast %209 : f32 to vector<16x32xf32>
    %222 = arith.mulf %221, %206 : vector<16x32xf32>
    %223 = arith.addf %183, %222 : vector<16x32xf32>
    %224 = vector.broadcast %210 : f32 to vector<16x32xf32>
    %225 = arith.mulf %224, %207 : vector<16x32xf32>
    %226 = arith.addf %223, %225 : vector<16x32xf32>
    %227 = vector.broadcast %211 : f32 to vector<16x32xf32>
    %228 = arith.mulf %227, %208 : vector<16x32xf32>
    %229 = arith.addf %226, %228 : vector<16x32xf32>
    %c37 = arith.constant 37 : index
    %230 = memref.load %arg4[%c37] : memref<72xf32, #tpu.memory_space<smem>>
    %c40 = arith.constant 40 : index
    %231 = memref.load %arg4[%c40] : memref<72xf32, #tpu.memory_space<smem>>
    %c43 = arith.constant 43 : index
    %232 = memref.load %arg4[%c43] : memref<72xf32, #tpu.memory_space<smem>>
    %233 = vector.broadcast %230 : f32 to vector<16x32xf32>
    %234 = arith.mulf %233, %205 : vector<16x32xf32>
    %235 = arith.addf %195, %234 : vector<16x32xf32>
    %236 = vector.broadcast %231 : f32 to vector<16x32xf32>
    %237 = arith.mulf %236, %206 : vector<16x32xf32>
    %238 = arith.addf %235, %237 : vector<16x32xf32>
    %239 = vector.broadcast %232 : f32 to vector<16x32xf32>
    %240 = arith.mulf %239, %207 : vector<16x32xf32>
    %241 = arith.addf %238, %240 : vector<16x32xf32>
    %242 = vector.broadcast %230 : f32 to vector<16x32xf32>
    %243 = arith.mulf %242, %206 : vector<16x32xf32>
    %244 = arith.addf %204, %243 : vector<16x32xf32>
    %245 = vector.broadcast %231 : f32 to vector<16x32xf32>
    %246 = arith.mulf %245, %207 : vector<16x32xf32>
    %247 = arith.addf %244, %246 : vector<16x32xf32>
    %248 = vector.broadcast %232 : f32 to vector<16x32xf32>
    %249 = arith.mulf %248, %208 : vector<16x32xf32>
    %250 = arith.addf %247, %249 : vector<16x32xf32>
    %251 = vector.extract_strided_slice %139 {offsets = [0, 2], sizes = [16, 32], strides = [1, 1]} : vector<16x34xf32> to vector<16x32xf32>
    %252 = vector.extract_strided_slice %144 {offsets = [0, 2], sizes = [16, 32], strides = [1, 1]} : vector<16x34xf32> to vector<16x32xf32>
    %253 = vector.extract_strided_slice %149 {offsets = [0, 2], sizes = [16, 32], strides = [1, 1]} : vector<16x34xf32> to vector<16x32xf32>
    %254 = vector.extract_strided_slice %158 {offsets = [0, 2], sizes = [16, 32], strides = [1, 1]} : vector<16x34xf32> to vector<16x32xf32>
    %c2_43 = arith.constant 2 : index
    %255 = memref.load %arg4[%c2_43] : memref<72xf32, #tpu.memory_space<smem>>
    %c5_44 = arith.constant 5 : index
    %256 = memref.load %arg4[%c5_44] : memref<72xf32, #tpu.memory_space<smem>>
    %c8_45 = arith.constant 8 : index
    %257 = memref.load %arg4[%c8_45] : memref<72xf32, #tpu.memory_space<smem>>
    %258 = vector.broadcast %255 : f32 to vector<16x32xf32>
    %259 = arith.mulf %258, %251 : vector<16x32xf32>
    %260 = arith.addf %220, %259 : vector<16x32xf32>
    %261 = vector.broadcast %256 : f32 to vector<16x32xf32>
    %262 = arith.mulf %261, %252 : vector<16x32xf32>
    %263 = arith.addf %260, %262 : vector<16x32xf32>
    %264 = vector.broadcast %257 : f32 to vector<16x32xf32>
    %265 = arith.mulf %264, %253 : vector<16x32xf32>
    %266 = arith.addf %263, %265 : vector<16x32xf32>
    %267 = vector.broadcast %255 : f32 to vector<16x32xf32>
    %268 = arith.mulf %267, %252 : vector<16x32xf32>
    %269 = arith.addf %229, %268 : vector<16x32xf32>
    %270 = vector.broadcast %256 : f32 to vector<16x32xf32>
    %271 = arith.mulf %270, %253 : vector<16x32xf32>
    %272 = arith.addf %269, %271 : vector<16x32xf32>
    %273 = vector.broadcast %257 : f32 to vector<16x32xf32>
    %274 = arith.mulf %273, %254 : vector<16x32xf32>
    %275 = arith.addf %272, %274 : vector<16x32xf32>
    %c38 = arith.constant 38 : index
    %276 = memref.load %arg4[%c38] : memref<72xf32, #tpu.memory_space<smem>>
    %c41 = arith.constant 41 : index
    %277 = memref.load %arg4[%c41] : memref<72xf32, #tpu.memory_space<smem>>
    %c44 = arith.constant 44 : index
    %278 = memref.load %arg4[%c44] : memref<72xf32, #tpu.memory_space<smem>>
    %279 = vector.broadcast %276 : f32 to vector<16x32xf32>
    %280 = arith.mulf %279, %251 : vector<16x32xf32>
    %281 = arith.addf %241, %280 : vector<16x32xf32>
    %282 = vector.broadcast %277 : f32 to vector<16x32xf32>
    %283 = arith.mulf %282, %252 : vector<16x32xf32>
    %284 = arith.addf %281, %283 : vector<16x32xf32>
    %285 = vector.broadcast %278 : f32 to vector<16x32xf32>
    %286 = arith.mulf %285, %253 : vector<16x32xf32>
    %287 = arith.addf %284, %286 : vector<16x32xf32>
    %288 = vector.broadcast %276 : f32 to vector<16x32xf32>
    %289 = arith.mulf %288, %252 : vector<16x32xf32>
    %290 = arith.addf %250, %289 : vector<16x32xf32>
    %291 = vector.broadcast %277 : f32 to vector<16x32xf32>
    %292 = arith.mulf %291, %253 : vector<16x32xf32>
    %293 = arith.addf %290, %292 : vector<16x32xf32>
    %294 = vector.broadcast %278 : f32 to vector<16x32xf32>
    %295 = arith.mulf %294, %254 : vector<16x32xf32>
    %296 = arith.addf %293, %295 : vector<16x32xf32>
    %297 = vector.extract_strided_slice %108 {offsets = [18, 0], sizes = [16, 34], strides = [1, 1]} : vector<72x34xf32> to vector<16x34xf32>
    %298 = vector.extract_strided_slice %108 {offsets = [19, 0], sizes = [16, 34], strides = [1, 1]} : vector<72x34xf32> to vector<16x34xf32>
    %299 = vector.extract_strided_slice %108 {offsets = [20, 0], sizes = [16, 34], strides = [1, 1]} : vector<72x34xf32> to vector<16x34xf32>
    %cst_46 = arith.constant 7.500000e-01 : f32
    %300 = vector.broadcast %cst_46 : f32 to vector<16x34xf32>
    %301 = arith.mulf %300, %297 : vector<16x34xf32>
    %cst_47 = arith.constant 2.500000e-01 : f32
    %302 = vector.broadcast %cst_47 : f32 to vector<16x34xf32>
    %303 = arith.mulf %302, %298 : vector<16x34xf32>
    %304 = arith.addf %301, %303 : vector<16x34xf32>
    %cst_48 = arith.constant 0.000000e+00 : f32
    %305 = vector.shape_cast %114 : vector<16x1xi1> to vector<16x1xi1>
    %306 = vector.broadcast %305 : vector<16x1xi1> to vector<16x34xi1>
    %307 = vector.broadcast %cst_48 : f32 to vector<16x34xf32>
    %308 = arith.select %306, %304, %307 : vector<16x34xi1>, vector<16x34xf32>
    %cst_49 = arith.constant 2.500000e-01 : f32
    %309 = vector.broadcast %cst_49 : f32 to vector<16x34xf32>
    %310 = arith.mulf %309, %297 : vector<16x34xf32>
    %cst_50 = arith.constant 7.500000e-01 : f32
    %311 = vector.broadcast %cst_50 : f32 to vector<16x34xf32>
    %312 = arith.mulf %311, %298 : vector<16x34xf32>
    %313 = arith.addf %310, %312 : vector<16x34xf32>
    %cst_51 = arith.constant 7.500000e-01 : f32
    %314 = vector.broadcast %cst_51 : f32 to vector<16x34xf32>
    %315 = arith.mulf %314, %298 : vector<16x34xf32>
    %cst_52 = arith.constant 2.500000e-01 : f32
    %316 = vector.broadcast %cst_52 : f32 to vector<16x34xf32>
    %317 = arith.mulf %316, %299 : vector<16x34xf32>
    %318 = arith.addf %315, %317 : vector<16x34xf32>
    %cst_53 = arith.constant 2.500000e-01 : f32
    %319 = vector.broadcast %cst_53 : f32 to vector<16x34xf32>
    %320 = arith.mulf %319, %298 : vector<16x34xf32>
    %cst_54 = arith.constant 7.500000e-01 : f32
    %321 = vector.broadcast %cst_54 : f32 to vector<16x34xf32>
    %322 = arith.mulf %321, %299 : vector<16x34xf32>
    %323 = arith.addf %320, %322 : vector<16x34xf32>
    %cst_55 = arith.constant 0.000000e+00 : f32
    %324 = vector.shape_cast %119 : vector<16x1xi1> to vector<16x1xi1>
    %325 = vector.broadcast %324 : vector<16x1xi1> to vector<16x34xi1>
    %326 = vector.broadcast %cst_55 : f32 to vector<16x34xf32>
    %327 = arith.select %325, %323, %326 : vector<16x34xi1>, vector<16x34xf32>
    %328 = vector.extract_strided_slice %308 {offsets = [0, 0], sizes = [16, 32], strides = [1, 1]} : vector<16x34xf32> to vector<16x32xf32>
    %329 = vector.extract_strided_slice %313 {offsets = [0, 0], sizes = [16, 32], strides = [1, 1]} : vector<16x34xf32> to vector<16x32xf32>
    %330 = vector.extract_strided_slice %318 {offsets = [0, 0], sizes = [16, 32], strides = [1, 1]} : vector<16x34xf32> to vector<16x32xf32>
    %331 = vector.extract_strided_slice %327 {offsets = [0, 0], sizes = [16, 32], strides = [1, 1]} : vector<16x34xf32> to vector<16x32xf32>
    %c9_56 = arith.constant 9 : index
    %332 = memref.load %arg4[%c9_56] : memref<72xf32, #tpu.memory_space<smem>>
    %c12_57 = arith.constant 12 : index
    %333 = memref.load %arg4[%c12_57] : memref<72xf32, #tpu.memory_space<smem>>
    %c15_58 = arith.constant 15 : index
    %334 = memref.load %arg4[%c15_58] : memref<72xf32, #tpu.memory_space<smem>>
    %335 = vector.broadcast %332 : f32 to vector<16x32xf32>
    %336 = arith.mulf %335, %328 : vector<16x32xf32>
    %337 = arith.addf %266, %336 : vector<16x32xf32>
    %338 = vector.broadcast %333 : f32 to vector<16x32xf32>
    %339 = arith.mulf %338, %329 : vector<16x32xf32>
    %340 = arith.addf %337, %339 : vector<16x32xf32>
    %341 = vector.broadcast %334 : f32 to vector<16x32xf32>
    %342 = arith.mulf %341, %330 : vector<16x32xf32>
    %343 = arith.addf %340, %342 : vector<16x32xf32>
    %344 = vector.broadcast %332 : f32 to vector<16x32xf32>
    %345 = arith.mulf %344, %329 : vector<16x32xf32>
    %346 = arith.addf %275, %345 : vector<16x32xf32>
    %347 = vector.broadcast %333 : f32 to vector<16x32xf32>
    %348 = arith.mulf %347, %330 : vector<16x32xf32>
    %349 = arith.addf %346, %348 : vector<16x32xf32>
    %350 = vector.broadcast %334 : f32 to vector<16x32xf32>
    %351 = arith.mulf %350, %331 : vector<16x32xf32>
    %352 = arith.addf %349, %351 : vector<16x32xf32>
    %c45 = arith.constant 45 : index
    %353 = memref.load %arg4[%c45] : memref<72xf32, #tpu.memory_space<smem>>
    %c48 = arith.constant 48 : index
    %354 = memref.load %arg4[%c48] : memref<72xf32, #tpu.memory_space<smem>>
    %c51 = arith.constant 51 : index
    %355 = memref.load %arg4[%c51] : memref<72xf32, #tpu.memory_space<smem>>
    %356 = vector.broadcast %353 : f32 to vector<16x32xf32>
    %357 = arith.mulf %356, %328 : vector<16x32xf32>
    %358 = arith.addf %287, %357 : vector<16x32xf32>
    %359 = vector.broadcast %354 : f32 to vector<16x32xf32>
    %360 = arith.mulf %359, %329 : vector<16x32xf32>
    %361 = arith.addf %358, %360 : vector<16x32xf32>
    %362 = vector.broadcast %355 : f32 to vector<16x32xf32>
    %363 = arith.mulf %362, %330 : vector<16x32xf32>
    %364 = arith.addf %361, %363 : vector<16x32xf32>
    %365 = vector.broadcast %353 : f32 to vector<16x32xf32>
    %366 = arith.mulf %365, %329 : vector<16x32xf32>
    %367 = arith.addf %296, %366 : vector<16x32xf32>
    %368 = vector.broadcast %354 : f32 to vector<16x32xf32>
    %369 = arith.mulf %368, %330 : vector<16x32xf32>
    %370 = arith.addf %367, %369 : vector<16x32xf32>
    %371 = vector.broadcast %355 : f32 to vector<16x32xf32>
    %372 = arith.mulf %371, %331 : vector<16x32xf32>
    %373 = arith.addf %370, %372 : vector<16x32xf32>
    %374 = vector.extract_strided_slice %308 {offsets = [0, 1], sizes = [16, 32], strides = [1, 1]} : vector<16x34xf32> to vector<16x32xf32>
    %375 = vector.extract_strided_slice %313 {offsets = [0, 1], sizes = [16, 32], strides = [1, 1]} : vector<16x34xf32> to vector<16x32xf32>
    %376 = vector.extract_strided_slice %318 {offsets = [0, 1], sizes = [16, 32], strides = [1, 1]} : vector<16x34xf32> to vector<16x32xf32>
    %377 = vector.extract_strided_slice %327 {offsets = [0, 1], sizes = [16, 32], strides = [1, 1]} : vector<16x34xf32> to vector<16x32xf32>
    %c10_59 = arith.constant 10 : index
    %378 = memref.load %arg4[%c10_59] : memref<72xf32, #tpu.memory_space<smem>>
    %c13_60 = arith.constant 13 : index
    %379 = memref.load %arg4[%c13_60] : memref<72xf32, #tpu.memory_space<smem>>
    %c16_61 = arith.constant 16 : index
    %380 = memref.load %arg4[%c16_61] : memref<72xf32, #tpu.memory_space<smem>>
    %381 = vector.broadcast %378 : f32 to vector<16x32xf32>
    %382 = arith.mulf %381, %374 : vector<16x32xf32>
    %383 = arith.addf %343, %382 : vector<16x32xf32>
    %384 = vector.broadcast %379 : f32 to vector<16x32xf32>
    %385 = arith.mulf %384, %375 : vector<16x32xf32>
    %386 = arith.addf %383, %385 : vector<16x32xf32>
    %387 = vector.broadcast %380 : f32 to vector<16x32xf32>
    %388 = arith.mulf %387, %376 : vector<16x32xf32>
    %389 = arith.addf %386, %388 : vector<16x32xf32>
    %390 = vector.broadcast %378 : f32 to vector<16x32xf32>
    %391 = arith.mulf %390, %375 : vector<16x32xf32>
    %392 = arith.addf %352, %391 : vector<16x32xf32>
    %393 = vector.broadcast %379 : f32 to vector<16x32xf32>
    %394 = arith.mulf %393, %376 : vector<16x32xf32>
    %395 = arith.addf %392, %394 : vector<16x32xf32>
    %396 = vector.broadcast %380 : f32 to vector<16x32xf32>
    %397 = arith.mulf %396, %377 : vector<16x32xf32>
    %398 = arith.addf %395, %397 : vector<16x32xf32>
    %c46 = arith.constant 46 : index
    %399 = memref.load %arg4[%c46] : memref<72xf32, #tpu.memory_space<smem>>
    %c49 = arith.constant 49 : index
    %400 = memref.load %arg4[%c49] : memref<72xf32, #tpu.memory_space<smem>>
    %c52 = arith.constant 52 : index
    %401 = memref.load %arg4[%c52] : memref<72xf32, #tpu.memory_space<smem>>
    %402 = vector.broadcast %399 : f32 to vector<16x32xf32>
    %403 = arith.mulf %402, %374 : vector<16x32xf32>
    %404 = arith.addf %364, %403 : vector<16x32xf32>
    %405 = vector.broadcast %400 : f32 to vector<16x32xf32>
    %406 = arith.mulf %405, %375 : vector<16x32xf32>
    %407 = arith.addf %404, %406 : vector<16x32xf32>
    %408 = vector.broadcast %401 : f32 to vector<16x32xf32>
    %409 = arith.mulf %408, %376 : vector<16x32xf32>
    %410 = arith.addf %407, %409 : vector<16x32xf32>
    %411 = vector.broadcast %399 : f32 to vector<16x32xf32>
    %412 = arith.mulf %411, %375 : vector<16x32xf32>
    %413 = arith.addf %373, %412 : vector<16x32xf32>
    %414 = vector.broadcast %400 : f32 to vector<16x32xf32>
    %415 = arith.mulf %414, %376 : vector<16x32xf32>
    %416 = arith.addf %413, %415 : vector<16x32xf32>
    %417 = vector.broadcast %401 : f32 to vector<16x32xf32>
    %418 = arith.mulf %417, %377 : vector<16x32xf32>
    %419 = arith.addf %416, %418 : vector<16x32xf32>
    %420 = vector.extract_strided_slice %308 {offsets = [0, 2], sizes = [16, 32], strides = [1, 1]} : vector<16x34xf32> to vector<16x32xf32>
    %421 = vector.extract_strided_slice %313 {offsets = [0, 2], sizes = [16, 32], strides = [1, 1]} : vector<16x34xf32> to vector<16x32xf32>
    %422 = vector.extract_strided_slice %318 {offsets = [0, 2], sizes = [16, 32], strides = [1, 1]} : vector<16x34xf32> to vector<16x32xf32>
    %423 = vector.extract_strided_slice %327 {offsets = [0, 2], sizes = [16, 32], strides = [1, 1]} : vector<16x34xf32> to vector<16x32xf32>
    %c11_62 = arith.constant 11 : index
    %424 = memref.load %arg4[%c11_62] : memref<72xf32, #tpu.memory_space<smem>>
    %c14_63 = arith.constant 14 : index
    %425 = memref.load %arg4[%c14_63] : memref<72xf32, #tpu.memory_space<smem>>
    %c17_64 = arith.constant 17 : index
    %426 = memref.load %arg4[%c17_64] : memref<72xf32, #tpu.memory_space<smem>>
    %427 = vector.broadcast %424 : f32 to vector<16x32xf32>
    %428 = arith.mulf %427, %420 : vector<16x32xf32>
    %429 = arith.addf %389, %428 : vector<16x32xf32>
    %430 = vector.broadcast %425 : f32 to vector<16x32xf32>
    %431 = arith.mulf %430, %421 : vector<16x32xf32>
    %432 = arith.addf %429, %431 : vector<16x32xf32>
    %433 = vector.broadcast %426 : f32 to vector<16x32xf32>
    %434 = arith.mulf %433, %422 : vector<16x32xf32>
    %435 = arith.addf %432, %434 : vector<16x32xf32>
    %436 = vector.broadcast %424 : f32 to vector<16x32xf32>
    %437 = arith.mulf %436, %421 : vector<16x32xf32>
    %438 = arith.addf %398, %437 : vector<16x32xf32>
    %439 = vector.broadcast %425 : f32 to vector<16x32xf32>
    %440 = arith.mulf %439, %422 : vector<16x32xf32>
    %441 = arith.addf %438, %440 : vector<16x32xf32>
    %442 = vector.broadcast %426 : f32 to vector<16x32xf32>
    %443 = arith.mulf %442, %423 : vector<16x32xf32>
    %444 = arith.addf %441, %443 : vector<16x32xf32>
    %c47 = arith.constant 47 : index
    %445 = memref.load %arg4[%c47] : memref<72xf32, #tpu.memory_space<smem>>
    %c50 = arith.constant 50 : index
    %446 = memref.load %arg4[%c50] : memref<72xf32, #tpu.memory_space<smem>>
    %c53 = arith.constant 53 : index
    %447 = memref.load %arg4[%c53] : memref<72xf32, #tpu.memory_space<smem>>
    %448 = vector.broadcast %445 : f32 to vector<16x32xf32>
    %449 = arith.mulf %448, %420 : vector<16x32xf32>
    %450 = arith.addf %410, %449 : vector<16x32xf32>
    %451 = vector.broadcast %446 : f32 to vector<16x32xf32>
    %452 = arith.mulf %451, %421 : vector<16x32xf32>
    %453 = arith.addf %450, %452 : vector<16x32xf32>
    %454 = vector.broadcast %447 : f32 to vector<16x32xf32>
    %455 = arith.mulf %454, %422 : vector<16x32xf32>
    %456 = arith.addf %453, %455 : vector<16x32xf32>
    %457 = vector.broadcast %445 : f32 to vector<16x32xf32>
    %458 = arith.mulf %457, %421 : vector<16x32xf32>
    %459 = arith.addf %419, %458 : vector<16x32xf32>
    %460 = vector.broadcast %446 : f32 to vector<16x32xf32>
    %461 = arith.mulf %460, %422 : vector<16x32xf32>
    %462 = arith.addf %459, %461 : vector<16x32xf32>
    %463 = vector.broadcast %447 : f32 to vector<16x32xf32>
    %464 = arith.mulf %463, %423 : vector<16x32xf32>
    %465 = arith.addf %462, %464 : vector<16x32xf32>
    %466 = vector.extract_strided_slice %108 {offsets = [36, 0], sizes = [16, 34], strides = [1, 1]} : vector<72x34xf32> to vector<16x34xf32>
    %467 = vector.extract_strided_slice %108 {offsets = [37, 0], sizes = [16, 34], strides = [1, 1]} : vector<72x34xf32> to vector<16x34xf32>
    %468 = vector.extract_strided_slice %108 {offsets = [38, 0], sizes = [16, 34], strides = [1, 1]} : vector<72x34xf32> to vector<16x34xf32>
    %cst_65 = arith.constant 7.500000e-01 : f32
    %469 = vector.broadcast %cst_65 : f32 to vector<16x34xf32>
    %470 = arith.mulf %469, %466 : vector<16x34xf32>
    %cst_66 = arith.constant 2.500000e-01 : f32
    %471 = vector.broadcast %cst_66 : f32 to vector<16x34xf32>
    %472 = arith.mulf %471, %467 : vector<16x34xf32>
    %473 = arith.addf %470, %472 : vector<16x34xf32>
    %cst_67 = arith.constant 0.000000e+00 : f32
    %474 = vector.shape_cast %114 : vector<16x1xi1> to vector<16x1xi1>
    %475 = vector.broadcast %474 : vector<16x1xi1> to vector<16x34xi1>
    %476 = vector.broadcast %cst_67 : f32 to vector<16x34xf32>
    %477 = arith.select %475, %473, %476 : vector<16x34xi1>, vector<16x34xf32>
    %cst_68 = arith.constant 2.500000e-01 : f32
    %478 = vector.broadcast %cst_68 : f32 to vector<16x34xf32>
    %479 = arith.mulf %478, %466 : vector<16x34xf32>
    %cst_69 = arith.constant 7.500000e-01 : f32
    %480 = vector.broadcast %cst_69 : f32 to vector<16x34xf32>
    %481 = arith.mulf %480, %467 : vector<16x34xf32>
    %482 = arith.addf %479, %481 : vector<16x34xf32>
    %cst_70 = arith.constant 7.500000e-01 : f32
    %483 = vector.broadcast %cst_70 : f32 to vector<16x34xf32>
    %484 = arith.mulf %483, %467 : vector<16x34xf32>
    %cst_71 = arith.constant 2.500000e-01 : f32
    %485 = vector.broadcast %cst_71 : f32 to vector<16x34xf32>
    %486 = arith.mulf %485, %468 : vector<16x34xf32>
    %487 = arith.addf %484, %486 : vector<16x34xf32>
    %cst_72 = arith.constant 2.500000e-01 : f32
    %488 = vector.broadcast %cst_72 : f32 to vector<16x34xf32>
    %489 = arith.mulf %488, %467 : vector<16x34xf32>
    %cst_73 = arith.constant 7.500000e-01 : f32
    %490 = vector.broadcast %cst_73 : f32 to vector<16x34xf32>
    %491 = arith.mulf %490, %468 : vector<16x34xf32>
    %492 = arith.addf %489, %491 : vector<16x34xf32>
    %cst_74 = arith.constant 0.000000e+00 : f32
    %493 = vector.shape_cast %119 : vector<16x1xi1> to vector<16x1xi1>
    %494 = vector.broadcast %493 : vector<16x1xi1> to vector<16x34xi1>
    %495 = vector.broadcast %cst_74 : f32 to vector<16x34xf32>
    %496 = arith.select %494, %492, %495 : vector<16x34xi1>, vector<16x34xf32>
    %497 = vector.extract_strided_slice %477 {offsets = [0, 0], sizes = [16, 32], strides = [1, 1]} : vector<16x34xf32> to vector<16x32xf32>
    %498 = vector.extract_strided_slice %482 {offsets = [0, 0], sizes = [16, 32], strides = [1, 1]} : vector<16x34xf32> to vector<16x32xf32>
    %499 = vector.extract_strided_slice %487 {offsets = [0, 0], sizes = [16, 32], strides = [1, 1]} : vector<16x34xf32> to vector<16x32xf32>
    %500 = vector.extract_strided_slice %496 {offsets = [0, 0], sizes = [16, 32], strides = [1, 1]} : vector<16x34xf32> to vector<16x32xf32>
    %c18 = arith.constant 18 : index
    %501 = memref.load %arg4[%c18] : memref<72xf32, #tpu.memory_space<smem>>
    %c21 = arith.constant 21 : index
    %502 = memref.load %arg4[%c21] : memref<72xf32, #tpu.memory_space<smem>>
    %c24 = arith.constant 24 : index
    %503 = memref.load %arg4[%c24] : memref<72xf32, #tpu.memory_space<smem>>
    %504 = vector.broadcast %501 : f32 to vector<16x32xf32>
    %505 = arith.mulf %504, %497 : vector<16x32xf32>
    %506 = arith.addf %435, %505 : vector<16x32xf32>
    %507 = vector.broadcast %502 : f32 to vector<16x32xf32>
    %508 = arith.mulf %507, %498 : vector<16x32xf32>
    %509 = arith.addf %506, %508 : vector<16x32xf32>
    %510 = vector.broadcast %503 : f32 to vector<16x32xf32>
    %511 = arith.mulf %510, %499 : vector<16x32xf32>
    %512 = arith.addf %509, %511 : vector<16x32xf32>
    %513 = vector.broadcast %501 : f32 to vector<16x32xf32>
    %514 = arith.mulf %513, %498 : vector<16x32xf32>
    %515 = arith.addf %444, %514 : vector<16x32xf32>
    %516 = vector.broadcast %502 : f32 to vector<16x32xf32>
    %517 = arith.mulf %516, %499 : vector<16x32xf32>
    %518 = arith.addf %515, %517 : vector<16x32xf32>
    %519 = vector.broadcast %503 : f32 to vector<16x32xf32>
    %520 = arith.mulf %519, %500 : vector<16x32xf32>
    %521 = arith.addf %518, %520 : vector<16x32xf32>
    %c54 = arith.constant 54 : index
    %522 = memref.load %arg4[%c54] : memref<72xf32, #tpu.memory_space<smem>>
    %c57 = arith.constant 57 : index
    %523 = memref.load %arg4[%c57] : memref<72xf32, #tpu.memory_space<smem>>
    %c60 = arith.constant 60 : index
    %524 = memref.load %arg4[%c60] : memref<72xf32, #tpu.memory_space<smem>>
    %525 = vector.broadcast %522 : f32 to vector<16x32xf32>
    %526 = arith.mulf %525, %497 : vector<16x32xf32>
    %527 = arith.addf %456, %526 : vector<16x32xf32>
    %528 = vector.broadcast %523 : f32 to vector<16x32xf32>
    %529 = arith.mulf %528, %498 : vector<16x32xf32>
    %530 = arith.addf %527, %529 : vector<16x32xf32>
    %531 = vector.broadcast %524 : f32 to vector<16x32xf32>
    %532 = arith.mulf %531, %499 : vector<16x32xf32>
    %533 = arith.addf %530, %532 : vector<16x32xf32>
    %534 = vector.broadcast %522 : f32 to vector<16x32xf32>
    %535 = arith.mulf %534, %498 : vector<16x32xf32>
    %536 = arith.addf %465, %535 : vector<16x32xf32>
    %537 = vector.broadcast %523 : f32 to vector<16x32xf32>
    %538 = arith.mulf %537, %499 : vector<16x32xf32>
    %539 = arith.addf %536, %538 : vector<16x32xf32>
    %540 = vector.broadcast %524 : f32 to vector<16x32xf32>
    %541 = arith.mulf %540, %500 : vector<16x32xf32>
    %542 = arith.addf %539, %541 : vector<16x32xf32>
    %543 = vector.extract_strided_slice %477 {offsets = [0, 1], sizes = [16, 32], strides = [1, 1]} : vector<16x34xf32> to vector<16x32xf32>
    %544 = vector.extract_strided_slice %482 {offsets = [0, 1], sizes = [16, 32], strides = [1, 1]} : vector<16x34xf32> to vector<16x32xf32>
    %545 = vector.extract_strided_slice %487 {offsets = [0, 1], sizes = [16, 32], strides = [1, 1]} : vector<16x34xf32> to vector<16x32xf32>
    %546 = vector.extract_strided_slice %496 {offsets = [0, 1], sizes = [16, 32], strides = [1, 1]} : vector<16x34xf32> to vector<16x32xf32>
    %c19 = arith.constant 19 : index
    %547 = memref.load %arg4[%c19] : memref<72xf32, #tpu.memory_space<smem>>
    %c22 = arith.constant 22 : index
    %548 = memref.load %arg4[%c22] : memref<72xf32, #tpu.memory_space<smem>>
    %c25 = arith.constant 25 : index
    %549 = memref.load %arg4[%c25] : memref<72xf32, #tpu.memory_space<smem>>
    %550 = vector.broadcast %547 : f32 to vector<16x32xf32>
    %551 = arith.mulf %550, %543 : vector<16x32xf32>
    %552 = arith.addf %512, %551 : vector<16x32xf32>
    %553 = vector.broadcast %548 : f32 to vector<16x32xf32>
    %554 = arith.mulf %553, %544 : vector<16x32xf32>
    %555 = arith.addf %552, %554 : vector<16x32xf32>
    %556 = vector.broadcast %549 : f32 to vector<16x32xf32>
    %557 = arith.mulf %556, %545 : vector<16x32xf32>
    %558 = arith.addf %555, %557 : vector<16x32xf32>
    %559 = vector.broadcast %547 : f32 to vector<16x32xf32>
    %560 = arith.mulf %559, %544 : vector<16x32xf32>
    %561 = arith.addf %521, %560 : vector<16x32xf32>
    %562 = vector.broadcast %548 : f32 to vector<16x32xf32>
    %563 = arith.mulf %562, %545 : vector<16x32xf32>
    %564 = arith.addf %561, %563 : vector<16x32xf32>
    %565 = vector.broadcast %549 : f32 to vector<16x32xf32>
    %566 = arith.mulf %565, %546 : vector<16x32xf32>
    %567 = arith.addf %564, %566 : vector<16x32xf32>
    %c55 = arith.constant 55 : index
    %568 = memref.load %arg4[%c55] : memref<72xf32, #tpu.memory_space<smem>>
    %c58 = arith.constant 58 : index
    %569 = memref.load %arg4[%c58] : memref<72xf32, #tpu.memory_space<smem>>
    %c61 = arith.constant 61 : index
    %570 = memref.load %arg4[%c61] : memref<72xf32, #tpu.memory_space<smem>>
    %571 = vector.broadcast %568 : f32 to vector<16x32xf32>
    %572 = arith.mulf %571, %543 : vector<16x32xf32>
    %573 = arith.addf %533, %572 : vector<16x32xf32>
    %574 = vector.broadcast %569 : f32 to vector<16x32xf32>
    %575 = arith.mulf %574, %544 : vector<16x32xf32>
    %576 = arith.addf %573, %575 : vector<16x32xf32>
    %577 = vector.broadcast %570 : f32 to vector<16x32xf32>
    %578 = arith.mulf %577, %545 : vector<16x32xf32>
    %579 = arith.addf %576, %578 : vector<16x32xf32>
    %580 = vector.broadcast %568 : f32 to vector<16x32xf32>
    %581 = arith.mulf %580, %544 : vector<16x32xf32>
    %582 = arith.addf %542, %581 : vector<16x32xf32>
    %583 = vector.broadcast %569 : f32 to vector<16x32xf32>
    %584 = arith.mulf %583, %545 : vector<16x32xf32>
    %585 = arith.addf %582, %584 : vector<16x32xf32>
    %586 = vector.broadcast %570 : f32 to vector<16x32xf32>
    %587 = arith.mulf %586, %546 : vector<16x32xf32>
    %588 = arith.addf %585, %587 : vector<16x32xf32>
    %589 = vector.extract_strided_slice %477 {offsets = [0, 2], sizes = [16, 32], strides = [1, 1]} : vector<16x34xf32> to vector<16x32xf32>
    %590 = vector.extract_strided_slice %482 {offsets = [0, 2], sizes = [16, 32], strides = [1, 1]} : vector<16x34xf32> to vector<16x32xf32>
    %591 = vector.extract_strided_slice %487 {offsets = [0, 2], sizes = [16, 32], strides = [1, 1]} : vector<16x34xf32> to vector<16x32xf32>
    %592 = vector.extract_strided_slice %496 {offsets = [0, 2], sizes = [16, 32], strides = [1, 1]} : vector<16x34xf32> to vector<16x32xf32>
    %c20 = arith.constant 20 : index
    %593 = memref.load %arg4[%c20] : memref<72xf32, #tpu.memory_space<smem>>
    %c23 = arith.constant 23 : index
    %594 = memref.load %arg4[%c23] : memref<72xf32, #tpu.memory_space<smem>>
    %c26 = arith.constant 26 : index
    %595 = memref.load %arg4[%c26] : memref<72xf32, #tpu.memory_space<smem>>
    %596 = vector.broadcast %593 : f32 to vector<16x32xf32>
    %597 = arith.mulf %596, %589 : vector<16x32xf32>
    %598 = arith.addf %558, %597 : vector<16x32xf32>
    %599 = vector.broadcast %594 : f32 to vector<16x32xf32>
    %600 = arith.mulf %599, %590 : vector<16x32xf32>
    %601 = arith.addf %598, %600 : vector<16x32xf32>
    %602 = vector.broadcast %595 : f32 to vector<16x32xf32>
    %603 = arith.mulf %602, %591 : vector<16x32xf32>
    %604 = arith.addf %601, %603 : vector<16x32xf32>
    %605 = vector.broadcast %593 : f32 to vector<16x32xf32>
    %606 = arith.mulf %605, %590 : vector<16x32xf32>
    %607 = arith.addf %567, %606 : vector<16x32xf32>
    %608 = vector.broadcast %594 : f32 to vector<16x32xf32>
    %609 = arith.mulf %608, %591 : vector<16x32xf32>
    %610 = arith.addf %607, %609 : vector<16x32xf32>
    %611 = vector.broadcast %595 : f32 to vector<16x32xf32>
    %612 = arith.mulf %611, %592 : vector<16x32xf32>
    %613 = arith.addf %610, %612 : vector<16x32xf32>
    %c56 = arith.constant 56 : index
    %614 = memref.load %arg4[%c56] : memref<72xf32, #tpu.memory_space<smem>>
    %c59 = arith.constant 59 : index
    %615 = memref.load %arg4[%c59] : memref<72xf32, #tpu.memory_space<smem>>
    %c62 = arith.constant 62 : index
    %616 = memref.load %arg4[%c62] : memref<72xf32, #tpu.memory_space<smem>>
    %617 = vector.broadcast %614 : f32 to vector<16x32xf32>
    %618 = arith.mulf %617, %589 : vector<16x32xf32>
    %619 = arith.addf %579, %618 : vector<16x32xf32>
    %620 = vector.broadcast %615 : f32 to vector<16x32xf32>
    %621 = arith.mulf %620, %590 : vector<16x32xf32>
    %622 = arith.addf %619, %621 : vector<16x32xf32>
    %623 = vector.broadcast %616 : f32 to vector<16x32xf32>
    %624 = arith.mulf %623, %591 : vector<16x32xf32>
    %625 = arith.addf %622, %624 : vector<16x32xf32>
    %626 = vector.broadcast %614 : f32 to vector<16x32xf32>
    %627 = arith.mulf %626, %590 : vector<16x32xf32>
    %628 = arith.addf %588, %627 : vector<16x32xf32>
    %629 = vector.broadcast %615 : f32 to vector<16x32xf32>
    %630 = arith.mulf %629, %591 : vector<16x32xf32>
    %631 = arith.addf %628, %630 : vector<16x32xf32>
    %632 = vector.broadcast %616 : f32 to vector<16x32xf32>
    %633 = arith.mulf %632, %592 : vector<16x32xf32>
    %634 = arith.addf %631, %633 : vector<16x32xf32>
    %635 = vector.extract_strided_slice %108 {offsets = [54, 0], sizes = [16, 34], strides = [1, 1]} : vector<72x34xf32> to vector<16x34xf32>
    %636 = vector.extract_strided_slice %108 {offsets = [55, 0], sizes = [16, 34], strides = [1, 1]} : vector<72x34xf32> to vector<16x34xf32>
    %637 = vector.extract_strided_slice %108 {offsets = [56, 0], sizes = [16, 34], strides = [1, 1]} : vector<72x34xf32> to vector<16x34xf32>
    %cst_75 = arith.constant 7.500000e-01 : f32
    %638 = vector.broadcast %cst_75 : f32 to vector<16x34xf32>
    %639 = arith.mulf %638, %635 : vector<16x34xf32>
    %cst_76 = arith.constant 2.500000e-01 : f32
    %640 = vector.broadcast %cst_76 : f32 to vector<16x34xf32>
    %641 = arith.mulf %640, %636 : vector<16x34xf32>
    %642 = arith.addf %639, %641 : vector<16x34xf32>
    %cst_77 = arith.constant 0.000000e+00 : f32
    %643 = vector.shape_cast %114 : vector<16x1xi1> to vector<16x1xi1>
    %644 = vector.broadcast %643 : vector<16x1xi1> to vector<16x34xi1>
    %645 = vector.broadcast %cst_77 : f32 to vector<16x34xf32>
    %646 = arith.select %644, %642, %645 : vector<16x34xi1>, vector<16x34xf32>
    %cst_78 = arith.constant 2.500000e-01 : f32
    %647 = vector.broadcast %cst_78 : f32 to vector<16x34xf32>
    %648 = arith.mulf %647, %635 : vector<16x34xf32>
    %cst_79 = arith.constant 7.500000e-01 : f32
    %649 = vector.broadcast %cst_79 : f32 to vector<16x34xf32>
    %650 = arith.mulf %649, %636 : vector<16x34xf32>
    %651 = arith.addf %648, %650 : vector<16x34xf32>
    %cst_80 = arith.constant 7.500000e-01 : f32
    %652 = vector.broadcast %cst_80 : f32 to vector<16x34xf32>
    %653 = arith.mulf %652, %636 : vector<16x34xf32>
    %cst_81 = arith.constant 2.500000e-01 : f32
    %654 = vector.broadcast %cst_81 : f32 to vector<16x34xf32>
    %655 = arith.mulf %654, %637 : vector<16x34xf32>
    %656 = arith.addf %653, %655 : vector<16x34xf32>
    %cst_82 = arith.constant 2.500000e-01 : f32
    %657 = vector.broadcast %cst_82 : f32 to vector<16x34xf32>
    %658 = arith.mulf %657, %636 : vector<16x34xf32>
    %cst_83 = arith.constant 7.500000e-01 : f32
    %659 = vector.broadcast %cst_83 : f32 to vector<16x34xf32>
    %660 = arith.mulf %659, %637 : vector<16x34xf32>
    %661 = arith.addf %658, %660 : vector<16x34xf32>
    %cst_84 = arith.constant 0.000000e+00 : f32
    %662 = vector.shape_cast %119 : vector<16x1xi1> to vector<16x1xi1>
    %663 = vector.broadcast %662 : vector<16x1xi1> to vector<16x34xi1>
    %664 = vector.broadcast %cst_84 : f32 to vector<16x34xf32>
    %665 = arith.select %663, %661, %664 : vector<16x34xi1>, vector<16x34xf32>
    %666 = vector.extract_strided_slice %646 {offsets = [0, 0], sizes = [16, 32], strides = [1, 1]} : vector<16x34xf32> to vector<16x32xf32>
    %667 = vector.extract_strided_slice %651 {offsets = [0, 0], sizes = [16, 32], strides = [1, 1]} : vector<16x34xf32> to vector<16x32xf32>
    %668 = vector.extract_strided_slice %656 {offsets = [0, 0], sizes = [16, 32], strides = [1, 1]} : vector<16x34xf32> to vector<16x32xf32>
    %669 = vector.extract_strided_slice %665 {offsets = [0, 0], sizes = [16, 32], strides = [1, 1]} : vector<16x34xf32> to vector<16x32xf32>
    %c27 = arith.constant 27 : index
    %670 = memref.load %arg4[%c27] : memref<72xf32, #tpu.memory_space<smem>>
    %c30 = arith.constant 30 : index
    %671 = memref.load %arg4[%c30] : memref<72xf32, #tpu.memory_space<smem>>
    %c33 = arith.constant 33 : index
    %672 = memref.load %arg4[%c33] : memref<72xf32, #tpu.memory_space<smem>>
    %673 = vector.broadcast %670 : f32 to vector<16x32xf32>
    %674 = arith.mulf %673, %666 : vector<16x32xf32>
    %675 = arith.addf %604, %674 : vector<16x32xf32>
    %676 = vector.broadcast %671 : f32 to vector<16x32xf32>
    %677 = arith.mulf %676, %667 : vector<16x32xf32>
    %678 = arith.addf %675, %677 : vector<16x32xf32>
    %679 = vector.broadcast %672 : f32 to vector<16x32xf32>
    %680 = arith.mulf %679, %668 : vector<16x32xf32>
    %681 = arith.addf %678, %680 : vector<16x32xf32>
    %682 = vector.broadcast %670 : f32 to vector<16x32xf32>
    %683 = arith.mulf %682, %667 : vector<16x32xf32>
    %684 = arith.addf %613, %683 : vector<16x32xf32>
    %685 = vector.broadcast %671 : f32 to vector<16x32xf32>
    %686 = arith.mulf %685, %668 : vector<16x32xf32>
    %687 = arith.addf %684, %686 : vector<16x32xf32>
    %688 = vector.broadcast %672 : f32 to vector<16x32xf32>
    %689 = arith.mulf %688, %669 : vector<16x32xf32>
    %690 = arith.addf %687, %689 : vector<16x32xf32>
    %c63 = arith.constant 63 : index
    %691 = memref.load %arg4[%c63] : memref<72xf32, #tpu.memory_space<smem>>
    %c66 = arith.constant 66 : index
    %692 = memref.load %arg4[%c66] : memref<72xf32, #tpu.memory_space<smem>>
    %c69 = arith.constant 69 : index
    %693 = memref.load %arg4[%c69] : memref<72xf32, #tpu.memory_space<smem>>
    %694 = vector.broadcast %691 : f32 to vector<16x32xf32>
    %695 = arith.mulf %694, %666 : vector<16x32xf32>
    %696 = arith.addf %625, %695 : vector<16x32xf32>
    %697 = vector.broadcast %692 : f32 to vector<16x32xf32>
    %698 = arith.mulf %697, %667 : vector<16x32xf32>
    %699 = arith.addf %696, %698 : vector<16x32xf32>
    %700 = vector.broadcast %693 : f32 to vector<16x32xf32>
    %701 = arith.mulf %700, %668 : vector<16x32xf32>
    %702 = arith.addf %699, %701 : vector<16x32xf32>
    %703 = vector.broadcast %691 : f32 to vector<16x32xf32>
    %704 = arith.mulf %703, %667 : vector<16x32xf32>
    %705 = arith.addf %634, %704 : vector<16x32xf32>
    %706 = vector.broadcast %692 : f32 to vector<16x32xf32>
    %707 = arith.mulf %706, %668 : vector<16x32xf32>
    %708 = arith.addf %705, %707 : vector<16x32xf32>
    %709 = vector.broadcast %693 : f32 to vector<16x32xf32>
    %710 = arith.mulf %709, %669 : vector<16x32xf32>
    %711 = arith.addf %708, %710 : vector<16x32xf32>
    %712 = vector.extract_strided_slice %646 {offsets = [0, 1], sizes = [16, 32], strides = [1, 1]} : vector<16x34xf32> to vector<16x32xf32>
    %713 = vector.extract_strided_slice %651 {offsets = [0, 1], sizes = [16, 32], strides = [1, 1]} : vector<16x34xf32> to vector<16x32xf32>
    %714 = vector.extract_strided_slice %656 {offsets = [0, 1], sizes = [16, 32], strides = [1, 1]} : vector<16x34xf32> to vector<16x32xf32>
    %715 = vector.extract_strided_slice %665 {offsets = [0, 1], sizes = [16, 32], strides = [1, 1]} : vector<16x34xf32> to vector<16x32xf32>
    %c28 = arith.constant 28 : index
    %716 = memref.load %arg4[%c28] : memref<72xf32, #tpu.memory_space<smem>>
    %c31 = arith.constant 31 : index
    %717 = memref.load %arg4[%c31] : memref<72xf32, #tpu.memory_space<smem>>
    %c34 = arith.constant 34 : index
    %718 = memref.load %arg4[%c34] : memref<72xf32, #tpu.memory_space<smem>>
    %719 = vector.broadcast %716 : f32 to vector<16x32xf32>
    %720 = arith.mulf %719, %712 : vector<16x32xf32>
    %721 = arith.addf %681, %720 : vector<16x32xf32>
    %722 = vector.broadcast %717 : f32 to vector<16x32xf32>
    %723 = arith.mulf %722, %713 : vector<16x32xf32>
    %724 = arith.addf %721, %723 : vector<16x32xf32>
    %725 = vector.broadcast %718 : f32 to vector<16x32xf32>
    %726 = arith.mulf %725, %714 : vector<16x32xf32>
    %727 = arith.addf %724, %726 : vector<16x32xf32>
    %728 = vector.broadcast %716 : f32 to vector<16x32xf32>
    %729 = arith.mulf %728, %713 : vector<16x32xf32>
    %730 = arith.addf %690, %729 : vector<16x32xf32>
    %731 = vector.broadcast %717 : f32 to vector<16x32xf32>
    %732 = arith.mulf %731, %714 : vector<16x32xf32>
    %733 = arith.addf %730, %732 : vector<16x32xf32>
    %734 = vector.broadcast %718 : f32 to vector<16x32xf32>
    %735 = arith.mulf %734, %715 : vector<16x32xf32>
    %736 = arith.addf %733, %735 : vector<16x32xf32>
    %c64 = arith.constant 64 : index
    %737 = memref.load %arg4[%c64] : memref<72xf32, #tpu.memory_space<smem>>
    %c67 = arith.constant 67 : index
    %738 = memref.load %arg4[%c67] : memref<72xf32, #tpu.memory_space<smem>>
    %c70 = arith.constant 70 : index
    %739 = memref.load %arg4[%c70] : memref<72xf32, #tpu.memory_space<smem>>
    %740 = vector.broadcast %737 : f32 to vector<16x32xf32>
    %741 = arith.mulf %740, %712 : vector<16x32xf32>
    %742 = arith.addf %702, %741 : vector<16x32xf32>
    %743 = vector.broadcast %738 : f32 to vector<16x32xf32>
    %744 = arith.mulf %743, %713 : vector<16x32xf32>
    %745 = arith.addf %742, %744 : vector<16x32xf32>
    %746 = vector.broadcast %739 : f32 to vector<16x32xf32>
    %747 = arith.mulf %746, %714 : vector<16x32xf32>
    %748 = arith.addf %745, %747 : vector<16x32xf32>
    %749 = vector.broadcast %737 : f32 to vector<16x32xf32>
    %750 = arith.mulf %749, %713 : vector<16x32xf32>
    %751 = arith.addf %711, %750 : vector<16x32xf32>
    %752 = vector.broadcast %738 : f32 to vector<16x32xf32>
    %753 = arith.mulf %752, %714 : vector<16x32xf32>
    %754 = arith.addf %751, %753 : vector<16x32xf32>
    %755 = vector.broadcast %739 : f32 to vector<16x32xf32>
    %756 = arith.mulf %755, %715 : vector<16x32xf32>
    %757 = arith.addf %754, %756 : vector<16x32xf32>
    %758 = vector.extract_strided_slice %646 {offsets = [0, 2], sizes = [16, 32], strides = [1, 1]} : vector<16x34xf32> to vector<16x32xf32>
    %759 = vector.extract_strided_slice %651 {offsets = [0, 2], sizes = [16, 32], strides = [1, 1]} : vector<16x34xf32> to vector<16x32xf32>
    %760 = vector.extract_strided_slice %656 {offsets = [0, 2], sizes = [16, 32], strides = [1, 1]} : vector<16x34xf32> to vector<16x32xf32>
    %761 = vector.extract_strided_slice %665 {offsets = [0, 2], sizes = [16, 32], strides = [1, 1]} : vector<16x34xf32> to vector<16x32xf32>
    %c29 = arith.constant 29 : index
    %762 = memref.load %arg4[%c29] : memref<72xf32, #tpu.memory_space<smem>>
    %c32 = arith.constant 32 : index
    %763 = memref.load %arg4[%c32] : memref<72xf32, #tpu.memory_space<smem>>
    %c35 = arith.constant 35 : index
    %764 = memref.load %arg4[%c35] : memref<72xf32, #tpu.memory_space<smem>>
    %765 = vector.broadcast %762 : f32 to vector<16x32xf32>
    %766 = arith.mulf %765, %758 : vector<16x32xf32>
    %767 = arith.addf %727, %766 : vector<16x32xf32>
    %768 = vector.broadcast %763 : f32 to vector<16x32xf32>
    %769 = arith.mulf %768, %759 : vector<16x32xf32>
    %770 = arith.addf %767, %769 : vector<16x32xf32>
    %771 = vector.broadcast %764 : f32 to vector<16x32xf32>
    %772 = arith.mulf %771, %760 : vector<16x32xf32>
    %773 = arith.addf %770, %772 : vector<16x32xf32>
    %774 = vector.broadcast %762 : f32 to vector<16x32xf32>
    %775 = arith.mulf %774, %759 : vector<16x32xf32>
    %776 = arith.addf %736, %775 : vector<16x32xf32>
    %777 = vector.broadcast %763 : f32 to vector<16x32xf32>
    %778 = arith.mulf %777, %760 : vector<16x32xf32>
    %779 = arith.addf %776, %778 : vector<16x32xf32>
    %780 = vector.broadcast %764 : f32 to vector<16x32xf32>
    %781 = arith.mulf %780, %761 : vector<16x32xf32>
    %782 = arith.addf %779, %781 : vector<16x32xf32>
    %c65 = arith.constant 65 : index
    %783 = memref.load %arg4[%c65] : memref<72xf32, #tpu.memory_space<smem>>
    %c68 = arith.constant 68 : index
    %784 = memref.load %arg4[%c68] : memref<72xf32, #tpu.memory_space<smem>>
    %c71 = arith.constant 71 : index
    %785 = memref.load %arg4[%c71] : memref<72xf32, #tpu.memory_space<smem>>
    %786 = vector.broadcast %783 : f32 to vector<16x32xf32>
    %787 = arith.mulf %786, %758 : vector<16x32xf32>
    %788 = arith.addf %748, %787 : vector<16x32xf32>
    %789 = vector.broadcast %784 : f32 to vector<16x32xf32>
    %790 = arith.mulf %789, %759 : vector<16x32xf32>
    %791 = arith.addf %788, %790 : vector<16x32xf32>
    %792 = vector.broadcast %785 : f32 to vector<16x32xf32>
    %793 = arith.mulf %792, %760 : vector<16x32xf32>
    %794 = arith.addf %791, %793 : vector<16x32xf32>
    %795 = vector.broadcast %783 : f32 to vector<16x32xf32>
    %796 = arith.mulf %795, %759 : vector<16x32xf32>
    %797 = arith.addf %757, %796 : vector<16x32xf32>
    %798 = vector.broadcast %784 : f32 to vector<16x32xf32>
    %799 = arith.mulf %798, %760 : vector<16x32xf32>
    %800 = arith.addf %797, %799 : vector<16x32xf32>
    %801 = vector.broadcast %785 : f32 to vector<16x32xf32>
    %802 = arith.mulf %801, %761 : vector<16x32xf32>
    %803 = arith.addf %800, %802 : vector<16x32xf32>
    %cst_85 = arith.constant 1.000000e-01 : f32
    %804 = vector.broadcast %cst_85 : f32 to vector<16x32xf32>
    %805 = arith.mulf %804, %773 : vector<16x32xf32>
    %806 = arith.maximumf %773, %805 : vector<16x32xf32>
    %cst_86 = arith.constant 1.000000e-01 : f32
    %807 = vector.broadcast %cst_86 : f32 to vector<16x32xf32>
    %808 = arith.mulf %807, %782 : vector<16x32xf32>
    %809 = arith.maximumf %782, %808 : vector<16x32xf32>
    %810 = vector.extract_strided_slice %806 {offsets = [0, 0], sizes = [1, 32], strides = [1, 1]} : vector<16x32xf32> to vector<1x32xf32>
    %811 = vector.extract_strided_slice %809 {offsets = [0, 0], sizes = [1, 32], strides = [1, 1]} : vector<16x32xf32> to vector<1x32xf32>
    %812 = vector.extract_strided_slice %806 {offsets = [1, 0], sizes = [1, 32], strides = [1, 1]} : vector<16x32xf32> to vector<1x32xf32>
    %813 = vector.extract_strided_slice %809 {offsets = [1, 0], sizes = [1, 32], strides = [1, 1]} : vector<16x32xf32> to vector<1x32xf32>
    %814 = vector.extract_strided_slice %806 {offsets = [2, 0], sizes = [1, 32], strides = [1, 1]} : vector<16x32xf32> to vector<1x32xf32>
    %815 = vector.extract_strided_slice %809 {offsets = [2, 0], sizes = [1, 32], strides = [1, 1]} : vector<16x32xf32> to vector<1x32xf32>
    %816 = vector.extract_strided_slice %806 {offsets = [3, 0], sizes = [1, 32], strides = [1, 1]} : vector<16x32xf32> to vector<1x32xf32>
    %817 = vector.extract_strided_slice %809 {offsets = [3, 0], sizes = [1, 32], strides = [1, 1]} : vector<16x32xf32> to vector<1x32xf32>
    %818 = vector.extract_strided_slice %806 {offsets = [4, 0], sizes = [1, 32], strides = [1, 1]} : vector<16x32xf32> to vector<1x32xf32>
    %819 = vector.extract_strided_slice %809 {offsets = [4, 0], sizes = [1, 32], strides = [1, 1]} : vector<16x32xf32> to vector<1x32xf32>
    %820 = vector.extract_strided_slice %806 {offsets = [5, 0], sizes = [1, 32], strides = [1, 1]} : vector<16x32xf32> to vector<1x32xf32>
    %821 = vector.extract_strided_slice %809 {offsets = [5, 0], sizes = [1, 32], strides = [1, 1]} : vector<16x32xf32> to vector<1x32xf32>
    %822 = vector.extract_strided_slice %806 {offsets = [6, 0], sizes = [1, 32], strides = [1, 1]} : vector<16x32xf32> to vector<1x32xf32>
    %823 = vector.extract_strided_slice %809 {offsets = [6, 0], sizes = [1, 32], strides = [1, 1]} : vector<16x32xf32> to vector<1x32xf32>
    %824 = vector.extract_strided_slice %806 {offsets = [7, 0], sizes = [1, 32], strides = [1, 1]} : vector<16x32xf32> to vector<1x32xf32>
    %825 = vector.extract_strided_slice %809 {offsets = [7, 0], sizes = [1, 32], strides = [1, 1]} : vector<16x32xf32> to vector<1x32xf32>
    %826 = vector.extract_strided_slice %806 {offsets = [8, 0], sizes = [1, 32], strides = [1, 1]} : vector<16x32xf32> to vector<1x32xf32>
    %827 = vector.extract_strided_slice %809 {offsets = [8, 0], sizes = [1, 32], strides = [1, 1]} : vector<16x32xf32> to vector<1x32xf32>
    %828 = vector.extract_strided_slice %806 {offsets = [9, 0], sizes = [1, 32], strides = [1, 1]} : vector<16x32xf32> to vector<1x32xf32>
    %829 = vector.extract_strided_slice %809 {offsets = [9, 0], sizes = [1, 32], strides = [1, 1]} : vector<16x32xf32> to vector<1x32xf32>
    %830 = vector.extract_strided_slice %806 {offsets = [10, 0], sizes = [1, 32], strides = [1, 1]} : vector<16x32xf32> to vector<1x32xf32>
    %831 = vector.extract_strided_slice %809 {offsets = [10, 0], sizes = [1, 32], strides = [1, 1]} : vector<16x32xf32> to vector<1x32xf32>
    %832 = vector.extract_strided_slice %806 {offsets = [11, 0], sizes = [1, 32], strides = [1, 1]} : vector<16x32xf32> to vector<1x32xf32>
    %833 = vector.extract_strided_slice %809 {offsets = [11, 0], sizes = [1, 32], strides = [1, 1]} : vector<16x32xf32> to vector<1x32xf32>
    %834 = vector.extract_strided_slice %806 {offsets = [12, 0], sizes = [1, 32], strides = [1, 1]} : vector<16x32xf32> to vector<1x32xf32>
    %835 = vector.extract_strided_slice %809 {offsets = [12, 0], sizes = [1, 32], strides = [1, 1]} : vector<16x32xf32> to vector<1x32xf32>
    %836 = vector.extract_strided_slice %806 {offsets = [13, 0], sizes = [1, 32], strides = [1, 1]} : vector<16x32xf32> to vector<1x32xf32>
    %837 = vector.extract_strided_slice %809 {offsets = [13, 0], sizes = [1, 32], strides = [1, 1]} : vector<16x32xf32> to vector<1x32xf32>
    %838 = vector.extract_strided_slice %806 {offsets = [14, 0], sizes = [1, 32], strides = [1, 1]} : vector<16x32xf32> to vector<1x32xf32>
    %839 = vector.extract_strided_slice %809 {offsets = [14, 0], sizes = [1, 32], strides = [1, 1]} : vector<16x32xf32> to vector<1x32xf32>
    %840 = vector.extract_strided_slice %806 {offsets = [15, 0], sizes = [1, 32], strides = [1, 1]} : vector<16x32xf32> to vector<1x32xf32>
    %841 = vector.extract_strided_slice %809 {offsets = [15, 0], sizes = [1, 32], strides = [1, 1]} : vector<16x32xf32> to vector<1x32xf32>
    %842 = tpu.concatenate %810, %811, %812, %813, %814, %815, %816, %817, %818, %819, %820, %821, %822, %823, %824, %825 in 0 : vector<1x32xf32>, vector<1x32xf32>, vector<1x32xf32>, vector<1x32xf32>, vector<1x32xf32>, vector<1x32xf32>, vector<1x32xf32>, vector<1x32xf32>, vector<1x32xf32>, vector<1x32xf32>, vector<1x32xf32>, vector<1x32xf32>, vector<1x32xf32>, vector<1x32xf32>, vector<1x32xf32>, vector<1x32xf32> -> vector<16x32xf32>
    %843 = tpu.concatenate %826, %827, %828, %829, %830, %831, %832, %833, %834, %835, %836, %837, %838, %839, %840, %841 in 0 : vector<1x32xf32>, vector<1x32xf32>, vector<1x32xf32>, vector<1x32xf32>, vector<1x32xf32>, vector<1x32xf32>, vector<1x32xf32>, vector<1x32xf32>, vector<1x32xf32>, vector<1x32xf32>, vector<1x32xf32>, vector<1x32xf32>, vector<1x32xf32>, vector<1x32xf32>, vector<1x32xf32>, vector<1x32xf32> -> vector<16x32xf32>
    %844 = tpu.concatenate %842, %843 in 0 : vector<16x32xf32>, vector<16x32xf32> -> vector<32x32xf32>
    %c0_87 = arith.constant 0 : index
    %c0_88 = arith.constant 0 : index
    %c0_89 = arith.constant 0 : index
    %c0_90 = arith.constant 0 : index
    %845 = vector.load %arg6[%c0_87, %c0_88, %c0_89, %c0_90] : memref<1x2x32x32xf32, #tpu.memory_space<vmem>>, vector<1x1x32x32xf32>
    %846 = vector.shape_cast %845 : vector<1x1x32x32xf32> to vector<32x32xf32>
    %847 = vector.shape_cast %844 : vector<32x32xf32> to vector<1x1x32x32xf32>
    tpu.vector_store %arg6[%c0_87, %c0_88, %c0_89, %c0_90], %847 {strides = array<i32>} : memref<1x2x32x32xf32, #tpu.memory_space<vmem>>, vector<1x1x32x32xf32>,
    %cst_91 = arith.constant 1.000000e-01 : f32
    %848 = vector.broadcast %cst_91 : f32 to vector<16x32xf32>
    %849 = arith.mulf %848, %794 : vector<16x32xf32>
    %850 = arith.maximumf %794, %849 : vector<16x32xf32>
    %cst_92 = arith.constant 1.000000e-01 : f32
    %851 = vector.broadcast %cst_92 : f32 to vector<16x32xf32>
    %852 = arith.mulf %851, %803 : vector<16x32xf32>
    %853 = arith.maximumf %803, %852 : vector<16x32xf32>
    %854 = vector.extract_strided_slice %850 {offsets = [0, 0], sizes = [1, 32], strides = [1, 1]} : vector<16x32xf32> to vector<1x32xf32>
    %855 = vector.extract_strided_slice %853 {offsets = [0, 0], sizes = [1, 32], strides = [1, 1]} : vector<16x32xf32> to vector<1x32xf32>
    %856 = vector.extract_strided_slice %850 {offsets = [1, 0], sizes = [1, 32], strides = [1, 1]} : vector<16x32xf32> to vector<1x32xf32>
    %857 = vector.extract_strided_slice %853 {offsets = [1, 0], sizes = [1, 32], strides = [1, 1]} : vector<16x32xf32> to vector<1x32xf32>
    %858 = vector.extract_strided_slice %850 {offsets = [2, 0], sizes = [1, 32], strides = [1, 1]} : vector<16x32xf32> to vector<1x32xf32>
    %859 = vector.extract_strided_slice %853 {offsets = [2, 0], sizes = [1, 32], strides = [1, 1]} : vector<16x32xf32> to vector<1x32xf32>
    %860 = vector.extract_strided_slice %850 {offsets = [3, 0], sizes = [1, 32], strides = [1, 1]} : vector<16x32xf32> to vector<1x32xf32>
    %861 = vector.extract_strided_slice %853 {offsets = [3, 0], sizes = [1, 32], strides = [1, 1]} : vector<16x32xf32> to vector<1x32xf32>
    %862 = vector.extract_strided_slice %850 {offsets = [4, 0], sizes = [1, 32], strides = [1, 1]} : vector<16x32xf32> to vector<1x32xf32>
    %863 = vector.extract_strided_slice %853 {offsets = [4, 0], sizes = [1, 32], strides = [1, 1]} : vector<16x32xf32> to vector<1x32xf32>
    %864 = vector.extract_strided_slice %850 {offsets = [5, 0], sizes = [1, 32], strides = [1, 1]} : vector<16x32xf32> to vector<1x32xf32>
    %865 = vector.extract_strided_slice %853 {offsets = [5, 0], sizes = [1, 32], strides = [1, 1]} : vector<16x32xf32> to vector<1x32xf32>
    %866 = vector.extract_strided_slice %850 {offsets = [6, 0], sizes = [1, 32], strides = [1, 1]} : vector<16x32xf32> to vector<1x32xf32>
    %867 = vector.extract_strided_slice %853 {offsets = [6, 0], sizes = [1, 32], strides = [1, 1]} : vector<16x32xf32> to vector<1x32xf32>
    %868 = vector.extract_strided_slice %850 {offsets = [7, 0], sizes = [1, 32], strides = [1, 1]} : vector<16x32xf32> to vector<1x32xf32>
    %869 = vector.extract_strided_slice %853 {offsets = [7, 0], sizes = [1, 32], strides = [1, 1]} : vector<16x32xf32> to vector<1x32xf32>
    %870 = vector.extract_strided_slice %850 {offsets = [8, 0], sizes = [1, 32], strides = [1, 1]} : vector<16x32xf32> to vector<1x32xf32>
    %871 = vector.extract_strided_slice %853 {offsets = [8, 0], sizes = [1, 32], strides = [1, 1]} : vector<16x32xf32> to vector<1x32xf32>
    %872 = vector.extract_strided_slice %850 {offsets = [9, 0], sizes = [1, 32], strides = [1, 1]} : vector<16x32xf32> to vector<1x32xf32>
    %873 = vector.extract_strided_slice %853 {offsets = [9, 0], sizes = [1, 32], strides = [1, 1]} : vector<16x32xf32> to vector<1x32xf32>
    %874 = vector.extract_strided_slice %850 {offsets = [10, 0], sizes = [1, 32], strides = [1, 1]} : vector<16x32xf32> to vector<1x32xf32>
    %875 = vector.extract_strided_slice %853 {offsets = [10, 0], sizes = [1, 32], strides = [1, 1]} : vector<16x32xf32> to vector<1x32xf32>
    %876 = vector.extract_strided_slice %850 {offsets = [11, 0], sizes = [1, 32], strides = [1, 1]} : vector<16x32xf32> to vector<1x32xf32>
    %877 = vector.extract_strided_slice %853 {offsets = [11, 0], sizes = [1, 32], strides = [1, 1]} : vector<16x32xf32> to vector<1x32xf32>
    %878 = vector.extract_strided_slice %850 {offsets = [12, 0], sizes = [1, 32], strides = [1, 1]} : vector<16x32xf32> to vector<1x32xf32>
    %879 = vector.extract_strided_slice %853 {offsets = [12, 0], sizes = [1, 32], strides = [1, 1]} : vector<16x32xf32> to vector<1x32xf32>
    %880 = vector.extract_strided_slice %850 {offsets = [13, 0], sizes = [1, 32], strides = [1, 1]} : vector<16x32xf32> to vector<1x32xf32>
    %881 = vector.extract_strided_slice %853 {offsets = [13, 0], sizes = [1, 32], strides = [1, 1]} : vector<16x32xf32> to vector<1x32xf32>
    %882 = vector.extract_strided_slice %850 {offsets = [14, 0], sizes = [1, 32], strides = [1, 1]} : vector<16x32xf32> to vector<1x32xf32>
    %883 = vector.extract_strided_slice %853 {offsets = [14, 0], sizes = [1, 32], strides = [1, 1]} : vector<16x32xf32> to vector<1x32xf32>
    %884 = vector.extract_strided_slice %850 {offsets = [15, 0], sizes = [1, 32], strides = [1, 1]} : vector<16x32xf32> to vector<1x32xf32>
    %885 = vector.extract_strided_slice %853 {offsets = [15, 0], sizes = [1, 32], strides = [1, 1]} : vector<16x32xf32> to vector<1x32xf32>
    %886 = tpu.concatenate %854, %855, %856, %857, %858, %859, %860, %861, %862, %863, %864, %865, %866, %867, %868, %869 in 0 : vector<1x32xf32>, vector<1x32xf32>, vector<1x32xf32>, vector<1x32xf32>, vector<1x32xf32>, vector<1x32xf32>, vector<1x32xf32>, vector<1x32xf32>, vector<1x32xf32>, vector<1x32xf32>, vector<1x32xf32>, vector<1x32xf32>, vector<1x32xf32>, vector<1x32xf32>, vector<1x32xf32>, vector<1x32xf32> -> vector<16x32xf32>
    %887 = tpu.concatenate %870, %871, %872, %873, %874, %875, %876, %877, %878, %879, %880, %881, %882, %883, %884, %885 in 0 : vector<1x32xf32>, vector<1x32xf32>, vector<1x32xf32>, vector<1x32xf32>, vector<1x32xf32>, vector<1x32xf32>, vector<1x32xf32>, vector<1x32xf32>, vector<1x32xf32>, vector<1x32xf32>, vector<1x32xf32>, vector<1x32xf32>, vector<1x32xf32>, vector<1x32xf32>, vector<1x32xf32>, vector<1x32xf32> -> vector<16x32xf32>
    %888 = tpu.concatenate %886, %887 in 0 : vector<16x32xf32>, vector<16x32xf32> -> vector<32x32xf32>
    %c0_93 = arith.constant 0 : index
    %c1_94 = arith.constant 1 : index
    %c0_95 = arith.constant 0 : index
    %c0_96 = arith.constant 0 : index
    %889 = vector.load %arg6[%c0_93, %c1_94, %c0_95, %c0_96] : memref<1x2x32x32xf32, #tpu.memory_space<vmem>>, vector<1x1x32x32xf32>
    %890 = vector.shape_cast %889 : vector<1x1x32x32xf32> to vector<32x32xf32>
    %891 = vector.shape_cast %888 : vector<32x32xf32> to vector<1x1x32x32xf32>
    tpu.vector_store %arg6[%c0_93, %c1_94, %c0_95, %c0_96], %891 {strides = array<i32>} : memref<1x2x32x32xf32, #tpu.memory_space<vmem>>, vector<1x1x32x32xf32>,
    return
  }
  func.func @transform_0(%arg0: i32, %arg1: i32) -> (i32, i32, i32, i32) {
    %c0_i32 = arith.constant 0 : i32
    %c0_i32_0 = arith.constant 0 : i32
    %c0_i32_1 = arith.constant 0 : i32
    return %arg0, %arg1, %c0_i32, %c0_i32_0 : i32, i32, i32, i32
  }
  func.func @transform_1(%arg0: i32, %arg1: i32) -> (i32, i32) {
    %c0_i32 = arith.constant 0 : i32
    %c0_i32_0 = arith.constant 0 : i32
    %c0_i32_1 = arith.constant 0 : i32
    return %c0_i32, %c0_i32_0 : i32, i32
  }
  func.func @transform_2(%arg0: i32, %arg1: i32) -> i32 {
    %c0_i32 = arith.constant 0 : i32
    %c0_i32_0 = arith.constant 0 : i32
    return %c0_i32 : i32
  }
  func.func @transform_3(%arg0: i32, %arg1: i32) -> i32 {
    %c0_i32 = arith.constant 0 : i32
    %c0_i32_0 = arith.constant 0 : i32
    return %c0_i32 : i32
  }
  func.func @transform_4(%arg0: i32, %arg1: i32) -> (i32, i32, i32, i32) {
    %c0_i32 = arith.constant 0 : i32
    %c0_i32_0 = arith.constant 0 : i32
    %c0_i32_1 = arith.constant 0 : i32
    return %arg0, %c0_i32, %arg1, %c0_i32_0 : i32, i32, i32, i32
  }
}

</mosaic_0001>

<bundles_post_ra>
// kernel: _forward.1
= control target key start
LH: loop header
LB: loop body
LE: loop exit
PB: predicated region body
PF: predicated region fallthrough
CT: control target
= control target key end

     0   :  { %9 = vsyncpa [#allocation4], 0  ;;  %s7746_s0 = inlined_call_operand.vmem [shape: f32[2,1,72,18], index: 0, kind: input, shape index: {}]   ;;  %s7747_s1 = inlined_call_operand.vmem [shape: f32[18,34], index: 1, kind: input, shape index: {}]   ;;  %s7748_s2 = inlined_call_operand.vmem [shape: f32[72], index: 2, kind: input, shape index: {}]   ;;  %s7749_s3 = inlined_call_operand.vmem [shape: f32[2], index: 3, kind: input, shape index: {}]   ;;  %s7750_s4 = inlined_call_operand.hbm [shape: f32[2,2,32,32], index: 4, kind: output, shape index: {}]  }
   0x1   :  { %10 = vsyncpa [#allocation6], 0 }
   0x2   :  { %11 = vsyncpa [#allocation3], 0 }
   0x3   :  { %13 = vsyncpa [#allocation3 + $0x1], 0  ;;  %s4493_s15 = smov 0   ;;  %s4495_s16 = smov 0  }
   0x4   :  { %s4497_s17 = smov 0   ;;  %s4499_s18 = smov 0  }
   0x5   :  { %s4501_s19 = smov 0   ;;  %s4503_s20 = smov 0  }
   0x6 LB: > { %s4079_s21 = sadd.s32 4294967295, %s4441_s20   ;;  %s4080_s22 = sadd.s32 4294967294, %s4441_s20   ;;  %s4441_s20 = sphi %s4503_s20, %s19_s20   ;;  %s4437_s19 = sphi %s4501_s19, %s8389_s19   ;;  %s4433_s18 = sphi %s4499_s18, %s8388_s18   ;;  %s4429_s17 = sphi %s4497_s17, %s8387_s17   ;;  %s4425_s16 = sphi %s4495_s16, %s8386_s16   ;;  %s4421_s15 = sphi %s4493_s15, %s8385_s15  }
   0x7   : > { %s31_s23 = sadd.s32 1, %s4437_s19  ;;  %s131_s24 = sadd.s32 1, %s4429_s17 }
   0x8   : > { %p33_p0 = scmp.ge.s32.totalorder %s31_s23, 2  ;;  %p141_p1 = scmp.ne.s32.totalorder %s4429_s17, %s4425_s16 }
   0x9   : > { %p142_p2 = scmp.eq.s32.totalorder %s4079_s21, 1  ;;  %p147_p3 = scmp.ne.s32.totalorder %s4425_s16, %s4421_s15 }
   0xa   : > { %s8391_s23 = smov (%p33_p0, %s31_s23), 0  ;;  %p148_p5 = scmp.eq.s32.totalorder %s4080_s22, 1 }
   0xb   : > { %p4533_p4 = por %p142_p2, %p141_p1  ;;  %s126_s26 = ssub.s32 %s4437_s19, %s8391_s23 }
   0xc   : > { %p4081_p6 = scmp.ge.s32.totalorder %s4441_s20, 1  ;;  %p129_p7 = scmp.eq.s32.totalorder %s126_s26, 0 }
   0xd   : > { %s7930_s25 = scalar_select %p4533_p4, 1, 0 }
   0xe   : > { %p4540_p8 = por %p148_p5, %p147_p3  ;;  %p155_p9 = scmp.lt.s32.totalorder %s4441_s20, 3 }
   0xf   : > { %s4546_s28 = scalar_select %p129_p7, %s4429_s17, %s131_s24  }
  0x10   : > { %s7931_s27 = scalar_select %p4540_p8, 1, 0 }
  0x11   : > { %p4548_p10 = pnand %p4081_p6, %p155_p9  ;;  %p4552_p11 = scmp.eq.s32.totalorder %s4079_s21, 0 }
  0x12   : > { %s171_s7 = sshll.u32 %s7748_s2, 4  ;;  %s182_s10 = sshll.u32 %s7749_s3, 4  ;;  %s172_s7 = int_to_ptr.vmem [resolvable:$true] %s171_s7  ;;  %s183_s10 = int_to_ptr.vmem [resolvable:$true] %s182_s10 }
  0x13   : > { %s7932_s29 = scalar_select %p4548_p10, 1, 0 }
  0x14   : > { %s7933_s30 = scalar_select %p4552_p11, 1, 0 }
  0x15   : > { %p4201_p12 = pneg %p4548_p10  ;;  %s4325_s12 = scalar_lea.vmem %s172_s7, 16 }
  0x16   : > { %p4326_p0 = scmp.ne.s32.totalorder %s172_s7, %s4325_s12  ;;  %p4333_p5 = scmp.lt.s32.totalorder %s172_s7, %s172_s7 }
  0x17   : > { %p4566_p13 = pnand %p4552_p11, %p4201_p12  ;;  %p4334_p6 = scmp.lt.s32.totalorder %s4325_s12, %s4325_s12 }
  0x19   : > { %p4327_p1 = pneg %p4566_p13  ;;  %p4335_p7 = por %p4334_p6, %p4333_p5 }
  0x1b   : > { %p4328_p2 = pnand %p4327_p1, %p4326_p0 }
  0x1d   : > { %p4329_p3 = pneg %p4328_p2 }
  0x1f   : > { %p4336_p9 = pnand %p4335_p7, %p4329_p3 }
  0x21   : > { %4339 = shalt.err (!%p4336_p9)
}
  0x22   : > { %s4443_s13 = smov [#allocation2]   ;;  %s4340_s14 = scalar_lea.vmem %s183_s10, 16 }
  0x23   : > { %4204 = dma.vmem_to_smem (!%p4566_p13), %s172_s7, 16, %s4443_s13, [#allocation4]  }
  0x24   : > { %p4341_p12 = scmp.ne.s32.totalorder %s183_s10, %s4340_s14  ;;  %p4348_p11 = scmp.lt.s32.totalorder %s183_s10, %s183_s10 }
  0x25   : > { %p4349_p10 = scmp.lt.s32.totalorder %s4340_s14, %s4340_s14 }
  0x26   : > { %p4343_p8 = pnand %p4341_p12, %p4327_p1 }
  0x27   : > { %p4350_p0 = por %p4349_p10, %p4348_p11 }
  0x28   : > { %p4344_p4 = pneg %p4343_p8 }
  0x2a   : > { %p4351_p2 = pnand %p4350_p0, %p4344_p4 }
  0x2c   : > { %4354 = shalt.err (!%p4351_p2)
}
  0x2d   : > { %s4444_s21 = smov [#allocation5]   ;;  %p7935_p3 = scmp.ne.s32.totalorder %s7932_s29, 0 }
  0x2e   : > { %4207 = dma.vmem_to_smem (!%p4566_p13), %s183_s10, 16, %s4444_s21, [#allocation6]  }
  0x2f   : > { %207 = sbr.rel (%p7935_p3) target bundleno = 1110 (0x456), region = 36 }
  0x36   : > { %p7936_p5 = scmp.ne.s32.totalorder %s7933_s30, 0 }
  0x38   : > { %4408 = dma.done.wait (%p7936_p5), [#allocation4], 16  }
  0x39   : > { %4410 = vsyncadd (%p7936_p5), [#allocation4], 4294967280 }
  0x3a   : > { %4412 = dma.done.wait (%p7936_p5), [#allocation6], 16  }
  0x3b   : > { %4414 = vsyncadd (%p7936_p5), [#allocation6], 4294967280 }
  0x3c   : > { %217 = sfence }
  0x3d   : > { %p242_p4 = scmp.lt.s32.totalorder %s4433_s18, 1  ;;  %v4445_v0 = vmov 0   ;;  %v4446_v10 = vmov 1   ;;  %v4447_v11 = vmov 2   ;;  %v4448_v12 = vmov 3   ;;  %s4114_s9 = sld [smem:[#allocation2 + $0x1]] }
  0x3e   : > { %4290 = vset.pattern.permute.xlu1 %v4445_v0  ;;  %4289 = vset.pattern.permute.xlu0 %v4445_v0  ;;  %v4449_v13 = vmov 4   ;;  %v4450_v14 = vmov 5   ;;  %v4451_v15 = vmov 6   ;;  %v4452_v16 = vmov 7   ;;  %v4696_v30 = vld [vmem:[%s7747_s1] ss:$0 sm:$0xff] }
  0x3f   : > { %s243_s22 = scalar_select %p242_p4, %s4433_s18, 1  ;;  %v4453_v24 = vmov 8   ;;  %v4703_v32 = vld [vmem:[%s7747_s1 + $0x1] ss:$0 sm:$0xff]  ;;  %v4454_v42 = vmov 9   ;;  %vm1354_vm0 = vcmask 1046528  }
  0x40   : > { %v4731_v59 = vld [vmem:[%s7747_s1 + $0x2] ss:$0 sm:$0xff]  ;;  %s5210_s10 = sld [smem:[#allocation2 + $0x4]]  ;;  %s5214_s11 = sld [smem:[#allocation2 + $0x7]]  ;;  %vm1894_vm3 = vcmask 1045504   ;;  %vm1919_vm4 = vcmask 1044480  }
  0x41   : > { %s4190_s24 = smul.u32 72, %s243_s22  ;;  %s4463_s12 = smov 127   ;;  %vm3146_vm5 = vcmask 1041408   ;;  %vm3175_vm6 = vcmask 1040384   ;;  %vm2520_vm7 = vcmask 1043456   ;;  %vm2545_vm8 = vcmask 1042432  }
  0x42   : > { %s4117_s13 = sld [smem:[#allocation2 + $0x25]]  ;;  %s4119_s14 = sld [smem:[#allocation2 + $0x2b]]  ;;  %vm3853_vm9 = vcmask 261120  }
  0x43   : > { %s250_s5 = scalar_lea.vmem %s7746_s0, %s4190_s24  ;;  %s4118_s21 = sld [smem:[#allocation2 + $0x28]] }
  0x44   : > { %v4591_v1 = vld [vmem:[%s250_s5 + $0x10] sm:$0xff]  ;;  %v4593_v2 = vld [vmem:[%s250_s5] sm:$0xff]  ;;  %v4597_v3 = vld [vmem:[%s250_s5 + $0x18] sm:$0xff]  ;;  %s4120_s22 = sld [smem:[#allocation2 + $0x2]]  ;;  %s4122_s24 = sld [smem:[#allocation2 + $0x8]] }
  0x45   : > { %274 = vperm.xlu1 %4290, %v4591_v1   ;;  %264 = vperm.xlu0 %4289, %v4593_v2   ;;  %v4599_v4 = vld [vmem:[%s250_s5 + $0x8] sm:$0xff]  ;;  %v4605_v6 = vld [vmem:[%s250_s5 + $0x20] sm:$0xff]  ;;  %v4609_v7 = vld [vmem:[%s250_s5 + $0x38] sm:$0xff]  ;;  %s4121_s26 = sld [smem:[#allocation2 + $0x5]]  ;;  %s4109_s29 = sld [smem:[#allocation2 + $0x3]] }
  0x46   : > { %v4603_v5 = vld [vmem:[%s250_s5 + $0x28] sm:$0xff]  ;;  %v4611_v8 = vld [vmem:[%s250_s5 + $0x30] sm:$0xff]  ;;  %v4615_v9 = vld [vmem:[%s250_s5 + $0x40] sm:$0xff]  ;;  %s1403_s5 = sld [smem:[#allocation2]]  ;;  %s4110_s6 = sld [smem:[#allocation2 + $0x6]] }
  0x47   : > { %s1342_s30 = sld [smem:[#allocation5]]  ;;  %s4464_s7 = smov 126  }
  0x48   : > { %s4112_s8 = sld [smem:[#allocation2 + $0x27]]  ;;  %p8383_p10 = scmp.ne.s32.totalorder %s7930_s25, 0 }
  0x49   : > { %279 = vperm.xlu1 %4290, %v4597_v3   ;;  %269 = vperm.xlu0 %4289, %v4599_v4  }
  0x4d   : > { %289 = vperm.xlu1 %4290, %v4603_v5   ;;  %284 = vperm.xlu0 %4289, %v4605_v6  }
  0x51   : > { %299 = vperm.xlu1 %4290, %v4609_v7   ;;  %294 = vperm.xlu0 %4289, %v4611_v8  }
  0x55   : > { %4291 = vset.pattern.permute.xlu1 %v4446_v10  ;;  %304 = vperm.xlu0 %4289, %v4615_v9  }
  0x56   : > { %322 = vperm.xlu1 %4291, %v4593_v2  }
  0x59   : > { %4292 = vset.pattern.permute.xlu0 %v4446_v10  ;;  %v4455_v10 = vmov 10  }
  0x5a   : > { %330 = vperm.xlu1 %4291, %v4591_v1   ;;  %326 = vperm.xlu0 %4292, %v4599_v4  }
  0x5e   : > { %334 = vperm.xlu1 %4291, %v4597_v3   ;;  %338 = vperm.xlu0 %4292, %v4605_v6  }
  0x62   : > { %342 = vperm.xlu1 %4291, %v4603_v5   ;;  %346 = vperm.xlu0 %4292, %v4611_v8  }
  0x66   : > { %350 = vperm.xlu1 %4291, %v4609_v7   ;;  %354 = vperm.xlu0 %4292, %v4615_v9  }
  0x6a   : > { %4293 = vset.pattern.permute.xlu1 %v4447_v11  ;;  %4294 = vset.pattern.permute.xlu0 %v4447_v11 }
  0x6b   : > { %381 = vperm.xlu1 %4293, %v4593_v2   ;;  %385 = vperm.xlu0 %4294, %v4599_v4  }
  0x6f   : > { %389 = vperm.xlu1 %4293, %v4591_v1   ;;  %397 = vperm.xlu0 %4294, %v4605_v6  }
  0x73   : > { %393 = vperm.xlu1 %4293, %v4597_v3   ;;  %405 = vperm.xlu0 %4294, %v4611_v8  }
  0x77   : > { %401 = vperm.xlu1 %4293, %v4603_v5   ;;  %413 = vperm.xlu0 %4294, %v4615_v9  }
  0x7b   : > { %409 = vperm.xlu1 %4293, %v4609_v7   ;;  %4296 = vset.pattern.permute.xlu0 %v4448_v12 }
  0x7c   : > { %444 = vperm.xlu0 %4296, %v4599_v4  }
  0x7f   : > { %4295 = vset.pattern.permute.xlu1 %v4448_v12 }
  0x80   : > { %440 = vperm.xlu1 %4295, %v4593_v2   ;;  %456 = vperm.xlu0 %4296, %v4605_v6  }
  0x84   : > { %448 = vperm.xlu1 %4295, %v4591_v1   ;;  %464 = vperm.xlu0 %4296, %v4611_v8  }
  0x88   : > { %452 = vperm.xlu1 %4295, %v4597_v3   ;;  %472 = vperm.xlu0 %4296, %v4615_v9  }
  0x8c   : > { %460 = vperm.xlu1 %4295, %v4603_v5   ;;  %4298 = vset.pattern.permute.xlu0 %v4449_v13 }
  0x8d   : > { %503 = vperm.xlu0 %4298, %v4599_v4  }
  0x90   : > { %468 = vperm.xlu1 %4295, %v4609_v7  }
  0x91   : > { %515 = vperm.xlu0 %4298, %v4605_v6  }
  0x94   : > { %4297 = vset.pattern.permute.xlu1 %v4449_v13 }
  0x95   : > { %499 = vperm.xlu1 %4297, %v4593_v2   ;;  %523 = vperm.xlu0 %4298, %v4611_v8  }
  0x99   : > { %507 = vperm.xlu1 %4297, %v4591_v1   ;;  %531 = vperm.xlu0 %4298, %v4615_v9  }
  0x9d   : > { %511 = vperm.xlu1 %4297, %v4597_v3   ;;  %4300 = vset.pattern.permute.xlu0 %v4450_v14 }
  0x9e   : > { %562 = vperm.xlu0 %4300, %v4599_v4  }
  0xa1   : > { %519 = vperm.xlu1 %4297, %v4603_v5  }
  0xa2   : > { %574 = vperm.xlu0 %4300, %v4605_v6  }
  0xa5   : > { %527 = vperm.xlu1 %4297, %v4609_v7  }
  0xa6   : > { %582 = vperm.xlu0 %4300, %v4611_v8  }
  0xa9   : > { %4299 = vset.pattern.permute.xlu1 %v4450_v14 }
  0xaa   : > { %558 = vperm.xlu1 %4299, %v4593_v2   ;;  %590 = vperm.xlu0 %4300, %v4615_v9  }
  0xae   : > { %566 = vperm.xlu1 %4299, %v4591_v1   ;;  %4302 = vset.pattern.permute.xlu0 %v4451_v15 }
  0xaf   : > { %621 = vperm.xlu0 %4302, %v4599_v4  }
  0xb2   : > { %570 = vperm.xlu1 %4299, %v4597_v3  }
  0xb3   : > { %633 = vperm.xlu0 %4302, %v4605_v6  }
  0xb6   : > { %578 = vperm.xlu1 %4299, %v4603_v5  }
  0xb7   : > { %641 = vperm.xlu0 %4302, %v4611_v8  }
  0xba   : > { %586 = vperm.xlu1 %4299, %v4609_v7  }
  0xbb   : > { %649 = vperm.xlu0 %4302, %v4615_v9  }
  0xbe   : > { %4301 = vset.pattern.permute.xlu1 %v4451_v15 }
  0xbf   : > { %617 = vperm.xlu1 %4301, %v4593_v2   ;;  %4304 = vset.pattern.permute.xlu0 %v4452_v16 }
  0xc0   : > { %680 = vperm.xlu0 %4304, %v4599_v4  }
  0xc3   : > { %625 = vperm.xlu1 %4301, %v4591_v1  }
  0xc4   : > { %v4670_v17 = vpop.permute.xlu1 %274  ;;  %692 = vperm.xlu0 %4304, %v4605_v6   ;;  %v4673_v18 = vpop.permute.xlu0 %264 }
  0xc7   : > { %629 = vperm.xlu1 %4301, %v4597_v3  }
  0xc8   : > { %v280_v19 = vpop.permute.xlu1 %279  ;;  %700 = vperm.xlu0 %4304, %v4611_v8   ;;  %v4677_v20 = vpop.permute.xlu0 %269 }
  0xc9   : > { %v314_v35 = vmul.f32 %v4696_v30, %v280_v19 }
  0xcb   : > { %637 = vperm.xlu1 %4301, %v4603_v5  }
  0xcc   : > { %v290_v21 = vpop.permute.xlu1 %289  ;;  %708 = vperm.xlu0 %4304, %v4615_v9   ;;  %v285_v22 = vpop.permute.xlu0 %284 }
  0xcd   : > { %v315_v31 = vmul.f32 %v4696_v30, %v285_v22  ;;  %v316_v44 = vmul.f32 %v4696_v30, %v290_v21 }
  0xcf   : > { %645 = vperm.xlu1 %4301, %v4609_v7  }
  0xd0   : > { %v300_v23 = vpop.permute.xlu1 %299  ;;  %4306 = vset.pattern.permute.xlu0 %v4453_v24  ;;  %v295_v25 = vpop.permute.xlu0 %294 }
  0xd1   : > { %739 = vperm.xlu0 %4306, %v4599_v4   ;;  %v317_v38 = vmul.f32 %v4696_v30, %v295_v25  ;;  %v318_v52 = vmul.f32 %v4696_v30, %v300_v23 }
  0xd3   : > { %4303 = vset.pattern.permute.xlu1 %v4452_v16 }
  0xd4   : > { %676 = vperm.xlu1 %4303, %v4593_v2   ;;  %v305_v26 = vpop.permute.xlu0 %304 }
  0xd5   : > { %v4684_v27 = vpop.permute.xlu1 %322  ;;  %751 = vperm.xlu0 %4306, %v4605_v6   ;;  %v319_v47 = vmul.f32 %v4696_v30, %v305_v26 }
  0xd8   : > { %684 = vperm.xlu1 %4303, %v4591_v1  }
  0xd9   : > { %v4688_v28 = vpop.permute.xlu1 %330  ;;  %759 = vperm.xlu0 %4306, %v4611_v8   ;;  %v4691_v29 = vpop.permute.xlu0 %326 }
  0xdc   : > { %688 = vperm.xlu1 %4303, %v4597_v3  }
  0xdd   : > { %v335_v33 = vpop.permute.xlu1 %334  ;;  %767 = vperm.xlu0 %4306, %v4615_v9   ;;  %v339_v34 = vpop.permute.xlu0 %338 }
  0xde   : > { %v364_v36 = vmul.f32 %v4703_v32, %v335_v33  ;;  %v365_v37 = vmul.f32 %v4703_v32, %v339_v34  ;;  %v4754_v34 = vld [vmem:[%s7747_s1 + $0x3] ss:$0 sm:$0xff] }
  0xe0   : > { %v373_v39 = vadd.f32 %v364_v36, %v314_v35  ;;  %v374_v40 = vadd.f32 %v365_v37, %v315_v31  ;;  %696 = vperm.xlu1 %4303, %v4603_v5  }
  0xe1   : > { %v343_v41 = vpop.permute.xlu1 %342  ;;  %4308 = vset.pattern.permute.xlu0 %v4454_v42  ;;  %v347_v43 = vpop.permute.xlu0 %346 }
  0xe2   : > { %v366_v45 = vmul.f32 %v4703_v32, %v343_v41  ;;  %798 = vperm.xlu0 %4308, %v4599_v4   ;;  %v367_v46 = vmul.f32 %v4703_v32, %v347_v43 }
  0xe4   : > { %v375_v48 = vadd.f32 %v366_v45, %v316_v44  ;;  %v376_v49 = vadd.f32 %v367_v46, %v317_v38  ;;  %704 = vperm.xlu1 %4303, %v4609_v7  }
  0xe5   : > { %v351_v50 = vpop.permute.xlu1 %350  ;;  %v355_v51 = vpop.permute.xlu0 %354 }
  0xe6   : > { %v368_v53 = vmul.f32 %v4703_v32, %v351_v50  ;;  %810 = vperm.xlu0 %4308, %v4605_v6   ;;  %v369_v54 = vmul.f32 %v4703_v32, %v355_v51 }
  0xe8   : > { %v377_v55 = vadd.f32 %v368_v53, %v318_v52  ;;  %v378_v56 = vadd.f32 %v369_v54, %v319_v47  ;;  %4305 = vset.pattern.permute.xlu1 %v4453_v24 }
  0xe9   : > { %735 = vperm.xlu1 %4305, %v4593_v2  }
  0xea   : > { %v4722_v57 = vpop.permute.xlu1 %381  ;;  %818 = vperm.xlu0 %4308, %v4611_v8   ;;  %v4725_v58 = vpop.permute.xlu0 %385 }
  0xed   : > { %743 = vperm.xlu1 %4305, %v4591_v1  }
  0xee   : > { %v4733_v60 = vpop.permute.xlu1 %389  ;;  %826 = vperm.xlu0 %4308, %v4615_v9   ;;  %v398_v61 = vpop.permute.xlu0 %397 }
  0xef   : > { %v424_v62 = vmul.f32 %v4731_v59, %v398_v61 }
  0xf1   : > { %v433_v63 = vadd.f32 %v424_v62, %v374_v40  ;;  %747 = vperm.xlu1 %4305, %v4597_v3   ;;  %v4456_v40 = vmov 11  }
  0xf2   : > { %v394_v0 = vpop.permute.xlu1 %393  ;;  %4310 = vset.pattern.permute.xlu0 %v4455_v10  ;;  %v406_v11 = vpop.permute.xlu0 %405 }
  0xf3   : > { %v423_v12 = vmul.f32 %v4731_v59, %v394_v0  ;;  %857 = vperm.xlu0 %4310, %v4599_v4   ;;  %v426_v13 = vmul.f32 %v4731_v59, %v406_v11 }
  0xf5   : > { %v432_v14 = vadd.f32 %v423_v12, %v373_v39  ;;  %v435_v15 = vadd.f32 %v426_v13, %v376_v49  ;;  %755 = vperm.xlu1 %4305, %v4603_v5   ;;  %v4457_v12 = vmov 12  }
  0xf6   : > { %v402_v16 = vpop.permute.xlu1 %401  ;;  %v414_v19 = vpop.permute.xlu0 %413 }
  0xf7   : > { %v425_v21 = vmul.f32 %v4731_v59, %v402_v16  ;;  %869 = vperm.xlu0 %4310, %v4605_v6   ;;  %v428_v22 = vmul.f32 %v4731_v59, %v414_v19 }
  0xf9   : > { %v434_v23 = vadd.f32 %v425_v21, %v375_v48  ;;  %v437_v24 = vadd.f32 %v428_v22, %v378_v56  ;;  %763 = vperm.xlu1 %4305, %v4609_v7  }
  0xfa   : > { %v410_v25 = vpop.permute.xlu1 %409 }
  0xfb   : > { %v427_v26 = vmul.f32 %v4731_v59, %v410_v25  ;;  %877 = vperm.xlu0 %4310, %v4611_v8   ;;  %v4748_v31 = vpop.permute.xlu0 %444 }
  0xfd   : > { %v436_v33 = vadd.f32 %v427_v26, %v377_v55  ;;  %4307 = vset.pattern.permute.xlu1 %v4454_v42  ;;  %v4779_v55 = vld [vmem:[%s7747_s1 + $0x4] ss:$0 sm:$0xff] }
  0xfe   : > { %794 = vperm.xlu1 %4307, %v4593_v2  }
  0xff   : > { %v4756_v35 = vpop.permute.xlu1 %440  ;;  %885 = vperm.xlu0 %4310, %v4615_v9   ;;  %v457_v36 = vpop.permute.xlu0 %456 }
 0x100   : > { %v483_v37 = vmul.f32 %v4754_v34, %v457_v36 }
 0x102   : > { %v492_v38 = vadd.f32 %v483_v37, %v433_v63  ;;  %802 = vperm.xlu1 %4307, %v4591_v1  }
 0x103   : > { %v4761_v39 = vpop.permute.xlu1 %448  ;;  %4312 = vset.pattern.permute.xlu0 %v4456_v40  ;;  %v465_v41 = vpop.permute.xlu0 %464 }
 0x104   : > { %v485_v42 = vmul.f32 %v4754_v34, %v465_v41  ;;  %916 = vperm.xlu0 %4312, %v4599_v4  }
 0x106   : > { %v494_v43 = vadd.f32 %v485_v42, %v435_v15  ;;  %806 = vperm.xlu1 %4307, %v4597_v3  }
 0x107   : > { %v453_v44 = vpop.permute.xlu1 %452  ;;  %v473_v45 = vpop.permute.xlu0 %472 }
 0x108   : > { %v482_v46 = vmul.f32 %v4754_v34, %v453_v44  ;;  %v487_v47 = vmul.f32 %v4754_v34, %v473_v45  ;;  %928 = vperm.xlu0 %4312, %v4605_v6   ;;  %v4458_v45 = vmov 13  }
 0x10a   : > { %v491_v48 = vadd.f32 %v482_v46, %v432_v14  ;;  %v496_v49 = vadd.f32 %v487_v47, %v437_v24  ;;  %814 = vperm.xlu1 %4307, %v4603_v5  }
 0x10b   : > { %v461_v50 = vpop.permute.xlu1 %460 }
 0x10c   : > { %v484_v51 = vmul.f32 %v4754_v34, %v461_v50  ;;  %936 = vperm.xlu0 %4312, %v4611_v8   ;;  %v4773_v52 = vpop.permute.xlu0 %503 }
 0x10e   : > { %v493_v53 = vadd.f32 %v484_v51, %v434_v23  ;;  %822 = vperm.xlu1 %4307, %v4609_v7  }
 0x10f   : > { %v469_v54 = vpop.permute.xlu1 %468 }
 0x110   : > { %v486_v56 = vmul.f32 %v4754_v34, %v469_v54  ;;  %944 = vperm.xlu0 %4312, %v4615_v9   ;;  %v516_v61 = vpop.permute.xlu0 %515 }
 0x111   : > { %v542_v62 = vmul.f32 %v4779_v55, %v516_v61 }
 0x112   : > { %v495_v63 = vadd.f32 %v486_v56, %v436_v33  ;;  %4309 = vset.pattern.permute.xlu1 %v4455_v10  ;;  %v4804_v33 = vld [vmem:[%s7747_s1 + $0x5] ss:$0 sm:$0xff] }
 0x113   : > { %v551_v0 = vadd.f32 %v542_v62, %v492_v38  ;;  %853 = vperm.xlu1 %4309, %v4593_v2   ;;  %v4830_v62 = vld [vmem:[%s7747_s1 + $0x6] ss:$0 sm:$0xff] }
 0x114   : > { %v4785_v11 = vpop.permute.xlu1 %499  ;;  %4314 = vset.pattern.permute.xlu0 %v4457_v12  ;;  %v524_v13 = vpop.permute.xlu0 %523 }
 0x115   : > { %v544_v14 = vmul.f32 %v4779_v55, %v524_v13  ;;  %975 = vperm.xlu0 %4314, %v4599_v4  }
 0x117   : > { %v553_v15 = vadd.f32 %v544_v14, %v494_v43  ;;  %861 = vperm.xlu1 %4309, %v4591_v1  }
 0x118   : > { %v4791_v16 = vpop.permute.xlu1 %507  ;;  %v532_v19 = vpop.permute.xlu0 %531 }
 0x119   : > { %v546_v10 = vmul.f32 %v4779_v55, %v532_v19  ;;  %987 = vperm.xlu0 %4314, %v4605_v6  }
 0x11b   : > { %v555_v21 = vadd.f32 %v546_v10, %v496_v49  ;;  %865 = vperm.xlu1 %4309, %v4597_v3  }
 0x11c   : > { %v512_v22 = vpop.permute.xlu1 %511 }
 0x11d   : > { %v541_v23 = vmul.f32 %v4779_v55, %v512_v22  ;;  %995 = vperm.xlu0 %4314, %v4611_v8   ;;  %v4798_v24 = vpop.permute.xlu0 %562 }
 0x11f   : > { %v550_v25 = vadd.f32 %v541_v23, %v491_v48  ;;  %873 = vperm.xlu1 %4309, %v4603_v5  }
 0x120   : > { %v520_v26 = vpop.permute.xlu1 %519 }
 0x121   : > { %v543_v36 = vmul.f32 %v4779_v55, %v520_v26  ;;  %1003 = vperm.xlu0 %4314, %v4615_v9   ;;  %v575_v37 = vpop.permute.xlu0 %574 }
 0x122   : > { %v601_v38 = vmul.f32 %v4804_v33, %v575_v37 }
 0x123   : > { %v552_v41 = vadd.f32 %v543_v36, %v493_v53  ;;  %881 = vperm.xlu1 %4309, %v4609_v7  }
 0x124   : > { %v610_v42 = vadd.f32 %v601_v38, %v551_v0  ;;  %v528_v43 = vpop.permute.xlu1 %527 }
 0x125   : > { %v545_v44 = vmul.f32 %v4779_v55, %v528_v43  ;;  %4316 = vset.pattern.permute.xlu0 %v4458_v45  ;;  %v583_v46 = vpop.permute.xlu0 %582 }
 0x126   : > { %v603_v47 = vmul.f32 %v4804_v33, %v583_v46  ;;  %1034 = vperm.xlu0 %4316, %v4599_v4  }
 0x127   : > { %v554_v48 = vadd.f32 %v545_v44, %v495_v63  ;;  %4311 = vset.pattern.permute.xlu1 %v4456_v40 }
 0x128   : > { %v612_v49 = vadd.f32 %v603_v47, %v553_v15  ;;  %912 = vperm.xlu1 %4311, %v4593_v2  }
 0x129   : > { %v4816_v50 = vpop.permute.xlu1 %558  ;;  %v591_v51 = vpop.permute.xlu0 %590 }
 0x12a   : > { %v605_v53 = vmul.f32 %v4804_v33, %v591_v51  ;;  %1046 = vperm.xlu0 %4316, %v4605_v6  }
 0x12c   : > { %v614_v54 = vadd.f32 %v605_v53, %v555_v21  ;;  %920 = vperm.xlu1 %4311, %v4591_v1   ;;  %v4459_v21 = vmov 14  }
 0x12d   : > { %v4821_v56 = vpop.permute.xlu1 %566 }
 0x12e   : > { %1054 = vperm.xlu0 %4316, %v4611_v8   ;;  %v4824_v61 = vpop.permute.xlu0 %621 }
 0x130   : > { %924 = vperm.xlu1 %4311, %v4597_v3  }
 0x131   : > { %v571_v40 = vpop.permute.xlu1 %570 }
 0x132   : > { %v600_v63 = vmul.f32 %v4804_v33, %v571_v40  ;;  %1062 = vperm.xlu0 %4316, %v4615_v9   ;;  %v634_v0 = vpop.permute.xlu0 %633  ;;  %v4460_v40 = vmov 15  }
 0x133   : > { %v660_v13 = vmul.f32 %v4830_v62, %v634_v0 }
 0x134   : > { %v609_v14 = vadd.f32 %v600_v63, %v550_v25  ;;  %932 = vperm.xlu1 %4311, %v4603_v5  }
 0x135   : > { %v669_v15 = vadd.f32 %v660_v13, %v610_v42  ;;  %v579_v19 = vpop.permute.xlu1 %578 }
 0x136   : > { %v602_v10 = vmul.f32 %v4804_v33, %v579_v19  ;;  %4318 = vset.pattern.permute.xlu0 %v4459_v21  ;;  %v642_v22 = vpop.permute.xlu0 %641 }
 0x137   : > { %v662_v23 = vmul.f32 %v4830_v62, %v642_v22  ;;  %1093 = vperm.xlu0 %4318, %v4599_v4  }
 0x138   : > { %v611_v26 = vadd.f32 %v602_v10, %v552_v41  ;;  %940 = vperm.xlu1 %4311, %v4609_v7  }
 0x139   : > { %v671_v36 = vadd.f32 %v662_v23, %v612_v49  ;;  %v587_v37 = vpop.permute.xlu1 %586  ;;  %v4857_v49 = vld [vmem:[%s7747_s1 + $0x7] ss:$0 sm:$0xff] }
 0x13a   : > { %v604_v25 = vmul.f32 %v4804_v33, %v587_v37  ;;  %v650_v38 = vpop.permute.xlu0 %649 }
 0x13b   : > { %v664_v42 = vmul.f32 %v4830_v62, %v650_v38  ;;  %1105 = vperm.xlu0 %4318, %v4605_v6  }
 0x13c   : > { %v613_v43 = vadd.f32 %v604_v25, %v554_v48  ;;  %4313 = vset.pattern.permute.xlu1 %v4457_v12 }
 0x13d   : > { %v673_v44 = vadd.f32 %v664_v42, %v614_v54  ;;  %971 = vperm.xlu1 %4313, %v4593_v2  }
 0x13e   : > { %v4846_v46 = vpop.permute.xlu1 %617 }
 0x13f   : > { %1113 = vperm.xlu0 %4318, %v4611_v8   ;;  %v4849_v41 = vpop.permute.xlu0 %680 }
 0x141   : > { %979 = vperm.xlu1 %4313, %v4591_v1  }
 0x142   : > { %v4852_v47 = vpop.permute.xlu1 %625 }
 0x143   : > { %1121 = vperm.xlu0 %4318, %v4615_v9   ;;  %v693_v12 = vpop.permute.xlu0 %692 }
 0x144   : > { %v719_v48 = vmul.f32 %v4857_v49, %v693_v12 }
 0x145   : > { %983 = vperm.xlu1 %4313, %v4597_v3  }
 0x146   : > { %v728_v51 = vadd.f32 %v719_v48, %v669_v15  ;;  %v630_v53 = vpop.permute.xlu1 %629 }
 0x147   : > { %v659_v54 = vmul.f32 %v4830_v62, %v630_v53  ;;  %4320 = vset.pattern.permute.xlu0 %v4460_v40  ;;  %v701_v63 = vpop.permute.xlu0 %700 }
 0x148   : > { %v721_v0 = vmul.f32 %v4857_v49, %v701_v63  ;;  %1152 = vperm.xlu0 %4320, %v4599_v4  }
 0x149   : > { %v668_v13 = vadd.f32 %v659_v54, %v609_v14  ;;  %991 = vperm.xlu1 %4313, %v4603_v5  }
 0x14a   : > { %v730_v19 = vadd.f32 %v721_v0, %v671_v36  ;;  %v638_v10 = vpop.permute.xlu1 %637 }
 0x14b   : > { %v661_v22 = vmul.f32 %v4830_v62, %v638_v10  ;;  %v709_v23 = vpop.permute.xlu0 %708 }
 0x14c   : > { %v723_v15 = vmul.f32 %v4857_v49, %v709_v23  ;;  %1164 = vperm.xlu0 %4320, %v4605_v6  }
 0x14d   : > { %v670_v37 = vadd.f32 %v661_v22, %v611_v26  ;;  %999 = vperm.xlu1 %4313, %v4609_v7   ;;  %v4882_v26 = vld [vmem:[%s7747_s1 + $0x8] ss:$0 sm:$0xff] }
 0x14e   : > { %v732_v25 = vadd.f32 %v723_v15, %v673_v44  ;;  %v646_v38 = vpop.permute.xlu1 %645 }
 0x14f   : > { %v663_v42 = vmul.f32 %v4830_v62, %v646_v38 }
 0x150   : > { %1172 = vperm.xlu0 %4320, %v4611_v8   ;;  %v4873_v14 = vpop.permute.xlu0 %739 }
 0x151   : > { %v672_v36 = vadd.f32 %v663_v42, %v613_v43  ;;  %4315 = vset.pattern.permute.xlu1 %v4458_v45  ;;  %v7756_v45 = vmov 16  }
 0x152   : > { %1030 = vperm.xlu1 %4315, %v4593_v2  }
 0x153   : > { %v4877_v12 = vpop.permute.xlu1 %676 }
 0x154   : > { %1180 = vperm.xlu0 %4320, %v4615_v9   ;;  %v752_v44 = vpop.permute.xlu0 %751 }
 0x155   : > { %v778_v48 = vmul.f32 %v4882_v26, %v752_v44 }
 0x156   : > { %1038 = vperm.xlu1 %4315, %v4591_v1  }
 0x157   : > { %v787_v53 = vadd.f32 %v778_v48, %v728_v51  ;;  %v4887_v43 = vpop.permute.xlu1 %684 }
 0x158   : > { %7937 = vst [vmem:[#allocation11_spill] sm:$0xff] %v4887_v43  ;;  %4322 = vset.pattern.permute.xlu0 %v7756_v45  ;;  %v760_v54 = vpop.permute.xlu0 %759 }
 0x159   : > { %v780_v63 = vmul.f32 %v4882_v26, %v760_v54  ;;  %1211 = vperm.xlu0 %4322, %v4599_v4  }
 0x15a   : > { %1042 = vperm.xlu1 %4315, %v4597_v3  }
 0x15b   : > { %v789_v0 = vadd.f32 %v780_v63, %v730_v19  ;;  %v689_v10 = vpop.permute.xlu1 %688 }
 0x15c   : > { %v718_v22 = vmul.f32 %v4857_v49, %v689_v10  ;;  %v768_v23 = vpop.permute.xlu0 %767 }
 0x15d   : > { %v782_v15 = vmul.f32 %v4882_v26, %v768_v23  ;;  %1223 = vperm.xlu0 %4322, %v4605_v6  }
 0x15e   : > { %v727_v51 = vadd.f32 %v718_v22, %v668_v13  ;;  %1050 = vperm.xlu1 %4315, %v4603_v5   ;;  %v4906_v13 = vld [vmem:[%s7747_s1 + $0x9] ss:$0 sm:$0xff] }
 0x15f   : > { %v791_v38 = vadd.f32 %v782_v15, %v732_v25  ;;  %v697_v42 = vpop.permute.xlu1 %696  ;;  %v7755_v15 = vmov 17  }
 0x160   : > { %v720_v44 = vmul.f32 %v4857_v49, %v697_v42 }
 0x161   : > { %1231 = vperm.xlu0 %4322, %v4611_v8   ;;  %v4899_v48 = vpop.permute.xlu0 %798 }
 0x162   : > { %v729_v19 = vadd.f32 %v720_v44, %v670_v37  ;;  %1058 = vperm.xlu1 %4315, %v4609_v7  }
 0x163   : > { %v705_v54 = vpop.permute.xlu1 %704 }
 0x164   : > { %v722_v63 = vmul.f32 %v4857_v49, %v705_v54 }
 0x165   : > { %1239 = vperm.xlu0 %4322, %v4615_v9   ;;  %v811_v25 = vpop.permute.xlu0 %810 }
 0x166   : > { %v731_v10 = vadd.f32 %v722_v63, %v672_v36  ;;  %v837_v22 = vmul.f32 %v4906_v13, %v811_v25  ;;  %4317 = vset.pattern.permute.xlu1 %v4459_v21 }
 0x167   : > { %1089 = vperm.xlu1 %4317, %v4593_v2  }
 0x168   : > { %v846_v37 = vadd.f32 %v837_v22, %v787_v53  ;;  %v4912_v23 = vpop.permute.xlu1 %735 }
 0x169   : > { %7938 = vst [vmem:[#allocation12_spill] sm:$0xff] %v4912_v23  ;;  %4324 = vset.pattern.permute.xlu0 %v7755_v15  ;;  %v819_v42 = vpop.permute.xlu0 %818 }
 0x16a   : > { %v839_v44 = vmul.f32 %v4906_v13, %v819_v42  ;;  %1270 = vperm.xlu0 %4324, %v4599_v4  }
 0x16b   : > { %1097 = vperm.xlu1 %4317, %v4591_v1  }
 0x16c   : > { %v848_v36 = vadd.f32 %v839_v44, %v789_v0  ;;  %v4918_v54 = vpop.permute.xlu1 %743 }
 0x16d   : > { %7939 = vst [vmem:[#allocation13_spill] sm:$0xff] %v4918_v54  ;;  %v827_v63 = vpop.permute.xlu0 %826 }
 0x16e   : > { %v841_v21 = vmul.f32 %v4906_v13, %v827_v63  ;;  %1282 = vperm.xlu0 %4324, %v4605_v6   ;;  %v4932_v6 = vld [vmem:[%s7747_s1 + $0xa] ss:$0 sm:$0xff] }
 0x16f   : > { %1101 = vperm.xlu1 %4317, %v4597_v3  }
 0x170   : > { %v850_v53 = vadd.f32 %v841_v21, %v791_v38  ;;  %v748_v25 = vpop.permute.xlu1 %747 }
 0x171   : > { %v777_v22 = vmul.f32 %v4882_v26, %v748_v25 }
 0x172   : > { %1290 = vperm.xlu0 %4324, %v4611_v8   ;;  %v4925_v42 = vpop.permute.xlu0 %857 }
 0x173   : > { %v786_v4 = vadd.f32 %v777_v22, %v727_v51  ;;  %1109 = vperm.xlu1 %4317, %v4603_v5  }
 0x174   : > { %v756_v0 = vpop.permute.xlu1 %755 }
 0x175   : > { %v779_v44 = vmul.f32 %v4882_v26, %v756_v0 }
 0x176   : > { %1298 = vperm.xlu0 %4324, %v4615_v9   ;;  %v870_v38 = vpop.permute.xlu0 %869 }
 0x177   : > { %v788_v63 = vadd.f32 %v779_v44, %v729_v19  ;;  %v896_v21 = vmul.f32 %v4932_v6, %v870_v38  ;;  %1117 = vperm.xlu1 %4317, %v4609_v7  }
 0x178   : > { %v764_v8 = vpop.permute.xlu1 %763 }
 0x179   : > { %v905_v51 = vadd.f32 %v896_v21, %v846_v37  ;;  %v781_v25 = vmul.f32 %v4882_v26, %v764_v8 }
 0x17a   : > { %v878_v22 = vpop.permute.xlu0 %877 }
 0x17b   : > { %v790_v15 = vadd.f32 %v781_v25, %v731_v10  ;;  %v898_v0 = vmul.f32 %v4932_v6, %v878_v22  ;;  %4319 = vset.pattern.permute.xlu1 %v4460_v40 }
 0x17c   : > { %1148 = vperm.xlu1 %4319, %v4593_v2  }
 0x17d   : > { %v907_v45 = vadd.f32 %v898_v0, %v848_v36  ;;  %v4941_v9 = vpop.permute.xlu1 %794  ;;  %v4954_v36 = vld [vmem:[%s7747_s1 + $0xb] ss:$0 sm:$0xff] }
 0x17e   : > { %7940 = vst [vmem:[#allocation14_spill] sm:$0xff] %v4941_v9  ;;  %v886_v19 = vpop.permute.xlu0 %885 }
 0x17f   : > { %v900_v44 = vmul.f32 %v4932_v6, %v886_v19 }
 0x180   : > { %1156 = vperm.xlu1 %4319, %v4591_v1  }
 0x181   : > { %v909_v38 = vadd.f32 %v900_v44, %v850_v53  ;;  %v4945_v37 = vpop.permute.xlu1 %802 }
 0x182   : > { %7941 = vst [vmem:[#allocation15_spill] sm:$0xff] %v4945_v37 }
 0x183   : > { %v4947_v21 = vpop.permute.xlu0 %916 }
 0x184   : > { %7942 = vst [vmem:[#allocation16_spill] sm:$0xff] %v4947_v21  ;;  %1160 = vperm.xlu1 %4319, %v4597_v3  }
 0x185   : > { %v807_v10 = vpop.permute.xlu1 %806 }
 0x186   : > { %v836_v40 = vmul.f32 %v4906_v13, %v807_v10 }
 0x187   : > { %v929_v8 = vpop.permute.xlu0 %928 }
 0x188   : > { %v845_v25 = vadd.f32 %v836_v40, %v786_v4  ;;  %v955_v22 = vmul.f32 %v4954_v36, %v929_v8  ;;  %1168 = vperm.xlu1 %4319, %v4603_v5   ;;  %v7943_v8 = vmov 16  }
 0x189   : > { %v815_v53 = vpop.permute.xlu1 %814 }
 0x18a   : > { %v964_v0 = vadd.f32 %v955_v22, %v905_v51  ;;  %v838_v19 = vmul.f32 %v4906_v13, %v815_v53 }
 0x18b   : > { %v937_v44 = vpop.permute.xlu0 %936 }
 0x18c   : > { %v847_v37 = vadd.f32 %v838_v19, %v788_v63  ;;  %v957_v54 = vmul.f32 %v4954_v36, %v937_v44  ;;  %1176 = vperm.xlu1 %4319, %v4609_v7  }
 0x18d   : > { %v823_v10 = vpop.permute.xlu1 %822 }
 0x18e   : > { %v966_v9 = vadd.f32 %v957_v54, %v907_v45  ;;  %v840_v21 = vmul.f32 %v4906_v13, %v823_v10  ;;  %v4975_v45 = vld [vmem:[%s7747_s1 + $0xc] ss:$0 sm:$0xff] }
 0x18f   : > { %v945_v43 = vpop.permute.xlu0 %944 }
 0x190   : > { %v849_v4 = vadd.f32 %v840_v21, %v790_v15  ;;  %v959_v40 = vmul.f32 %v4954_v36, %v945_v43  ;;  %4321 = vset.pattern.permute.xlu1 %v7943_v8 }
 0x191   : > { %1207 = vperm.xlu1 %4321, %v4593_v2  }
 0x192   : > { %v968_v51 = vadd.f32 %v959_v40, %v909_v38  ;;  %v4965_v22 = vpop.permute.xlu1 %853 }
 0x193   : > { %7944 = vst [vmem:[#allocation17_spill] sm:$0xff] %v4965_v22 }
 0x194   : > { %v4967_v63 = vpop.permute.xlu0 %975 }
 0x195   : > { %7945 = vst [vmem:[#allocation18_spill] sm:$0xff] %v4967_v63  ;;  %1215 = vperm.xlu1 %4321, %v4591_v1  }
 0x196   : > { %v4970_v53 = vpop.permute.xlu1 %861 }
 0x197   : > { %7946 = vst [vmem:[#allocation19_spill] sm:$0xff] %v4970_v53 }
 0x198   : > { %v988_v15 = vpop.permute.xlu0 %987 }
 0x199   : > { %v1014_v43 = vmul.f32 %v4975_v45, %v988_v15  ;;  %1219 = vperm.xlu1 %4321, %v4597_v3  }
 0x19a   : > { %v866_v54 = vpop.permute.xlu1 %865 }
 0x19b   : > { %v1023_v38 = vadd.f32 %v1014_v43, %v964_v0  ;;  %v895_v21 = vmul.f32 %v4932_v6, %v866_v54 }
 0x19c   : > { %v996_v19 = vpop.permute.xlu0 %995 }
 0x19d   : > { %v904_v44 = vadd.f32 %v895_v21, %v845_v25  ;;  %v1016_v10 = vmul.f32 %v4975_v45, %v996_v19  ;;  %1227 = vperm.xlu1 %4321, %v4603_v5   ;;  %v7947_v25 = vmov 17  }
 0x19e   : > { %v874_v40 = vpop.permute.xlu1 %873 }
 0x19f   : > { %v1025_v8 = vadd.f32 %v1016_v10, %v966_v9  ;;  %v897_v53 = vmul.f32 %v4932_v6, %v874_v40 }
 0x1a0   : > { %v1004_v22 = vpop.permute.xlu0 %1003 }
 0x1a1   : > { %v906_v63 = vadd.f32 %v897_v53, %v847_v37  ;;  %v1018_v15 = vmul.f32 %v4975_v45, %v1004_v22  ;;  %1235 = vperm.xlu1 %4321, %v4609_v7   ;;  %v4995_v37 = vld [vmem:[%s7747_s1 + $0xd] ss:$0 sm:$0xff] }
 0x1a2   : > { %v882_v23 = vpop.permute.xlu1 %881 }
 0x1a3   : > { %v1027_v0 = vadd.f32 %v1018_v15, %v968_v51  ;;  %v899_v43 = vmul.f32 %v4932_v6, %v882_v23 }
 0x1a5   : > { %v908_v54 = vadd.f32 %v899_v43, %v849_v4  ;;  %4323 = vset.pattern.permute.xlu1 %v7947_v25  ;;  %v4987_v21 = vpop.permute.xlu0 %1034 }
 0x1a6   : > { %1266 = vperm.xlu1 %4323, %v4593_v2  }
 0x1a7   : > { %v4990_v9 = vpop.permute.xlu1 %912 }
 0x1a9   : > { %v1047_v22 = vpop.permute.xlu0 %1046 }
 0x1aa   : > { %v1073_v53 = vmul.f32 %v4995_v37, %v1047_v22  ;;  %1274 = vperm.xlu1 %4323, %v4591_v1  }
 0x1ab   : > { %v4999_v23 = vpop.permute.xlu1 %920 }
 0x1ac   : > { %7948 = vst [vmem:[#allocation20_spill] sm:$0xff] %v4999_v23  ;;  %v1082_v4 = vadd.f32 %v1073_v53, %v1023_v38 }
 0x1ad   : > { %v1055_v51 = vpop.permute.xlu0 %1054 }
 0x1ae   : > { %v1075_v19 = vmul.f32 %v4995_v37, %v1055_v51  ;;  %1278 = vperm.xlu1 %4323, %v4597_v3  }
 0x1af   : > { %v925_v2 = vpop.permute.xlu1 %924 }
 0x1b0   : > { %v1084_v10 = vadd.f32 %v1075_v19, %v1025_v8  ;;  %v954_v40 = vmul.f32 %v4954_v36, %v925_v2 }
 0x1b1   : > { %v1063_v15 = vpop.permute.xlu0 %1062 }
 0x1b2   : > { %v963_v43 = vadd.f32 %v954_v40, %v904_v44  ;;  %v1077_v25 = vmul.f32 %v4995_v37, %v1063_v15  ;;  %1286 = vperm.xlu1 %4323, %v4603_v5   ;;  %v5014_v44 = vld [vmem:[%s7747_s1 + $0xe] ss:$0 sm:$0xff] }
 0x1b3   : > { %v933_v22 = vpop.permute.xlu1 %932 }
 0x1b4   : > { %v1086_v1 = vadd.f32 %v1077_v25, %v1027_v0  ;;  %v956_v23 = vmul.f32 %v4954_v36, %v933_v22 }
 0x1b6   : > { %v965_v38 = vadd.f32 %v956_v23, %v906_v63  ;;  %1294 = vperm.xlu1 %4323, %v4609_v7   ;;  %v5008_v53 = vpop.permute.xlu0 %1093 }
 0x1b7   : > { %v941_v3 = vpop.permute.xlu1 %940 }
 0x1b8   : > { %v958_v8 = vmul.f32 %v4954_v36, %v941_v3 }
 0x1ba   : > { %v967_v51 = vadd.f32 %v958_v8, %v908_v54  ;;  %v1106_v19 = vpop.permute.xlu0 %1105 }
 0x1bb   : > { %v1132_v5 = vmul.f32 %v5014_v44, %v1106_v19 }
 0x1bc   : > { %v5017_v0 = vpop.permute.xlu1 %971 }
 0x1bd   : > { %7949 = vst [vmem:[#allocation21_spill] sm:$0xff] %v5017_v0  ;;  %v5019_v2 = vadd.f32 %v1132_v5, %v1082_v4 }
 0x1be   : > { %v1114_v63 = vpop.permute.xlu0 %1113 }
 0x1bf   : > { %7950 = vst [vmem:[#allocation22_spill] sm:$0xff] %v5019_v2  ;;  %v1134_v7 = vmul.f32 %v5014_v44, %v1114_v63 }
 0x1c0   : > { %v5022_v23 = vpop.permute.xlu1 %979 }
 0x1c1   : > { %7951 = vst [vmem:[#allocation23_spill] sm:$0xff] %v5022_v23  ;;  %v5024_v40 = vadd.f32 %v1134_v7, %v1084_v10 }
 0x1c2   : > { %v1122_v15 = vpop.permute.xlu0 %1121 }
 0x1c3   : > { %7952 = vst [vmem:[#allocation24_spill] sm:$0xff] %v5024_v40  ;;  %v1136_v25 = vmul.f32 %v5014_v44, %v1122_v15 }
 0x1c4   : > { %v984_v22 = vpop.permute.xlu1 %983 }
 0x1c5   : > { %v5027_v3 = vadd.f32 %v1136_v25, %v1086_v1  ;;  %v1013_v54 = vmul.f32 %v4975_v45, %v984_v22 }
 0x1c7   : > { %7953 = vst [vmem:[#allocation25_spill] sm:$0xff] %v5027_v3  ;;  %v1022_v8 = vadd.f32 %v1013_v54, %v963_v43 }
 0x1c8   : > { %v992_v19 = vpop.permute.xlu1 %991 }
 0x1c9   : > { %v1015_v4 = vmul.f32 %v4975_v45, %v992_v19 }
 0x1cb   : > { %v1024_v5 = vadd.f32 %v1015_v4, %v965_v38 }
 0x1cc   : > { %v1000_v2 = vpop.permute.xlu1 %999 }
 0x1cd   : > { %v1017_v63 = vmul.f32 %v4975_v45, %v1000_v2 }
 0x1cf   : > { %v1026_v0 = vadd.f32 %v1017_v63, %v967_v51  ;;  %v5043_v51 = vpop.permute.xlu0 %1152 }
 0x1d1   : > { %v5032_v23 = vpop.permute.xlu1 %1030 }
 0x1d3   : > { %v5046_v3 = vpop.permute.xlu0 %1164 }
 0x1d5   : > { %v5034_v10 = vpop.permute.xlu1 %1038 }
 0x1d9   : > { %v1043_v7 = vpop.permute.xlu1 %1042 }
 0x1da   : > { %v1072_v15 = vmul.f32 %v4995_v37, %v1043_v7 }
 0x1dc   : > { %v1081_v1 = vadd.f32 %v1072_v15, %v1022_v8 }
 0x1dd   : > { %v1051_v25 = vpop.permute.xlu1 %1050 }
 0x1de   : > { %v1074_v22 = vmul.f32 %v4995_v37, %v1051_v25 }
 0x1e0   : > { %v1083_v43 = vadd.f32 %v1074_v22, %v1024_v5 }
 0x1e1   : > { %v1059_v54 = vpop.permute.xlu1 %1058 }
 0x1e2   : > { %v1076_v19 = vmul.f32 %v4995_v37, %v1059_v54 }
 0x1e4   : > { %v1085_v38 = vadd.f32 %v1076_v19, %v1026_v0  ;;  %v5053_v0 = vpop.permute.xlu0 %1172  ;;  %v312_v19 = vmul.f32 %v4696_v30, %v4677_v20 }
 0x1e5   : > { %7955 = vst [vmem:[#allocation27_spill] sm:$0xff] %v5053_v0 }
 0x1e6   : > { %v5039_v4 = vpop.permute.xlu1 %1089 }
 0x1ea   : > { %v5041_v2 = vpop.permute.xlu1 %1097 }
 0x1ee   : > { %v1102_v63 = vpop.permute.xlu1 %1101 }
 0x1ef   : > { %v1131_v40 = vmul.f32 %v5014_v44, %v1102_v63  ;;  %v362_v63 = vmul.f32 %v4703_v32, %v4691_v29  ;;  %v311_v29 = vmul.f32 %v4696_v30, %v4673_v18  ;;  %v479_v18 = vmul.f32 %v4754_v34, %v4756_v35 }
 0x1f0   : > { %v481_v35 = vmul.f32 %v4754_v34, %v4761_v39 }
 0x1f1   : > { %v5048_v8 = vadd.f32 %v1131_v40, %v1081_v1  ;;  %v5064_v1 = vpop.permute.xlu0 %1180 }
 0x1f2   : > { %v1110_v7 = vpop.permute.xlu1 %1109 }
 0x1f3   : > { %v1133_v5 = vmul.f32 %v5014_v44, %v1110_v7  ;;  %v371_v7 = vadd.f32 %v362_v63, %v312_v19  ;;  %v539_v19 = vmul.f32 %v4779_v55, %v4773_v52  ;;  %v363_v63 = vmul.f32 %v4703_v32, %v4688_v28 }
 0x1f4   : > { %v422_v52 = vmul.f32 %v4731_v59, %v4733_v60  ;;  %v657_v28 = vmul.f32 %v4830_v62, %v4824_v61  ;;  %v597_v60 = vmul.f32 %v4804_v33, %v4816_v50  ;;  %v834_v50 = vmul.f32 %v4906_v13, %v4899_v48 }
 0x1f5   : > { %v5051_v15 = vadd.f32 %v1133_v5, %v1083_v43  ;;  %v421_v43 = vmul.f32 %v4731_v59, %v4725_v58  ;;  %v420_v58 = vmul.f32 %v4731_v59, %v4722_v57 }
 0x1f6   : > { %v1118_v25 = vpop.permute.xlu1 %1117 }
 0x1f7   : > { %7954 = vst [vmem:[#allocation26_spill] sm:$0xff] %v5051_v15  ;;  %v1135_v22 = vmul.f32 %v5014_v44, %v1118_v25  ;;  %v430_v15 = vadd.f32 %v421_v43, %v371_v7  ;;  %v5072_v25 = vpop.permute.xlu0 %1211  ;;  %v598_v7 = vmul.f32 %v4804_v33, %v4798_v24  ;;  %v538_v24 = vmul.f32 %v4779_v55, %v4785_v11 }
 0x1f8   : > { %v775_v11 = vmul.f32 %v4882_v26, %v4873_v14 }
 0x1f9   : > { %v5056_v54 = vadd.f32 %v1135_v22, %v1085_v38  ;;  %v480_v38 = vmul.f32 %v4754_v34, %v4748_v31  ;;  %v361_v22 = vmul.f32 %v4703_v32, %v4684_v27  ;;  %v313_v27 = vmul.f32 %v4696_v30, %v4670_v17 }
 0x1fa   : > { %v716_v17 = vmul.f32 %v4857_v49, %v4849_v41  ;;  %v656_v34 = vmul.f32 %v4830_v62, %v4846_v46  ;;  %v599_v41 = vmul.f32 %v4804_v33, %v4821_v56  ;;  %v658_v46 = vmul.f32 %v4830_v62, %v4852_v47 }
 0x1fb   : > { %v5062_v40 = vpop.permute.xlu1 %1148  ;;  %v489_v31 = vadd.f32 %v480_v38, %v430_v15  ;;  %v370_v0 = vadd.f32 %v361_v22, %v311_v29  ;;  %v5098_v32 = vpop.permute.xlu0 %1223  ;;  %v372_v38 = vadd.f32 %v363_v63, %v313_v27  ;;  %v893_v33 = vmul.f32 %v4932_v6, %v4925_v42 }
 0x1fd   : > { %v548_v57 = vadd.f32 %v539_v19, %v489_v31  ;;  %v429_v15 = vadd.f32 %v420_v58, %v370_v0  ;;  %v431_v61 = vadd.f32 %v422_v52, %v372_v38  ;;  %v540_v0 = vmul.f32 %v4779_v55, %v4791_v16  ;;  %v7957_v52 = vld [vmem:[#allocation11_spill] sm:$0xff]  ;;  %v7959_v38 = vld [vmem:[#allocation14_spill] sm:$0xff] }
 0x1fe   : > { %v715_v55 = vmul.f32 %v4857_v49, %v4877_v12  ;;  %v7958_v12 = vld [vmem:[#allocation16_spill] sm:$0xff]  ;;  %v833_v62 = vmul.f32 %v4906_v13, %v7959_v38  ;;  %v7967_v38 = vld [vmem:[#allocation23_spill] sm:$0xff] }
 0x1ff   : > { %v5068_v5 = vpop.permute.xlu1 %1156  ;;  %v607_v29 = vadd.f32 %v598_v7, %v548_v57  ;;  %v488_v59 = vadd.f32 %v479_v18, %v429_v15  ;;  %v490_v39 = vadd.f32 %v481_v35, %v431_v61  ;;  %v5120_v63 = vpop.permute.xlu0 %1231  ;;  %v7956_v18 = vld [vmem:[#allocation12_spill] sm:$0xff]  ;;  %v717_v57 = vmul.f32 %v4857_v49, %v7957_v52 }
 0x200   : > { %v774_v48 = vmul.f32 %v4882_v26, %v7956_v18  ;;  %v952_v15 = vmul.f32 %v4954_v36, %v7958_v12 }
 0x201   : > { %v666_v22 = vadd.f32 %v657_v28, %v607_v29  ;;  %v547_v19 = vadd.f32 %v538_v24, %v488_v59  ;;  %v549_v14 = vadd.f32 %v540_v0, %v490_v39  ;;  %v7960_v29 = vld [vmem:[#allocation13_spill] sm:$0xff]  ;;  %v7961_v59 = vld [vmem:[#allocation18_spill] sm:$0xff] }
 0x202   : > { %v776_v42 = vmul.f32 %v4882_v26, %v7960_v29  ;;  %v7962_v0 = vld [vmem:[#allocation17_spill] sm:$0xff]  ;;  %v951_v26 = vmul.f32 %v4954_v36, %v4990_v9  ;;  %v1128_v29 = vmul.f32 %v5014_v44, %v5039_v4  ;;  %v1130_v4 = vmul.f32 %v5014_v44, %v5041_v2 }
 0x203   : > { %v5074_v20 = vpop.permute.xlu1 %1160  ;;  %v725_v58 = vadd.f32 %v716_v17, %v666_v22  ;;  %v606_v31 = vadd.f32 %v597_v60, %v547_v19  ;;  %v608_v27 = vadd.f32 %v599_v41, %v549_v14  ;;  %v1011_v60 = vmul.f32 %v4975_v45, %v7961_v59  ;;  %v5142_v61 = vpop.permute.xlu0 %1239  ;;  %v7963_v19 = vld [vmem:[#allocation15_spill] sm:$0xff] }
 0x204   : > { %v892_v22 = vmul.f32 %v4932_v6, %v7962_v0  ;;  %v1070_v41 = vmul.f32 %v4995_v37, %v4987_v21  ;;  %v7965_v21 = vld [vmem:[#allocation21_spill] sm:$0xff]  ;;  %v1071_v59 = vmul.f32 %v4995_v37, %v5034_v10 }
 0x205   : > { %v784_v7 = vadd.f32 %v775_v11, %v725_v58  ;;  %v665_v56 = vadd.f32 %v656_v34, %v606_v31  ;;  %v667_v35 = vadd.f32 %v658_v46, %v608_v27  ;;  %v835_v34 = vmul.f32 %v4906_v13, %v7963_v19  ;;  %v7964_v46 = vld [vmem:[#allocation19_spill] sm:$0xff] }
 0x206   : > { %v1129_v13 = vmul.f32 %v5014_v44, %v5008_v53  ;;  %v1069_v53 = vmul.f32 %v4995_v37, %v5032_v23 }
 0x207   : > { %v5088_v43 = vpop.permute.xlu1 %1168  ;;  %v843_v28 = vadd.f32 %v834_v50, %v784_v7  ;;  %v724_v24 = vadd.f32 %v715_v55, %v665_v56  ;;  %v726_v11 = vadd.f32 %v717_v57, %v667_v35  ;;  %v5155_v50 = vld [vmem:[%s7747_s1 + $0xf] ss:$0 sm:$0xff]  ;;  %v894_v7 = vmul.f32 %v4932_v6, %v7964_v46  ;;  %v5170_v57 = vld [vmem:[%s7747_s1 + $0x10] ss:$0 sm:$0xff]  ;;  %v1271_v6 = vpop.permute.xlu0 %1270 }
 0x208   : > { %v1010_v56 = vmul.f32 %v4975_v45, %v7965_v21  ;;  %v1188_v52 = vmul.f32 %v5155_v50, %v5043_v51  ;;  %v5181_v51 = vld [vmem:[%s7747_s1 + $0x11] ss:$0 sm:$0xff]  ;;  %v1247_v35 = vmul.f32 %v5170_v57, %v5072_v25 }
 0x209   : > { %v902_v17 = vadd.f32 %v893_v33, %v843_v28  ;;  %v783_v49 = vadd.f32 %v774_v48, %v724_v24  ;;  %v785_v55 = vadd.f32 %v776_v42, %v726_v11  ;;  %v7966_v48 = vld [vmem:[#allocation20_spill] sm:$0xff] }
 0x20a   : > { %v953_v27 = vmul.f32 %v4954_v36, %v7966_v48  ;;  %v1012_v36 = vmul.f32 %v4975_v45, %v7967_v38  ;;  %v1306_v45 = vmul.f32 %v5181_v51, %v1271_v6  ;;  %v1195_v48 = vmul.f32 %v5155_v50, %v5064_v1 }
 0x20b   : > { %v5106_v30 = vpop.permute.xlu1 %1176  ;;  %v961_v39 = vadd.f32 %v952_v15, %v902_v17  ;;  %v842_v58 = vadd.f32 %v833_v62, %v783_v49  ;;  %v844_v18 = vadd.f32 %v835_v34, %v785_v55 }
 0x20d   : > { %v1020_v14 = vadd.f32 %v1011_v60, %v961_v39  ;;  %v901_v33 = vadd.f32 %v892_v22, %v842_v58  ;;  %v903_v15 = vadd.f32 %v894_v7, %v844_v18  ;;  %v1187_v60 = vmul.f32 %v5155_v50, %v5062_v40  ;;  %v5194_v22 = vpop.permute.xlu0 %1282 }
 0x20e   : > { %v1189_v39 = vmul.f32 %v5155_v50, %v5068_v5  ;;  %v1190_v7 = vmul.f32 %v5155_v50, %v5074_v20 }
 0x20f   : > { %v1079_v9 = vadd.f32 %v1070_v41, %v1020_v14  ;;  %v960_v28 = vadd.f32 %v951_v26, %v901_v33  ;;  %v962_v23 = vadd.f32 %v953_v27, %v903_v15  ;;  %v1323_v41 = vlaneseq }
 0x210   : > { %v5124_v16 = vpop.permute.xlu1 %1207 }
 0x211   : > { %v1138_v24 = vadd.f32 %v1129_v13, %v1079_v9  ;;  %v1019_v62 = vadd.f32 %v1010_v56, %v960_v28  ;;  %v1021_v0 = vadd.f32 %v1012_v36, %v962_v23  ;;  %v1246_v19 = vmul.f32 %v5170_v57, %v5124_v16  ;;  %v5204_v46 = vpop.permute.xlu0 %1290  ;;  %v7969_v23 = vld [vmem:[#allocation25_spill] sm:$0xff] }
 0x212   : > { %v5208_v13 = vshrl.u32 %v1323_v41, 7  ;;  %v1199_v28 = vadd.f32 %v1190_v7, %v5048_v8  ;;  %v5250_v41 = vstv %s5214_s11  ;;  %s4125_s11 = sld [smem:[#allocation2 + $0x2c]] }
 0x213   : > { %v1197_v42 = vadd.f32 %v1188_v52, %v1138_v24  ;;  %v1078_v17 = vadd.f32 %v1069_v53, %v1019_v62  ;;  %v1080_v34 = vadd.f32 %v1071_v59, %v1021_v0  ;;  %v5220_v24 = vstv %s4114_s9  ;;  %s4123_s9 = sld [smem:[#allocation2 + $0x26]] }
 0x214   : > { %v1216_v47 = vpop.permute.xlu1 %1215  ;;  %7968 = vst [vmem:[#allocation12_spill] sm:$0xff] %v5208_v13  ;;  %vm1326_vm1 = vcmp.gt.s32.totalorder %v5208_v13, 0 }
 0x215   : > { %v1256_v25 = vadd.f32 %v1247_v35, %v1197_v42  ;;  %v1137_v11 = vadd.f32 %v1128_v29, %v1078_v17  ;;  %v1139_v58 = vadd.f32 %v1130_v4, %v1080_v34  ;;  %v1248_v55 = vmul.f32 %v5170_v57, %v1216_v47  ;;  %v1299_v6 = vpop.permute.xlu0 %1298 }
 0x216   : > { %v1204_v42 = vadd.f32 %v1195_v48, %v7969_v23  ;;  %v1313_v17 = vmul.f32 %v5181_v51, %v1299_v6 }
 0x217   : > { %v1315_v37 = vadd.f32 %v1306_v45, %v1256_v25  ;;  %v1196_v10 = vadd.f32 %v1187_v60, %v1137_v11  ;;  %v1198_v2 = vadd.f32 %v1189_v39, %v1139_v58  ;;  %v1523_v11 = vstv %s5210_s10  ;;  %s4111_s10 = sld [smem:[#allocation2 + $0x24]] }
 0x218   : > { %v1220_v31 = vpop.permute.xlu1 %1219 }
 0x219   : > { %v1255_v26 = vadd.f32 %v1246_v19, %v1196_v10  ;;  %v1349_v44 = vmul.f32 0.25, %v1315_v37  ;;  %v1257_v33 = vadd.f32 %v1248_v55, %v1198_v2  ;;  %v1347_v18 = vmul.f32 0.75, %v1315_v37 }
 0x21a   : > { %v1249_v9 = vmul.f32 %v5170_v57, %v1220_v31  ;;  %v1254_v31 = vmul.f32 %v5170_v57, %v5142_v61  ;;  %v1194_v19 = vmul.f32 %v5155_v50, %v5106_v30 }
 0x21b   : > { %v1356_v20 = vrot.slane %v1349_v44, 1  ;;  %v1375_v62 = vrot.slane %v1347_v18, 1 }
 0x21c   : > { %v5174_v12 = vpop.permute.xlu1 %1227  ;;  %v1258_v35 = vadd.f32 %v1249_v9, %v1199_v28  ;;  %v1263_v4 = vadd.f32 %v1254_v31, %v1204_v42 }
 0x21e   : > { %v1322_v58 = vadd.f32 %v1313_v17, %v1263_v4  ;;  %v5298_v17 = vadd.s32 8, %v5208_v13 }
 0x220   : > { %v5192_v49 = vpop.permute.xlu1 %1235  ;;  %v5288_v6 = vmul.f32 0.25, %v1322_v58  ;;  %7976 = vst [vmem:[#allocation15_spill] sm:$0xff] %v5298_v17  ;;  %vm1335_vm2 = vcmp.lt.s32.totalorder %v5298_v17, 15 }
 0x222   : > { %7975 = vst [vmem:[#allocation17_spill] sm:$0xff] %v5288_v6  ;;  %v7760_v23 = vrot.slane %v5288_v6, 1 }
 0x225   : > { %v1267_v40 = vpop.permute.xlu1 %1266 }
 0x226   : > { %v1305_v14 = vmul.f32 %v5181_v51, %v1267_v40 }
 0x228   : > { %v1314_v16 = vadd.f32 %v1305_v14, %v1255_v26  ;;  %v1253_v26 = vmul.f32 %v5170_v57, %v5192_v49 }
 0x229   : > { %v1275_v5 = vpop.permute.xlu1 %1274 }
 0x22a   : > { %v1346_v21 = vmul.f32 0.75, %v1314_v16  ;;  %v1348_v56 = vmul.f32 0.25, %v1314_v16  ;;  %v1307_v47 = vmul.f32 %v5181_v51, %v1275_v5 }
 0x22c   : > { %v1355_v27 = vrot.slane %v1348_v56, 1  ;;  %v1316_v52 = vadd.f32 %v1307_v47, %v1257_v33  ;;  %v1374_v53 = vrot.slane %v1346_v21, 1  ;;  %v1203_v33 = vadd.f32 %v1194_v19, %v5056_v54 }
 0x22d   : > { %v1279_v15 = vpop.permute.xlu1 %1278 }
 0x22e   : > { %v1357_v38 = vsel %vm1354_vm0, %v1355_v27, %v1356_v20  ;;  %v1350_v36 = vmul.f32 0.25, %v1316_v52  ;;  %v1370_v1 = vmul.f32 0.75, %v1316_v52  ;;  %v1308_v8 = vmul.f32 %v5181_v51, %v1279_v15 }
 0x22f   : > { %v5225_v29 = vadd.f32 %v1357_v38, %v1346_v21  ;;  %v1376_v61 = vsel %vm1354_vm0, %v1374_v53, %v1375_v62 }
 0x230   : > { %v1358_v59 = vrot.slane %v1350_v36, 1  ;;  %v1377_v45 = vrot.slane %v1370_v1, 1  ;;  %v1317_v60 = vadd.f32 %v1308_v8, %v1258_v35  ;;  %v5254_v55 = vadd.f32 %v1376_v61, %v1348_v56 }
 0x231   : > { %v5231_v0 = vpop.permute.xlu1 %1286  ;;  %v5236_v25 = vsel %vm1326_vm1, %v5225_v29, 0.0  ;;  %v1537_v54 = vmul.f32 %v5250_v41, %v5225_v29 }
 0x232   : > { %v1359_v34 = vsel %vm1354_vm0, %v1356_v20, %v1358_v59  ;;  %v1378_v37 = vsel %vm1354_vm0, %v1375_v62, %v1377_v45  ;;  %v5245_v39 = vmul.f32 0.75, %v1317_v60  ;;  %v5247_v40 = vmul.f32 0.25, %v1317_v60  ;;  %7971 = vst [vmem:[#allocation16_spill] sm:$0xff] %v5254_v55 }
 0x233   : > { %v5243_v10 = vadd.f32 %v1359_v34, %v1347_v18  ;;  %v1511_v30 = vmul.f32 %v5220_v24, %v5236_v25  ;;  %v5258_v14 = vadd.f32 %v1378_v37, %v1349_v44  ;;  %v5265_v21 = vadd.f32 %v1370_v1, %v1358_v59 }
 0x234   : > { %v1881_v2 = vrot.slane %v5247_v40, 1  ;;  %v1906_v16 = vrot.slane %v5245_v39, 1  ;;  %v1262_v18 = vadd.f32 %v1253_v26, %v1203_v33  ;;  %v1524_v48 = vmul.f32 %v1523_v11, %v5254_v55 }
 0x235   : > { %7970 = vst [vmem:[#allocation11_spill] sm:$0xff] %v5243_v10  ;;  %7972 = vst [vmem:[#allocation14_spill] sm:$0xff] %v5258_v14  ;;  %v1295_v7 = vpop.permute.xlu1 %1294  ;;  %v1512_v5 = vmul.f32 %v5220_v24, %v5243_v10  ;;  %1515 = vrot.lane.b32.xlu1 %v1511_v30, %s4463_s12  ;;  %v1538_v44 = vmul.f32 %v5250_v41, %v5243_v10  ;;  %v5283_v20 = vmul.f32 0.75, %v1322_v58  ;;  %v1543_v31 = vrot.slane %v1537_v54, 1 }
 0x236   : > { %7973 = vst [vmem:[#allocation13_spill] sm:$0xff] %v5265_v21  ;;  %v1312_v49 = vmul.f32 %v5181_v51, %v1295_v7  ;;  %v1882_v56 = vsel %vm1354_vm0, %v1358_v59, %v1881_v2  ;;  %v1907_v47 = vsel %vm1354_vm0, %v1377_v45, %v1906_v16  ;;  %v1525_v52 = vmul.f32 %v1523_v11, %v5258_v14 }
 0x237   : > { %1517 = vrot.lane.b32.xlu0 %v1512_v5, %s4463_s12  ;;  %v5280_v9 = vadd.f32 %v1882_v56, %v1370_v1  ;;  %7974 = vst [vmem:[#allocation18_spill] sm:$0xff] %v5283_v20  ;;  %v5285_v27 = vadd.f32 %v1907_v47, %v1350_v36  ;;  %v1544_v53 = vrot.slane %v1538_v44, 1  ;;  %v1539_v15 = vmul.f32 %v5250_v41, %v5265_v21 }
 0x238   : > { %v1321_v28 = vadd.f32 %v1312_v49, %v1262_v18  ;;  %v1386_v38 = vadd.f32 %v1377_v45, %v1350_v36  ;;  %v7759_v42 = vrot.slane %v5283_v20, 1  ;;  %v1568_v59 = vmul.f32 %v1523_v11, %v5225_v29 }
 0x239   : > { %1528 = vrot.lane.b32.xlu1 %v1524_v48, %s4463_s12  ;;  %v1546_v35 = vrot.slane %v1539_v15, 1  ;;  %v1545_v8 = vsel %vm1354_vm0, %v1543_v31, %v1544_v53  ;;  %v1569_v45 = vmul.f32 %v1523_v11, %v5243_v10  ;;  %v1395_v4 = vrot.slane %v5258_v14, 1 }
 0x23a   : > { %v3127_v1 = vmul.f32 0.75, %v1321_v28  ;;  %v3129_v62 = vmul.f32 0.25, %v1321_v28  ;;  %v1397_v19 = vrot.slane %v1386_v38, 1  ;;  %v1556_v34 = vmul.f32 %v5220_v24, %v5254_v55 }
 0x23b   : > { %1530 = vrot.lane.b32.xlu0 %v1525_v52, %s4463_s12  ;;  %v1547_v36 = vsel %vm1354_vm0, %v1544_v53, %v1546_v35  ;;  %v1570_v37 = vmul.f32 %v1523_v11, %v5265_v21  ;;  %v1557_v11 = vmul.f32 %v5220_v24, %v5258_v14  ;;  %v1574_v5 = vrot.slane %v1568_v59, 1 }
 0x23c   : > { %v5302_v61 = vrot.slane %v3129_v62, 1  ;;  %v5304_v60 = vrot.slane %v3127_v1, 1  ;;  %v1575_v33 = vrot.slane %v1569_v45, 1  ;;  %v1394_v44 = vrot.slane %v5254_v55, 1 }
 0x23d   : > { %1548 = vrot.lane.b32.xlu1 %v1545_v8, %s4463_s12  ;;  %v1577_v49 = vrot.slane %v1570_v37, 1  ;;  %v1398_v56 = vsel %vm1354_vm0, %v1395_v4, %v1397_v19  ;;  %v1602_v52 = vstv %s4117_s13  ;;  %v1628_v15 = vstv %s4119_s14  ;;  %s4108_s13 = sld [smem:[#allocation5 + $0x1]]  ;;  %s4113_s14 = sld [smem:[#allocation2 + $0x2a]] }
 0x23e   : > { %7977 = vst [vmem:[#allocation19_spill] sm:$0xff] %v5302_v61  ;;  %v3136_v58 = vsel %vm1354_vm0, %v5302_v61, %v7760_v23  ;;  %v3161_v26 = vsel %vm1354_vm0, %v5304_v60, %v7759_v42  ;;  %v1576_v47 = vsel %vm1354_vm0, %v1574_v5, %v1575_v33  ;;  %v5334_v54 = vsel %vm1354_vm0, %v1394_v44, %v1395_v4 }
 0x23f   : > { %1550 = vrot.lane.b32.xlu0 %v1547_v36, %s4463_s12  ;;  %v5321_v30 = vadd.f32 %v3136_v58, %v3127_v1  ;;  %v5323_v7 = vadd.f32 %v3161_v26, %v3129_v62  ;;  %7980 = vst [vmem:[#allocation23_spill] sm:$0xff] %v5334_v54  ;;  %v5339_v24 = vsel %vm1335_vm2, %v1398_v56, 0.0  ;;  %v1578_v18 = vsel %vm1354_vm0, %v1575_v33, %v1577_v49 }
 0x240   : > { %v1587_v48 = vmul.f32 %v5250_v41, %v5334_v54  ;;  %v1588_v28 = vmul.f32 %v5250_v41, %v5339_v24  ;;  %v1603_v53 = vmul.f32 %v1602_v52, %v5236_v25  ;;  %v1615_v31 = vstv %s4118_s21  ;;  %s4124_s21 = sld [smem:[#allocation2 + $0x29]] }
 0x241   : > { %7978 = vst [vmem:[#allocation21_spill] sm:$0xff] %v5321_v30  ;;  %7979 = vst [vmem:[#allocation20_spill] sm:$0xff] %v5323_v7  ;;  %1560 = vrot.lane.b32.xlu1 %v1556_v34, %s4463_s12  ;;  %v1630_v38 = vmul.f32 %v1628_v15, %v5243_v10  ;;  %v1604_v1 = vmul.f32 %v1602_v52, %v5243_v10  ;;  %v1629_v62 = vmul.f32 %v1628_v15, %v5225_v29 }
 0x242   : > { %v1631_v35 = vmul.f32 %v1628_v15, %v5265_v21  ;;  %v1616_v41 = vmul.f32 %v1615_v31, %v5254_v55  ;;  %v1617_v59 = vmul.f32 %v1615_v31, %v5258_v14  ;;  %v1661_v19 = vmul.f32 %v1615_v31, %v5243_v10 }
 0x243   : > { %1562 = vrot.lane.b32.xlu0 %v1557_v11, %s4463_s12  ;;  %v1636_v8 = vrot.slane %v1630_v38, 1  ;;  %v1635_v36 = vrot.slane %v1629_v62, 1  ;;  %v1660_v37 = vmul.f32 %v1615_v31, %v5225_v29  ;;  %v1662_v58 = vmul.f32 %v1615_v31, %v5265_v21 }
 0x244   : > { %v1638_v45 = vrot.slane %v1631_v35, 1  ;;  %v1648_v26 = vmul.f32 %v1602_v52, %v5254_v55  ;;  %v1667_v11 = vrot.slane %v1661_v19, 1  ;;  %v1649_v5 = vmul.f32 %v1602_v52, %v5258_v14 }
 0x245   : > { %1579 = vrot.lane.b32.xlu1 %v1576_v47, %s4463_s12  ;;  %v1637_v4 = vsel %vm1354_vm0, %v1635_v36, %v1636_v8  ;;  %v1666_v33 = vrot.slane %v1660_v37, 1  ;;  %v1669_v49 = vrot.slane %v1662_v58, 1  ;;  %v1679_v47 = vmul.f32 %v1628_v15, %v5334_v54 }
 0x246   : > { %v1639_v34 = vsel %vm1354_vm0, %v1636_v8, %v1638_v45  ;;  %v5398_v8 = vstv %s1403_s5  ;;  %s5572_s5 = sld [smem:[#allocation2 + $0x31]]  ;;  %v1311_v42 = vmul.f32 %v5181_v51, %v5204_v46  ;;  %v1920_v6 = vrot.slane %v5285_v27, 3 }
 0x247   : > { %1581 = vrot.lane.b32.xlu0 %v1578_v18, %s4463_s12  ;;  %v1668_v44 = vsel %vm1354_vm0, %v1666_v33, %v1667_v11  ;;  %v1670_v56 = vsel %vm1354_vm0, %v1667_v11, %v1669_v49  ;;  %v1694_v18 = vstv %s4120_s22  ;;  %7983 = vst [vmem:[#allocation29_spill] sm:$0xff] %v5398_v8  ;;  %v1433_v36 = vmul.f32 %v5398_v8, %v5258_v14  ;;  %s4133_s22 = sld [smem:[#allocation2 + $0xd]] }
 0x248   : > { %v1695_v52 = vmul.f32 %v1694_v18, %v5236_v25  ;;  %v1696_v38 = vmul.f32 %v1694_v18, %v5243_v10  ;;  %v5411_v11 = vstv %s4110_s6  ;;  %s5581_s6 = sld [smem:[#allocation2 + $0xb]] }
 0x249   : > { %1591 = vrot.lane.b32.xlu1 %v1587_v48, %s4463_s12  ;;  %v1680_v48 = vmul.f32 %v1628_v15, %v5339_v24  ;;  %7985 = vst [vmem:[#allocation31_spill] sm:$0xff] %v5411_v11 }
 0x24b   : > { %1593 = vrot.lane.b32.xlu0 %v1588_v28, %s4463_s12  ;;  %v5380_v28 = vstv %s4122_s24  ;;  %s4132_s24 = sld [smem:[#allocation2 + $0xa]] }
 0x24c   : > { %v1722_v31 = vmul.f32 %v5380_v28, %v5243_v10  ;;  %v1721_v15 = vmul.f32 %v5380_v28, %v5225_v29  ;;  %v1723_v62 = vmul.f32 %v5380_v28, %v5265_v21 }
 0x24d   : > { %1607 = vrot.lane.b32.xlu1 %v1603_v53, %s4463_s12  ;;  %v1707_v53 = vstv %s4121_s26  ;;  %s4134_s26 = sld [smem:[#allocation2 + $0x10]] }
 0x24e   : > { %v1709_v45 = vmul.f32 %v1707_v53, %v5258_v14  ;;  %v1727_v37 = vrot.slane %v1721_v15, 1  ;;  %v1730_v58 = vrot.slane %v1723_v62, 1  ;;  %v1753_v49 = vmul.f32 %v1707_v53, %v5243_v10 }
 0x24f   : > { %1609 = vrot.lane.b32.xlu0 %v1604_v1, %s4463_s12  ;;  %v5386_v1 = vstv %s4109_s29  ;;  %v1191_v15 = vmul.f32 %v5155_v50, %v5046_v3  ;;  %v7987_v3 = vld [vmem:[#allocation22_spill] sm:$0xff]  ;;  %s5562_s29 = sld [smem:[#allocation2 + $0x2e]] }
 0x250   : > { %7981 = vst [vmem:[#allocation25_spill] sm:$0xff] %v5386_v1  ;;  %v5394_v35 = vmul.f32 %v5386_v1, %v5243_v10  ;;  %v1759_v62 = vrot.slane %v1753_v49, 1  ;;  %v1786_v49 = vstv %s4123_s9  ;;  %s5587_s9 = sld [smem:[#allocation2 + $0x11]] }
 0x251   : > { %1620 = vrot.lane.b32.xlu1 %v1616_v41, %s4463_s12  ;;  %v1708_v41 = vmul.f32 %v1707_v53, %v5254_v55 }
 0x252   : > { %7982 = vst [vmem:[#allocation28_spill] sm:$0xff] %v5394_v35  ;;  %v7758_v19 = vrot.slane %v5394_v35, 1 }
 0x253   : > { %1622 = vrot.lane.b32.xlu0 %v1617_v59, %s4463_s12  ;;  %v1728_v59 = vrot.slane %v1722_v31, 1 }
 0x255   : > { %1640 = vrot.lane.b32.xlu1 %v1637_v4, %s4463_s12  ;;  %v5404_v4 = vstv %s1342_s30  ;;  %v1729_v33 = vsel %vm1354_vm0, %v1727_v37, %v1728_v59  ;;  %v1309_v37 = vmul.f32 %v5181_v51, %v5194_v22  ;;  %s5576_s30 = sld [smem:[#allocation2 + $0x34]] }
 0x256   : > { %7984 = vst [vmem:[#allocation30_spill] sm:$0xff] %v5404_v4 }
 0x257   : > { %1642 = vrot.lane.b32.xlu0 %v1639_v34, %s4463_s12  ;;  %v1438_v34 = vmul.f32 %v5386_v1, %v5265_v21 }
 0x259   : > { %1652 = vrot.lane.b32.xlu1 %v1648_v26, %s4463_s12  ;;  %v1435_v26 = vadd.f32 %v1433_v36, %v5404_v4 }
 0x25b   : > { %1654 = vrot.lane.b32.xlu0 %v1649_v5, %s4463_s12  ;;  %v1445_v5 = vrot.slane %v1438_v34, 1  ;;  %v1200_v34 = vadd.f32 %v1191_v15, %v7987_v3  ;;  %v1787_v15 = vmul.f32 %v1786_v49, %v5236_v25 }
 0x25d   : > { %1671 = vrot.lane.b32.xlu1 %v1668_v44, %s4463_s12  ;;  %v1452_v44 = vmul.f32 %v5411_v11, %v5339_v24 }
 0x25f   : > { %1673 = vrot.lane.b32.xlu0 %v1670_v56, %s4463_s12  ;;  %v1446_v56 = vsel %vm1354_vm0, %v7758_v19, %v1445_v5 }
 0x260   : > { %v1450_v31 = vadd.f32 %v1446_v56, %v1435_v26  ;;  %v1772_v56 = vmul.f32 %v5380_v28, %v5339_v24 }
 0x261   : > { %1683 = vrot.lane.b32.xlu1 %v1679_v47, %s4463_s12  ;;  %v1731_v47 = vsel %vm1354_vm0, %v1728_v59, %v1730_v58  ;;  %v1741_v59 = vmul.f32 %v1694_v18, %v5258_v14 }
 0x263   : > { %1685 = vrot.lane.b32.xlu0 %v1680_v48, %s4463_s12  ;;  %v1752_v48 = vmul.f32 %v1707_v53, %v5225_v29 }
 0x265   : > { %1699 = vrot.lane.b32.xlu1 %v1695_v52, %s4464_s7  ;;  %v1754_v52 = vmul.f32 %v1707_v53, %v5265_v21  ;;  %v1250_v53 = vmul.f32 %v5170_v57, %v5098_v32  ;;  %v1758_v36 = vrot.slane %v1752_v48, 1 }
 0x267   : > { %1701 = vrot.lane.b32.xlu0 %v1696_v38, %s4464_s7  ;;  %v1740_v38 = vmul.f32 %v1694_v18, %v5254_v55  ;;  %v1760_v58 = vsel %vm1354_vm0, %v1758_v36, %v1759_v62  ;;  %v5440_v18 = vstv %s4112_s8  ;;  %v1259_v32 = vadd.f32 %v1250_v53, %v1200_v34  ;;  %s5583_s8 = sld [smem:[#allocation2 + $0xe]] }
 0x268   : > { %7988 = vst [vmem:[#allocation22_spill] sm:$0xff] %v5440_v18  ;;  %v5445_v5 = vmul.f32 %v5440_v18, %v5243_v10  ;;  %v1799_v36 = vstv %s4124_s21  ;;  %v1788_v34 = vmul.f32 %v1786_v49, %v5243_v10  ;;  %s5604_s21 = sld [smem:[#allocation2 + $0x2d]] }
 0x269   : > { %1712 = vrot.lane.b32.xlu1 %v1708_v41, %s4464_s7  ;;  %v5428_v41 = vadd.f32 %v1452_v44, %v1450_v31  ;;  %v1318_v22 = vadd.f32 %v1309_v37, %v1259_v32  ;;  %v5450_v44 = vstv %s4111_s10  ;;  %v5460_v31 = vstv %s4125_s11  ;;  %s5589_s10 = sld [smem:[#allocation2 + $0x2f]]  ;;  %s5597_s11 = sld [smem:[#allocation2 + $0x9]] }
 0x26a   : > { %7989 = vst [vmem:[#allocation33_spill] sm:$0xff] %v5445_v5  ;;  %7990 = vst [vmem:[#allocation34_spill] sm:$0xff] %v5450_v44  ;;  %v1485_v48 = vmul.f32 %v5450_v44, %v5258_v14  ;;  %v1815_v32 = vmul.f32 %v5460_v31, %v5265_v21 }
 0x26b   : > { %1714 = vrot.lane.b32.xlu0 %v1709_v45, %s4464_s7  ;;  %7986 = vst [vmem:[#allocation32_spill] sm:$0xff] %v5428_v41  ;;  %v1761_v45 = vrot.slane %v1754_v52, 1  ;;  %v1490_v52 = vmul.f32 %v5440_v18, %v5265_v21  ;;  %v5469_v53 = vmul.f32 0.25, %v1318_v22 }
 0x26d   : > { %1732 = vrot.lane.b32.xlu1 %v1729_v33, %s4464_s7  ;;  %v1762_v26 = vsel %vm1354_vm0, %v1759_v62, %v1761_v45  ;;  %v1771_v33 = vmul.f32 %v5380_v28, %v5334_v54  ;;  %v5466_v62 = vstv %s4113_s14  ;;  %7993 = vst [vmem:[#allocation37_spill] sm:$0xff] %v5469_v53  ;;  %v1814_v45 = vmul.f32 %v5460_v31, %v5243_v10  ;;  %s5602_s14 = sld [smem:[#allocation2 + $0x35]] }
 0x26e   : > { %7992 = vst [vmem:[#allocation36_spill] sm:$0xff] %v5466_v62  ;;  %v1504_v3 = vmul.f32 %v5466_v62, %v5339_v24 }
 0x26f   : > { %1734 = vrot.lane.b32.xlu0 %v1731_v47, %s4464_s7  ;;  %v7757_v47 = vrot.slane %v5445_v5, 1  ;;  %v5664_v20 = vstv %s5597_s11  ;;  %s5852_s11 = sld [smem:[#allocation2 + $0x43]] }
 0x271   : > { %1744 = vrot.lane.b32.xlu1 %v1740_v38, %s4464_s7  ;;  %v5462_v38 = vstv %s4108_s13  ;;  %s5599_s13 = sld [smem:[#allocation2 + $0x32]] }
 0x272   : > { %7991 = vst [vmem:[#allocation35_spill] sm:$0xff] %v5462_v38  ;;  %v1487_v28 = vadd.f32 %v1485_v48, %v5462_v38  ;;  %v1820_v48 = vrot.slane %v1814_v45, 1  ;;  %v1845_v45 = vmul.f32 %v1799_v36, %v5243_v10 }
 0x273   : > { %1746 = vrot.lane.b32.xlu0 %v1741_v59, %s4464_s7  ;;  %v1497_v59 = vrot.slane %v1490_v52, 1 }
 0x275   : > { %1763 = vrot.lane.b32.xlu1 %v1760_v58, %s4464_s7  ;;  %v1498_v37 = vsel %vm1354_vm0, %v7757_v47, %v1497_v59  ;;  %v1813_v58 = vmul.f32 %v5460_v31, %v5225_v29 }
 0x277   : > { %1765 = vrot.lane.b32.xlu0 %v1762_v26, %s4464_s7  ;;  %v1502_v26 = vadd.f32 %v1498_v37, %v1487_v28  ;;  %v1819_v28 = vrot.slane %v1813_v58, 1  ;;  %v1822_v37 = vrot.slane %v1815_v32, 1  ;;  %v1832_v58 = vmul.f32 %v1786_v49, %v5254_v55 }
 0x278   : > { %v1851_v32 = vrot.slane %v1845_v45, 1 }
 0x279   : > { %1775 = vrot.lane.b32.xlu1 %v1771_v33, %s4464_s7  ;;  %v1800_v33 = vmul.f32 %v1799_v36, %v5254_v55  ;;  %v5489_v52 = vadd.f32 %v1504_v3, %v1502_v26  ;;  %v1821_v47 = vsel %vm1354_vm0, %v1819_v28, %v1820_v48  ;;  %v1823_v26 = vsel %vm1354_vm0, %v1820_v48, %v1822_v37 }
 0x27a   : > { %v1833_v48 = vmul.f32 %v1786_v49, %v5258_v14 }
 0x27b   : > { %1777 = vrot.lane.b32.xlu0 %v1772_v56, %s4464_s7  ;;  %v5487_v56 = vrot.slane %v5469_v53, 1  ;;  %7994 = vst [vmem:[#allocation38_spill] sm:$0xff] %v5489_v52 }
 0x27d   : > { %1791 = vrot.lane.b32.xlu1 %v1787_v15, %s4464_s7  ;;  %v1801_v15 = vmul.f32 %v1799_v36, %v5258_v14  ;;  %v1884_v59 = vsel %vm1354_vm0, %v1881_v2, %v5487_v56  ;;  %v1846_v2 = vmul.f32 %v1799_v36, %v5265_v21 }
 0x27e   : > { %v5503_v3 = vadd.f32 %v1884_v59, %v5245_v39 }
 0x27f   : > { %1793 = vrot.lane.b32.xlu0 %v1788_v34, %s4464_s7  ;;  %v5497_v34 = vmul.f32 0.75, %v1318_v22  ;;  %v1853_v28 = vrot.slane %v1846_v2, 1  ;;  %v5541_v2 = vstv %s4133_s22  ;;  %s5610_s22 = sld [smem:[#allocation2 + $0x13]] }
 0x281   : > { %1804 = vrot.lane.b32.xlu1 %v1800_v33, %s4464_s7  ;;  %7995 = vst [vmem:[#allocation39_spill] sm:$0xff] %v5497_v34  ;;  %v1844_v33 = vmul.f32 %v1799_v36, %v5225_v29  ;;  %v5510_v22 = vrot.slane %v5497_v34, 1  ;;  %v1895_v36 = vrot.slane %v5280_v9, 2  ;;  %v5525_v39 = vadd.f32 %v5487_v56, %v5497_v34 }
 0x282   : > { %v1854_v45 = vsel %vm1354_vm0, %v1851_v32, %v1853_v28  ;;  %v2080_v28 = vstv %s4132_s24  ;;  %s5612_s24 = sld [smem:[#allocation2 + $0x16]] }
 0x283   : > { %1806 = vrot.lane.b32.xlu0 %v1801_v15, %s4464_s7  ;;  %7996 = vst [vmem:[#allocation40_spill] sm:$0xff] %v5510_v22  ;;  %v1896_v15 = vrot.slane %v5503_v3, 2  ;;  %v1850_v59 = vrot.slane %v1844_v33, 1  ;;  %7997 = vst [vmem:[#allocation41_spill] sm:$0xff] %v5525_v39  ;;  %v1863_v33 = vmul.f32 %v5460_v31, %v5334_v54  ;;  %v2133_v30 = vmul.f32 %v2080_v28, %v5285_v27 }
 0x285   : > { %1824 = vrot.lane.b32.xlu1 %v1821_v47, %s4464_s7  ;;  %v1909_v47 = vsel %vm1354_vm0, %v1906_v16, %v5510_v22  ;;  %v1852_v49 = vsel %vm1354_vm0, %v1850_v59, %v1851_v32  ;;  %v1897_v37 = vsel %vm1894_vm3, %v1895_v36, %v1896_v15  ;;  %v2094_v32 = vmul.f32 %v5541_v2, %v5285_v27 }
 0x286   : > { %v5528_v16 = vadd.f32 %v1909_v47, %v5247_v40  ;;  %v5545_v40 = vsel %vm1326_vm1, %v1897_v37, 0.0  ;;  %v1864_v59 = vmul.f32 %v5460_v31, %v5339_v24  ;;  %v5560_v37 = vstv %s4134_s26  ;;  %s5624_s26 = sld [smem:[#allocation2 + $0x19]] }
 0x287   : > { %1826 = vrot.lane.b32.xlu0 %v1823_v26, %s4464_s7  ;;  %v5536_v26 = vadd.f32 %v5510_v22, %v5469_v53  ;;  %7999 = vst [vmem:[#allocation43_spill] sm:$0xff] %v5545_v40  ;;  %v2115_v24 = vmul.f32 %v5560_v37, %v5503_v3  ;;  %v2100_v31 = vrot.slane %v2094_v32, 2  ;;  %v5674_v52 = vstv %s5610_s22  ;;  %s5898_s22 = sld [smem:[#allocation2 + $0x44]] }
 0x288   : > { %v2095_v47 = vmul.f32 %v5541_v2, %v5528_v16  ;;  %v2134_v46 = vmul.f32 %v2080_v28, %v5528_v16  ;;  %8007 = vst [vmem:[#allocation47_spill] sm:$0xff] %v5674_v52 }
 0x289   : > { %1836 = vrot.lane.b32.xlu1 %v1832_v58, %s4464_s7  ;;  %7998 = vst [vmem:[#allocation42_spill] sm:$0xff] %v5536_v26  ;;  %v1898_v58 = vrot.slane %v5525_v39, 2 }
 0x28b   : > { %1838 = vrot.lane.b32.xlu0 %v1833_v48, %s4464_s7  ;;  %v8000_v48 = vld [vmem:[#allocation27_spill] sm:$0xff] }
 0x28c   : > { %v1193_v36 = vmul.f32 %v5155_v50, %v8000_v48  ;;  %v2081_v48 = vmul.f32 %v2080_v28, %v5545_v40  ;;  %v5699_v53 = vstv %s5624_s26  ;;  %s5913_s26 = sld [smem:[#allocation2 + $0x3f]] }
 0x28d   : > { %1855 = vrot.lane.b32.xlu1 %v1852_v49, %s4464_s7  ;;  %v5558_v49 = vsel %vm1894_vm3, %v1896_v15, %v1898_v58  ;;  %v2101_v15 = vrot.slane %v2095_v47, 2  ;;  %v2096_v58 = vmul.f32 %v5541_v2, %v5536_v26  ;;  %8011 = vst [vmem:[#allocation51_spill] sm:$0xff] %v5699_v53 }
 0x28f   : > { %1857 = vrot.lane.b32.xlu0 %v1854_v45, %s4464_s7  ;;  %v1252_v45 = vmul.f32 %v5170_v57, %v5120_v63  ;;  %v8001_v63 = vld [vmem:[#allocation24_spill] sm:$0xff]  ;;  %v2103_v23 = vrot.slane %v2096_v58, 2  ;;  %v2140_v58 = vrot.slane %v2134_v46, 2  ;;  %v5644_v46 = vstv %s5587_s9  ;;  %s5838_s9 = sld [smem:[#allocation2 + $0x1c]] }
 0x290   : > { %v1202_v19 = vadd.f32 %v1193_v36, %v8001_v63  ;;  %v2121_v36 = vrot.slane %v2115_v24, 3  ;;  %v2102_v63 = vsel %vm1894_vm3, %v2100_v31, %v2101_v15  ;;  %8004 = vst [vmem:[#allocation44_spill] sm:$0xff] %v5644_v46  ;;  %v5762_v62 = vmul.f32 %v5644_v46, %v5525_v39 }
 0x291   : > { %1867 = vrot.lane.b32.xlu1 %v1863_v33, %s4464_s7  ;;  %v2114_v33 = vmul.f32 %v5560_v37, %v5280_v9 }
 0x292   : > { %v1261_v32 = vadd.f32 %v1252_v45, %v1202_v19  ;;  %v2104_v45 = vsel %vm1894_vm3, %v2101_v15, %v2103_v23  ;;  %v5618_v23 = vstv %s5572_s5  ;;  %v2139_v15 = vrot.slane %v2133_v30, 2  ;;  %s5638_s5 = sld [smem:[#allocation2 + $0xf]] }
 0x293   : > { %1869 = vrot.lane.b32.xlu0 %v1864_v59, %s4464_s7  ;;  %v2082_v59 = vmul.f32 %v2080_v28, %v5558_v49  ;;  %v2120_v47 = vrot.slane %v2114_v33, 3  ;;  %v5608_v33 = vstv %s5562_s29  ;;  %s5636_s29 = sld [smem:[#allocation2 + $0xc]]  ;;  %v2200_v17 = vmul.f32 %v5618_v23, %v5285_v27 }
 0x294   : > { %v1320_v19 = vadd.f32 %v1311_v42, %v1261_v32  ;;  %v2135_v42 = vmul.f32 %v2080_v28, %v5536_v26  ;;  %v2153_v32 = vmul.f32 %v5541_v2, %v5503_v3  ;;  %v5634_v28 = vstv %s5583_s8  ;;  %s5811_s8 = sld [smem:[#allocation2 + $0x1f]] }
 0x295   : > { %2085 = vrot.lane.b32.xlu1 %v2081_v48, %s4463_s12  ;;  %v2116_v48 = vmul.f32 %v5560_v37, %v5525_v39  ;;  %v2122_v24 = vsel %vm1919_vm4, %v2120_v47, %v2121_v36  ;;  %v5628_v47 = vstv %s5576_s30  ;;  %s5649_s30 = sld [smem:[#allocation2 + $0x30]]  ;;  %v2141_v61 = vsel %vm1894_vm3, %v2139_v15, %v2140_v58 }
 0x296   : > { %v5640_v30 = vmul.f32 0.75, %v1320_v19  ;;  %v2142_v5 = vrot.slane %v2135_v42, 2  ;;  %v2159_v35 = vrot.slane %v2153_v32, 3  ;;  %v5670_v42 = vstv %s5602_s14  ;;  %s5867_s14 = sld [smem:[#allocation2 + $0x41]] }
 0x297   : > { %2087 = vrot.lane.b32.xlu0 %v2082_v59, %s4463_s12  ;;  %v2123_v31 = vrot.slane %v2116_v48, 3  ;;  %v2152_v59 = vmul.f32 %v5541_v2, %v5280_v9  ;;  %v5631_v48 = vstv %s5581_s6  ;;  %s5651_s6 = sld [smem:[#allocation2 + $0x33]]  ;;  %8006 = vst [vmem:[#allocation46_spill] sm:$0xff] %v5670_v42  ;;  %v5677_v15 = vstv %s5604_s21  ;;  %s5888_s21 = sld [smem:[#allocation2 + $0x20]] }
 0x298   : > { %8002 = vst [vmem:[#allocation27_spill] sm:$0xff] %v5631_v48  ;;  %8003 = vst [vmem:[#allocation24_spill] sm:$0xff] %v5640_v30  ;;  %v5686_v32 = vrot.slane %v5640_v30, 1  ;;  %v5704_v18 = vmul.f32 %v5628_v47, %v5525_v39  ;;  %v5714_v34 = vstv %s5638_s5  ;;  %v5766_v44 = vmul.f32 %v5631_v48, %v5536_v26  ;;  %s6411_s5 = sld [smem:[#allocation2 + $0x42]] }
 0x299   : > { %2105 = vrot.lane.b32.xlu1 %v2102_v63, %s4463_s12  ;;  %v2124_v63 = vsel %vm1919_vm4, %v2121_v36, %v2123_v31  ;;  %v2154_v36 = vmul.f32 %v5541_v2, %v5525_v39  ;;  %v1921_v31 = vrot.slane %v5528_v16, 3  ;;  %v2158_v54 = vrot.slane %v2152_v59, 3  ;;  %8008 = vst [vmem:[#allocation48_spill] sm:$0xff] %v5677_v15  ;;  %8012 = vst [vmem:[#allocation52_spill] sm:$0xff] %v5714_v34 }
 0x29a   : > { %v2143_v2 = vsel %vm1894_vm3, %v2140_v58, %v2142_v5  ;;  %v5680_v59 = vstv %s5612_s24  ;;  %v5692_v58 = vmul.f32 %v5618_v23, %v5536_v26  ;;  %v5770_v14 = vmul.f32 %v5634_v28, %v5525_v39  ;;  %s5911_s24 = sld [smem:[#allocation2 + $0x1b]] }
 0x29b   : > { %2107 = vrot.lane.b32.xlu0 %v2104_v45, %s4463_s12  ;;  %v5647_v45 = vstv %s5589_s10  ;;  %8009 = vst [vmem:[#allocation49_spill] sm:$0xff] %v5680_v59  ;;  %v2160_v15 = vsel %vm1919_vm4, %v2158_v54, %v2159_v35  ;;  %v2161_v13 = vrot.slane %v2154_v36, 3  ;;  %v5696_v41 = vsel %vm1919_vm4, %v1920_v6, %v1921_v31  ;;  %s5850_s10 = sld [smem:[#allocation2 + $0x40]] }
 0x29c   : > { %8005 = vst [vmem:[#allocation45_spill] sm:$0xff] %v5647_v45  ;;  %v5722_v36 = vstv %s5649_s30  ;;  %v2220_v21 = vmul.f32 %v5628_v47, %v5280_v9  ;;  %v2221_v4 = vmul.f32 %v5628_v47, %v5503_v3  ;;  %v5791_v1 = vmul.f32 %v5647_v45, %v5536_v26  ;;  %s6518_s30 = sld [smem:[#allocation2 + $0x3a]] }
 0x29d   : > { %2125 = vrot.lane.b32.xlu1 %v2122_v24, %s4463_s12  ;;  %v5653_v24 = vmul.f32 0.25, %v1320_v19  ;;  %v1923_v19 = vrot.slane %v5536_v26, 3  ;;  %v2162_v54 = vsel %vm1919_vm4, %v2159_v35, %v2161_v13  ;;  %8013 = vst [vmem:[#allocation53_spill] sm:$0xff] %v5722_v36  ;;  %v2171_v13 = vmul.f32 %v5560_v37, %v5696_v41 }
 0x29e   : > { %v2209_v35 = vrot.slane %v5692_v58, 2  ;;  %8022 = vst [vmem:[#allocation62_spill] sm:$0xff] %v5791_v1  ;;  %v1192_v48 = vmul.f32 %v5155_v50, %v5088_v43  ;;  %v5805_v45 = vmul.f32 %v5664_v20, %v5536_v26  ;;  %v1251_v43 = vmul.f32 %v5170_v57, %v5174_v12  ;;  %v8025_v12 = vld [vmem:[#allocation26_spill] sm:$0xff] }
 0x29f   : > { %2127 = vrot.lane.b32.xlu0 %v2124_v63, %s4463_s12  ;;  %v5667_v63 = vstv %s5599_s13  ;;  %v1924_v5 = vsel %vm1919_vm4, %v1921_v31, %v1923_v19  ;;  %v5708_v19 = vmul.f32 %v5608_v33, %v5536_v26  ;;  %v5725_v31 = vstv %s5651_s6  ;;  %s5865_s13 = sld [smem:[#allocation2 + $0x1d]]  ;;  %s6557_s6 = sld [smem:[#allocation2 + $0x37]] }
 0x2a0   : > { %v5719_v6 = vsel %vm1335_vm2, %v1924_v5, 0.0  ;;  %8014 = vst [vmem:[#allocation54_spill] sm:$0xff] %v5725_v31  ;;  %v5733_v38 = vadd.f32 %v5686_v32, %v5653_v24  ;;  %v5749_v31 = vmul.f32 %v5618_v23, %v5525_v39  ;;  %8024 = vst [vmem:[#allocation64_spill] sm:$0xff] %v5805_v45  ;;  %v2227_v10 = vrot.slane %v2221_v4, 3 }
 0x2a1   : > { %2144 = vrot.lane.b32.xlu1 %v2141_v61, %s4463_s12  ;;  %v5683_v61 = vrot.slane %v5653_v24, 1  ;;  %v2172_v58 = vmul.f32 %v5560_v37, %v5719_v6  ;;  %v5778_v37 = vmul.f32 %v5670_v42, %v5525_v39  ;;  %v2206_v42 = vrot.slane %v2200_v17, 2 }
 0x2a2   : > { %8016 = vst [vmem:[#allocation56_spill] sm:$0xff] %v5733_v38  ;;  %v2240_v57 = vmul.f32 %v5608_v33, %v5528_v16  ;;  %v1201_v17 = vadd.f32 %v1192_v48, %v8025_v12  ;;  %v5844_v48 = vmul.f32 %v5680_v59, %v5733_v38 }
 0x2a3   : > { %8010 = vst [vmem:[#allocation50_spill] sm:$0xff] %v5683_v61  ;;  %2146 = vrot.lane.b32.xlu0 %v2143_v2, %s4463_s12  ;;  %v5711_v2 = vstv %s5636_s29  ;;  %8020 = vst [vmem:[#allocation60_spill] sm:$0xff] %v5778_v37  ;;  %s5920_s29 = sld [smem:[#allocation2 + $0x1e]] }
 0x2a4   : > { %8027 = vst [vmem:[#allocation65_spill] sm:$0xff] %v5844_v48  ;;  %v5940_v48 = vstv %s5850_s10  ;;  %s4158_s10 = sld [smem:[#allocation2 + $0x1a]] }
 0x2a5   : > { %2163 = vrot.lane.b32.xlu1 %v2160_v15, %s4463_s12  ;;  %v5729_v15 = vadd.f32 %v5683_v61, %v5640_v30  ;;  %v2201_v30 = vmul.f32 %v5618_v23, %v5528_v16  ;;  %8045 = vst [vmem:[#allocation81_spill] sm:$0xff] %v5940_v48  ;;  %v6048_v1 = vmul.f32 %v5940_v48, %v5323_v7 }
 0x2a7   : > { %8015 = vst [vmem:[#allocation55_spill] sm:$0xff] %v5729_v15  ;;  %v5735_v22 = vpop.permute.xlu1 %1515  ;;  %2165 = vrot.lane.b32.xlu0 %v2162_v54, %s4463_s12  ;;  %v5753_v54 = vmul.f32 %v5634_v28, %v5536_v26  ;;  %v2207_v46 = vrot.slane %v2201_v30, 2  ;;  %v3159_v30 = vsel %vm1354_vm0, %v5686_v32, %v5304_v60 }
 0x2a8   : > { %8017 = vst [vmem:[#allocation57_spill] sm:$0xff] %v5735_v22 }
 0x2a9   : > { %v5741_v5 = vpop.permute.xlu0 %1517  ;;  %2175 = vrot.lane.b32.xlu1 %v2171_v13, %s4463_s12  ;;  %v5774_v13 = vmul.f32 %v5667_v63, %v5536_v26 }
 0x2aa   : > { %8018 = vst [vmem:[#allocation58_spill] sm:$0xff] %v5741_v5  ;;  %v2187_v5 = vmul.f32 %v5608_v33, %v5545_v40  ;;  %v2188_v40 = vmul.f32 %v5608_v33, %v5558_v49 }
 0x2ab   : > { %8019 = vst [vmem:[#allocation59_spill] sm:$0xff] %v5774_v13  ;;  %v5780_v22 = vpop.permute.xlu1 %1528  ;;  %2177 = vrot.lane.b32.xlu0 %v2172_v58, %s4463_s12  ;;  %v2208_v58 = vsel %vm1894_vm3, %v2206_v42, %v2207_v46  ;;  %v5836_v42 = vmul.f32 %v5667_v63, %v5525_v39 }
 0x2ac   : > { %8021 = vst [vmem:[#allocation61_spill] sm:$0xff] %v5780_v22  ;;  %v2239_v22 = vmul.f32 %v5608_v33, %v5285_v27 }
 0x2ad   : > { %v5793_v55 = vpop.permute.xlu0 %1530  ;;  %2191 = vrot.lane.b32.xlu1 %v2187_v5, %s4463_s12  ;;  %v2226_v5 = vrot.slane %v2220_v21, 3  ;;  %v1310_v21 = vmul.f32 %v5181_v51, %v5231_v0  ;;  %8026 = vst [vmem:[#allocation26_spill] sm:$0xff] %v5836_v42  ;;  %v5848_v51 = vmul.f32 %v5699_v53, %v5729_v15  ;;  %v1260_v0 = vadd.f32 %v1251_v43, %v1201_v17 }
 0x2ae   : > { %8023 = vst [vmem:[#allocation63_spill] sm:$0xff] %v5793_v55  ;;  %v2210_v55 = vsel %vm1894_vm3, %v2207_v46, %v2209_v35  ;;  %v5863_v35 = vmul.f32 %v5711_v2, %v5536_v26  ;;  %v2245_v33 = vrot.slane %v2239_v22, 2  ;;  %v2246_v17 = vrot.slane %v2240_v57, 2 }
 0x2af   : > { %v5815_v50 = vpop.permute.xlu1 %1548  ;;  %2193 = vrot.lane.b32.xlu0 %v2188_v40, %s4463_s12  ;;  %8028 = vst [vmem:[#allocation66_spill] sm:$0xff] %v5848_v51  ;;  %v2228_v46 = vsel %vm1919_vm4, %v2226_v5, %v2227_v10  ;;  %v2259_v43 = vmul.f32 %v5618_v23, %v5503_v3  ;;  %v5878_v40 = vmul.f32 %v5674_v52, %v5733_v38 }
 0x2b0   : > { %8030 = vst [vmem:[#allocation68_spill] sm:$0xff] %v5863_v35  ;;  %v5886_v22 = vmul.f32 %v5711_v2, %v5525_v39 }
 0x2b1   : > { %2211 = vrot.lane.b32.xlu1 %v2208_v58, %s4463_s12  ;;  %v5831_v4 = vpop.permute.xlu0 %1550  ;;  %v5855_v58 = vadd.f32 %v3159_v30, %v5653_v24  ;;  %v2258_v30 = vmul.f32 %v5618_v23, %v5280_v9  ;;  %8032 = vst [vmem:[#allocation70_spill] sm:$0xff] %v5878_v40  ;;  %v8035_v23 = vrot.slane %v5704_v18, 3 }
 0x2b2   : > { %8034 = vst [vmem:[#allocation72_spill] sm:$0xff] %v5886_v22  ;;  %v5981_v22 = vstv %s5898_s22  ;;  %s6644_s22 = sld [smem:[#allocation2 + $0x12]] }
 0x2b3   : > { %v5857_v12 = vpop.permute.xlu1 %1560  ;;  %2213 = vrot.lane.b32.xlu0 %v2210_v55, %s4463_s12  ;;  %v1319_v55 = vadd.f32 %v1310_v21, %v1260_v0  ;;  %v2230_v57 = vsel %vm1919_vm4, %v2227_v10, %v8035_v23  ;;  %v2247_v23 = vsel %vm1894_vm3, %v2245_v33, %v2246_v17  ;;  %v2265_v0 = vrot.slane %v2259_v43, 3  ;;  %8056 = vst [vmem:[#allocation90_spill] sm:$0xff] %v5981_v22 }
 0x2b4   : > { %8029 = vst [vmem:[#allocation67_spill] sm:$0xff] %v5857_v12  ;;  %v5882_v12 = vmul.f32 %v5714_v34, %v5525_v39  ;;  %v5906_v39 = vmul.f32 %v5680_v59, %v5729_v15  ;;  %v8043_v43 = vrot.slane %v5708_v19, 2  ;;  %v5953_v19 = vstv %s5867_s14  ;;  %s6629_s14 = sld [smem:[#allocation2 + $0x3e]] }
 0x2b5   : > { %2231 = vrot.lane.b32.xlu1 %v2228_v46, %s4463_s12  ;;  %v5874_v5 = vpop.permute.xlu0 %1562  ;;  %v5896_v46 = vstv %s5811_s8  ;;  %v5922_v21 = vmul.f32 0.25, %v1319_v55  ;;  %8049 = vst [vmem:[#allocation85_spill] sm:$0xff] %v5953_v19  ;;  %v3495_v45 = vmul.f32 %v5940_v48, %v5855_v58  ;;  %s6559_s8 = sld [smem:[#allocation2 + $0x3d]] }
 0x2b6   : > { %8031 = vst [vmem:[#allocation69_spill] sm:$0xff] %v5874_v5  ;;  %8033 = vst [vmem:[#allocation71_spill] sm:$0xff] %v5882_v12  ;;  %v3350_v18 = vmul.f32 %v5896_v46, %v5855_v58  ;;  %v5918_v40 = vmul.f32 %v5896_v46, %v5323_v7 }
 0x2b7   : > { %8036 = vst [vmem:[#allocation73_spill] sm:$0xff] %v5896_v46  ;;  %v5900_v38 = vpop.permute.xlu1 %1579  ;;  %2233 = vrot.lane.b32.xlu0 %v2230_v57, %s4463_s12  ;;  %8038 = vst [vmem:[#allocation75_spill] sm:$0xff] %v5906_v39  ;;  %v2264_v57 = vrot.slane %v2258_v30, 3  ;;  %v5931_v30 = vmul.f32 %v5722_v36, %v5536_v26  ;;  %v2249_v46 = vsel %vm1894_vm3, %v2246_v17, %v8043_v43  ;;  %v5937_v39 = vstv %s5838_s9  ;;  %s6607_s9 = sld [smem:[#allocation2 + $0x17]] }
 0x2b8   : > { %8037 = vst [vmem:[#allocation74_spill] sm:$0xff] %v5900_v38  ;;  %8039 = vst [vmem:[#allocation76_spill] sm:$0xff] %v5918_v40  ;;  %v3356_v51 = vrot.slane %v3350_v18, 6  ;;  %v5947_v38 = vstv %s5852_s11  ;;  %v5950_v26 = vstv %s5865_s13  ;;  %v3389_v18 = vmul.f32 %v5937_v39, %v5855_v58  ;;  %s6625_s11 = sld [smem:[#allocation2 + $0x14]]  ;;  %s6627_s13 = sld [smem:[#allocation2 + $0x3b]] }
 0x2b9   : > { %8040 = vst [vmem:[#allocation77_spill] sm:$0xff] %v5922_v21  ;;  %2250 = vrot.lane.b32.xlu1 %v2247_v23, %s4463_s12  ;;  %v5925_v10 = vpop.permute.xlu0 %1581  ;;  %8042 = vst [vmem:[#allocation79_spill] sm:$0xff] %v5931_v30  ;;  %v2266_v17 = vsel %vm1919_vm4, %v2264_v57, %v2265_v0  ;;  %v5960_v43 = vmul.f32 %v5937_v39, %v5323_v7  ;;  %v2507_v33 = vrot.slane %v5922_v21, 1  ;;  %v8052_v57 = vrot.slane %v5918_v40, 6  ;;  %v8069_v21 = vld [vmem:[#allocation16_spill] sm:$0xff] }
 0x2ba   : > { %8041 = vst [vmem:[#allocation78_spill] sm:$0xff] %v5925_v10  ;;  %8044 = vst [vmem:[#allocation80_spill] sm:$0xff] %v5937_v39  ;;  %v5974_v30 = vstv %s5888_s21  ;;  %v8055_v39 = vrot.slane %v5749_v31, 3  ;;  %v5996_v31 = vstv %s5913_s26  ;;  %v6072_v5 = vmul.f32 %v5947_v38, %v5323_v7  ;;  %s6642_s21 = sld [smem:[#allocation2 + $0x38]]  ;;  %s6689_s26 = sld [smem:[#allocation2 + $0x22]] }
 0x2bb   : > { %v5942_v23 = vpop.permute.xlu1 %1591  ;;  %2252 = vrot.lane.b32.xlu0 %v2249_v46, %s4463_s12  ;;  %8047 = vst [vmem:[#allocation83_spill] sm:$0xff] %v5947_v38  ;;  %8048 = vst [vmem:[#allocation84_spill] sm:$0xff] %v5950_v26  ;;  %v5962_v46 = vmul.f32 0.75, %v1319_v55  ;;  %v5971_v36 = vsel %vm3146_vm5, %v3356_v51, %v8052_v57  ;;  %v3395_v55 = vrot.slane %v3389_v18, 6  ;;  %v7834_v52 = vrot.slane %v5960_v43, 6 }
 0x2bc   : > { %8046 = vst [vmem:[#allocation82_spill] sm:$0xff] %v5942_v23  ;;  %8050 = vst [vmem:[#allocation86_spill] sm:$0xff] %v5960_v43  ;;  %v2268_v53 = vsel %vm1919_vm4, %v2265_v0, %v8055_v39  ;;  %v2277_v51 = vmul.f32 %v5628_v47, %v5696_v41  ;;  %v5993_v57 = vstv %s5911_s24  ;;  %v2306_v39 = vmul.f32 %v5634_v28, %v5285_v27  ;;  %v8063_v43 = vld [vmem:[#allocation11_spill] sm:$0xff]  ;;  %s6650_s24 = sld [smem:[#allocation2 + $0x36]] }
 0x2bd   : > { %2269 = vrot.lane.b32.xlu1 %v2266_v17, %s4463_s12  ;;  %v5966_v23 = vpop.permute.xlu0 %1593  ;;  %8053 = vst [vmem:[#allocation88_spill] sm:$0xff] %v5971_v36  ;;  %8054 = vst [vmem:[#allocation89_spill] sm:$0xff] %v5974_v30  ;;  %v5985_v17 = vadd.f32 %v5304_v60, %v5653_v24  ;;  %v2307_v0 = vmul.f32 %v5634_v28, %v5528_v16  ;;  %v6005_v60 = vsel %vm3146_vm5, %v3395_v55, %v7834_v52 }
 0x2be   : > { %8051 = vst [vmem:[#allocation87_spill] sm:$0xff] %v5966_v23  ;;  %8058 = vst [vmem:[#allocation92_spill] sm:$0xff] %v5993_v57  ;;  %v6008_v24 = vstv %s5920_s29  ;;  %v2532_v18 = vrot.slane %v5962_v46, 1  ;;  %v6017_v36 = vmul.f32 %v5411_v11, %v5225_v29  ;;  %v2278_v55 = vmul.f32 %v5628_v47, %v5719_v6  ;;  %v8065_v47 = vld [vmem:[#allocation43_spill] sm:$0xff]  ;;  %s6696_s29 = sld [smem:[#allocation2 + $0x15]] }
 0x2bf   : > { %v5987_v40 = vpop.permute.xlu1 %1607  ;;  %2271 = vrot.lane.b32.xlu0 %v2268_v53, %s4463_s12  ;;  %8059 = vst [vmem:[#allocation93_spill] sm:$0xff] %v5996_v31  ;;  %8060 = vst [vmem:[#allocation94_spill] sm:$0xff] %v6005_v60  ;;  %v6012_v53 = vsel %vm1354_vm0, %v5487_v56, %v2507_v33  ;;  %v6026_v52 = vsel %vm1354_vm0, %v2507_v33, %v5683_v61  ;;  %v1407_v56 = vmul.f32 %v5398_v8, %v5236_v25  ;;  %v8067_v61 = vld [vmem:[#allocation44_spill] sm:$0xff] }
 0x2c0   : > { %8057 = vst [vmem:[#allocation91_spill] sm:$0xff] %v5987_v40  ;;  %8061 = vst [vmem:[#allocation95_spill] sm:$0xff] %v6008_v24  ;;  %v6032_v60 = vmul.f32 %v5411_v11, %v8063_v43  ;;  %v8066_v40 = vld [vmem:[#allocation27_spill] sm:$0xff]  ;;  %v2326_v59 = vmul.f32 %v8067_v61, %v5280_v9  ;;  %v2327_v42 = vmul.f32 %v8067_v61, %v5503_v3  ;;  %v2312_v24 = vrot.slane %v2306_v39, 2 }
 0x2c1   : > { %2281 = vrot.lane.b32.xlu1 %v2277_v51, %s4463_s12  ;;  %v6020_v15 = vpop.permute.xlu0 %1609  ;;  %v3176_v51 = vrot.slane %v5985_v17, 7  ;;  %v2293_v33 = vmul.f32 %v8066_v40, %v8065_v47  ;;  %v2313_v31 = vrot.slane %v2307_v0, 2  ;;  %8068 = vst [vmem:[#allocation43_spill] sm:$0xff] %v6048_v1  ;;  %v3501_v17 = vrot.slane %v3495_v45, 6  ;;  %v8072_v0 = vld [vmem:[#allocation30_spill] sm:$0xff]  ;;  %v8073_v45 = vld [vmem:[#allocation13_spill] sm:$0xff] }
 0x2c2   : > { %8062 = vst [vmem:[#allocation96_spill] sm:$0xff] %v6020_v15  ;;  %v1408_v12 = vmul.f32 %v5398_v8, %v8063_v43  ;;  %v2294_v39 = vmul.f32 %v8066_v40, %v5558_v49  ;;  %v1409_v57 = vadd.f32 %v1407_v56, %v8072_v0  ;;  %v1424_v48 = vrot.slane %v6032_v60, 1  ;;  %8075 = vst [vmem:[#allocation16_spill] sm:$0xff] %v6072_v5 }
 0x2c3   : > { %v6037_v15 = vpop.permute.xlu1 %1620  ;;  %2283 = vrot.lane.b32.xlu0 %v2278_v55, %s4463_s12  ;;  %v8070_v55 = vld [vmem:[#allocation25_spill] sm:$0xff]  ;;  %v2332_v8 = vrot.slane %v2326_v59, 3  ;;  %v2314_v60 = vsel %vm1894_vm3, %v2312_v24, %v2313_v31  ;;  %v2345_v56 = vmul.f32 %v8066_v40, %v5285_v27  ;;  %v2346_v35 = vmul.f32 %v8066_v40, %v5528_v16  ;;  %v8079_v40 = vld [vmem:[#allocation34_spill] sm:$0xff] }
 0x2c4   : > { %8064 = vst [vmem:[#allocation11_spill] sm:$0xff] %v6037_v15  ;;  %v1423_v15 = vrot.slane %v6017_v36, 1  ;;  %v1412_v23 = vmul.f32 %v8070_v55, %v8069_v21  ;;  %v1419_v36 = vmul.f32 %v5411_v11, %v8073_v45  ;;  %v8076_v11 = vrot.slane %v6048_v1, 6  ;;  %v8080_v1 = vld [vmem:[#allocation36_spill] sm:$0xff] }
 0x2c5   : > { %2297 = vrot.lane.b32.xlu1 %v2293_v33, %s4464_s7  ;;  %v6056_v10 = vpop.permute.xlu0 %1622  ;;  %v2333_v33 = vrot.slane %v2327_v42, 3  ;;  %v1410_v42 = vadd.f32 %v1408_v12, %v8072_v0  ;;  %v7862_v13 = vrot.slane %v6072_v5, 6  ;;  %v1459_v22 = vmul.f32 %v8079_v40, %v5236_v25 }
 0x2c6   : > { %8071 = vst [vmem:[#allocation27_spill] sm:$0xff] %v6056_v10  ;;  %v3456_v10 = vmul.f32 %v5947_v38, %v5855_v58  ;;  %v6082_v59 = vsel %vm3146_vm5, %v3501_v17, %v8076_v11  ;;  %v1426_v34 = vrot.slane %v1419_v36, 1  ;;  %v6095_v11 = vmul.f32 %v8080_v1, %v8063_v43 }
 0x2c7   : > { %v6065_v37 = vpop.permute.xlu1 %1640  ;;  %2299 = vrot.lane.b32.xlu0 %v2294_v39, %s4464_s7  ;;  %8077 = vst [vmem:[#allocation25_spill] sm:$0xff] %v6082_v59  ;;  %v8078_v39 = vld [vmem:[#allocation14_spill] sm:$0xff]  ;;  %v8081_v12 = vrot.slane %v5753_v54, 2  ;;  %v2364_v36 = vmul.f32 %v5634_v28, %v5280_v9  ;;  %v2352_v0 = vrot.slane %v2346_v35, 2  ;;  %v2365_v54 = vmul.f32 %v5634_v28, %v5503_v3 }
 0x2c8   : > { %8074 = vst [vmem:[#allocation44_spill] sm:$0xff] %v6065_v37  ;;  %v1413_v37 = vmul.f32 %v8070_v55, %v8078_v39  ;;  %v3462_v24 = vrot.slane %v3456_v10, 6  ;;  %v2334_v10 = vsel %vm1919_vm4, %v2332_v8, %v2333_v33  ;;  %v6118_v8 = vsel %vm1354_vm0, %v2532_v18, %v5686_v32 }
 0x2c9   : > { %2317 = vrot.lane.b32.xlu1 %v2314_v60, %s4464_s7  ;;  %v6088_v38 = vpop.permute.xlu0 %1642  ;;  %v2316_v17 = vsel %vm1894_vm3, %v2313_v31, %v8081_v12  ;;  %v2351_v60 = vrot.slane %v2345_v56, 2  ;;  %v7863_v31 = vrot.slane %v5323_v7, 7  ;;  %v8084_v12 = vld [vmem:[#allocation40_spill] sm:$0xff]  ;;  %v1469_v5 = vmul.f32 %v8080_v1, %v5225_v29 }
 0x2ca   : > { %v6109_v25 = vsel %vm3146_vm5, %v3462_v24, %v7862_v13  ;;  %v1425_v35 = vsel %vm1354_vm0, %v1423_v15, %v1424_v48  ;;  %v1415_v28 = vadd.f32 %v1413_v37, %v1410_v42  ;;  %v8085_v24 = vrot.slane %v5762_v62, 3 }
 0x2cb   : > { %v6100_v59 = vpop.permute.xlu1 %1652  ;;  %2319 = vrot.lane.b32.xlu0 %v2316_v17, %s4464_s7  ;;  %8083 = vst [vmem:[#allocation14_spill] sm:$0xff] %v6109_v25  ;;  %v2533_v17 = vsel %vm1354_vm0, %v8084_v12, %v2532_v18  ;;  %v6132_v32 = vsel %vm3175_vm6, %v3176_v51, %v7863_v31  ;;  %v1460_v12 = vmul.f32 %v8079_v40, %v8063_v43  ;;  %v2370_v51 = vrot.slane %v2364_v36, 3  ;;  %v8090_v43 = vld [vmem:[#allocation22_spill] sm:$0xff] }
 0x2cc   : > { %8082 = vst [vmem:[#allocation13_spill] sm:$0xff] %v6100_v59  ;;  %v1414_v59 = vadd.f32 %v1412_v23, %v1409_v57  ;;  %v2336_v13 = vsel %vm1919_vm4, %v2333_v33, %v8085_v24  ;;  %8086 = vst [vmem:[#allocation40_spill] sm:$0xff] %v6132_v32  ;;  %v1427_v23 = vsel %vm1354_vm0, %v1424_v48, %v1426_v34  ;;  %v8087_v57 = vld [vmem:[#allocation35_spill] sm:$0xff]  ;;  %v2371_v33 = vrot.slane %v2365_v54, 3  ;;  %v8091_v24 = vld [vmem:[#allocation37_spill] sm:$0xff] }
 0x2cd   : > { %2337 = vrot.lane.b32.xlu1 %v2334_v10, %s4464_s7  ;;  %v6123_v56 = vpop.permute.xlu0 %1654  ;;  %v1461_v18 = vadd.f32 %v1459_v22, %v8087_v57  ;;  %v7864_v10 = vrot.slane %v6095_v11, 1  ;;  %v6144_v62 = vmul.f32 %v8080_v1, %v8073_v45  ;;  %v2353_v37 = vsel %vm1894_vm3, %v2351_v60, %v2352_v0  ;;  %v8089_v34 = vld [vmem:[#allocation39_spill] sm:$0xff] }
 0x2ce   : > { %v6149_v48 = vadd.f32 %v6012_v53, %v8089_v34  ;;  %v6153_v22 = vadd.f32 %v6026_v52, %v5962_v46  ;;  %v1464_v42 = vmul.f32 %v8090_v43, %v8069_v21  ;;  %v6161_v60 = vadd.f32 %v2533_v17, %v8091_v24 }
 0x2cf   : > { %v6139_v15 = vpop.permute.xlu1 %1671  ;;  %2339 = vrot.lane.b32.xlu0 %v2336_v13, %s4464_s7  ;;  %v1475_v13 = vrot.slane %v1469_v5, 1  ;;  %v1430_v36 = vadd.f32 %v1425_v35, %v1414_v59  ;;  %v1431_v54 = vadd.f32 %v1427_v23, %v1415_v28  ;;  %v8092_v53 = vrot.slane %v5766_v44, 2  ;;  %v8100_v44 = vld [vmem:[#allocation61_spill] sm:$0xff] }
 0x2d0   : > { %8088 = vst [vmem:[#allocation97_spill] sm:$0xff] %v6139_v15  ;;  %v6166_v31 = vadd.f32 %v1464_v42, %v1461_v18  ;;  %v6174_v5 = vadd.f32 %v1460_v12, %v8087_v57  ;;  %v6178_v46 = vmul.f32 %v8090_v43, %v8078_v39  ;;  %v2383_v17 = vmul.f32 %v8067_v61, %v5696_v41  ;;  %v8094_v39 = vld [vmem:[#allocation45_spill] sm:$0xff] }
 0x2d1   : > { %2356 = vrot.lane.b32.xlu1 %v2353_v37, %s4464_s7  ;;  %v6158_v45 = vpop.permute.xlu0 %1673  ;;  %v2355_v34 = vsel %vm1894_vm3, %v2352_v0, %v8092_v53  ;;  %v6171_v52 = vsel %vm1354_vm0, %v1475_v13, %v7864_v10  ;;  %v2372_v0 = vsel %vm1919_vm4, %v2370_v51, %v2371_v33  ;;  %v2384_v35 = vmul.f32 %v8067_v61, %v5719_v6  ;;  %v8095_v51 = vld [vmem:[#allocation57_spill] sm:$0xff] }
 0x2d2   : > { %v2399_v23 = vmul.f32 %v8094_v39, %v8065_v47  ;;  %v6196_v18 = vmul.f32 %v5664_v20, %v8065_v47  ;;  %v2412_v12 = vmul.f32 %v5667_v63, %v5285_v27  ;;  %v3601_v37 = vmul.f32 %v5950_v26, %v5855_v58 }
 0x2d3   : > { %v6180_v59 = vpop.permute.xlu1 %1683  ;;  %2358 = vrot.lane.b32.xlu0 %v2355_v34, %s4464_s7  ;;  %v1521_v42 = vadd.f32 %v8095_v51, %v1430_v36  ;;  %v8096_v61 = vrot.slane %v5770_v14, 3  ;;  %v2400_v24 = vmul.f32 %v8094_v39, %v5558_v49  ;;  %v6210_v53 = vmul.f32 %v5950_v26, %v5323_v7  ;;  %v8098_v14 = vld [vmem:[#allocation46_spill] sm:$0xff] }
 0x2d4   : > { %8093 = vst [vmem:[#allocation39_spill] sm:$0xff] %v6180_v59  ;;  %v6217_v36 = vmul.f32 %v5664_v20, %v5558_v49  ;;  %v3607_v51 = vrot.slane %v3601_v37, 6  ;;  %v6227_v32 = vmul.f32 %v8098_v14, %v5503_v3  ;;  %v2418_v59 = vrot.slane %v2412_v12, 2 }
 0x2d5   : > { %2375 = vrot.lane.b32.xlu1 %v2372_v0, %s4464_s7  ;;  %v6190_v28 = vpop.permute.xlu0 %1685  ;;  %v2374_v13 = vsel %vm1919_vm4, %v2371_v33, %v8096_v61  ;;  %8097 = vst [vmem:[#allocation22_spill] sm:$0xff] %v6210_v53  ;;  %v2413_v0 = vmul.f32 %v5667_v63, %v5528_v16  ;;  %v6221_v33 = vmul.f32 %v8098_v14, %v5280_v9  ;;  %v8099_v61 = vld [vmem:[#allocation58_spill] sm:$0xff] }
 0x2d6   : > { %v1522_v10 = vadd.f32 %v8099_v61, %v1431_v54  ;;  %v1534_v26 = vadd.f32 %v8100_v44, %v1521_v42  ;;  %v6233_v15 = vmul.f32 %v8094_v39, %v5285_v27  ;;  %v6237_v37 = vmul.f32 %v8094_v39, %v5528_v16  ;;  %v8101_v44 = vld [vmem:[#allocation63_spill] sm:$0xff] }
 0x2d7   : > { %v1700_v34 = vpop.permute.xlu1 %1699  ;;  %2377 = vrot.lane.b32.xlu0 %v2374_v13, %s4464_s7  ;;  %v7871_v13 = vrot.slane %v6210_v53, 6  ;;  %v3707_v54 = vmul.f32 %v5953_v19, %v5855_v58  ;;  %v6250_v12 = vmul.f32 %v5953_v19, %v5323_v7  ;;  %v2419_v39 = vrot.slane %v2413_v0, 2  ;;  %v8108_v19 = vld [vmem:[#allocation52_spill] sm:$0xff] }
 0x2d8   : > { %v1535_v42 = vadd.f32 %v8101_v44, %v1522_v10  ;;  %v1554_v61 = vadd.f32 %v5815_v50, %v1534_v26  ;;  %v2438_v57 = vrot.slane %v6221_v33, 3  ;;  %v3562_v10 = vmul.f32 %v5974_v30, %v5855_v58  ;;  %v8105_v33 = vld [vmem:[#allocation90_spill] sm:$0xff] }
 0x2d9   : > { %2387 = vrot.lane.b32.xlu1 %v2383_v17, %s4464_s7  ;;  %v1702_v25 = vpop.permute.xlu0 %1701  ;;  %v6246_v17 = vsel %vm3146_vm5, %v3607_v51, %v7871_v13  ;;  %8103 = vst [vmem:[#allocation45_spill] sm:$0xff] %v6250_v12  ;;  %v3713_v40 = vrot.slane %v3707_v54, 6  ;;  %v7878_v51 = vrot.slane %v6250_v12, 6  ;;  %v6260_v44 = vmul.f32 %v5974_v30, %v5323_v7 }
 0x2da   : > { %8102 = vst [vmem:[#allocation37_spill] sm:$0xff] %v6246_v17  ;;  %v1555_v26 = vadd.f32 %v5831_v4, %v1535_v42  ;;  %v1705_v50 = vadd.f32 %v1700_v34, %v1554_v61  ;;  %v3568_v0 = vrot.slane %v3562_v10, 6  ;;  %v3668_v54 = vmul.f32 %v8105_v33, %v5855_v58  ;;  %v8152_v17 = vld [vmem:[#allocation72_spill] sm:$0xff] }
 0x2db   : > { %v1713_v1 = vpop.permute.xlu1 %1712  ;;  %2389 = vrot.lane.b32.xlu0 %v2384_v35, %s4464_s7  ;;  %8104 = vst [vmem:[#allocation57_spill] sm:$0xff] %v6260_v44  ;;  %v6265_v35 = vmul.f32 %v5711_v2, %v5528_v16  ;;  %v6271_v4 = vmul.f32 %v8105_v33, %v5323_v7  ;;  %v6276_v61 = vsel %vm3146_vm5, %v3713_v40, %v7878_v51  ;;  %v2439_v10 = vrot.slane %v6227_v32, 3 }
 0x2dc   : > { %v1706_v34 = vadd.f32 %v1702_v25, %v1555_v26  ;;  %v1718_v42 = vadd.f32 %v1713_v1, %v1705_v50  ;;  %8107 = vst [vmem:[#allocation58_spill] sm:$0xff] %v6276_v61  ;;  %v6283_v53 = vmul.f32 %v8108_v19, %v5503_v3  ;;  %v3674_v33 = vrot.slane %v3668_v54, 6 }
 0x2dd   : > { %2403 = vrot.lane.b32.xlu1 %v2399_v23, %s4464_s7  ;;  %v1715_v13 = vpop.permute.xlu0 %1714  ;;  %8106 = vst [vmem:[#allocation46_spill] sm:$0xff] %v6271_v4  ;;  %v7879_v23 = vrot.slane %v6260_v44, 6  ;;  %v7880_v25 = vrot.slane %v6271_v4, 6  ;;  %v2420_v50 = vsel %vm1894_vm3, %v2418_v59, %v2419_v39  ;;  %v2458_v51 = vrot.slane %v6237_v37, 2 }
 0x2de   : > { %v1719_v1 = vadd.f32 %v1715_v13, %v1706_v34  ;;  %v7881_v54 = vrot.slane %v6265_v35, 2  ;;  %v1467_v37 = vadd.f32 %v6178_v46, %v6174_v5  ;;  %v8126_v4 = vrot.slane %v6283_v53, 3 }
 0x2df   : > { %v1733_v30 = vpop.permute.xlu1 %1732  ;;  %2405 = vrot.lane.b32.xlu0 %v2400_v24, %s4464_s7  ;;  %v6290_v40 = vsel %vm3146_vm5, %v3568_v0, %v7879_v23  ;;  %v2457_v24 = vrot.slane %v6233_v15, 2  ;;  %v8111_v0 = vld [vmem:[#allocation59_spill] sm:$0xff]  ;;  %v2470_v15 = vmul.f32 %v5667_v63, %v5280_v9  ;;  %v8114_v23 = vrot.slane %v6095_v11, 1 }
 0x2e0   : > { %v1738_v26 = vadd.f32 %v1733_v30, %v1718_v42  ;;  %8109 = vst [vmem:[#allocation61_spill] sm:$0xff] %v6290_v40  ;;  %v6299_v30 = vsel %vm3146_vm5, %v3674_v33, %v7880_v25  ;;  %v8112_v34 = vrot.slane %v8111_v0, 2  ;;  %v6328_v11 = vmul.f32 %v5664_v20, %v5528_v16 }
 0x2e1   : > { %2423 = vrot.lane.b32.xlu1 %v2420_v50, %s4464_s7  ;;  %v1735_v32 = vpop.permute.xlu0 %1734  ;;  %8110 = vst [vmem:[#allocation63_spill] sm:$0xff] %v6299_v30  ;;  %v8113_v50 = vrot.slane %v6144_v62, 1  ;;  %v2440_v62 = vsel %vm1919_vm4, %v2438_v57, %v2439_v10  ;;  %v8121_v57 = vld [vmem:[#allocation92_spill] sm:$0xff]  ;;  %v8129_v30 = vld [vmem:[#allocation77_spill] sm:$0xff]  ;;  %v8153_v12 = vrot.slane %v8152_v17, 3 }
 0x2e2   : > { %v6302_v59 = vadd.f32 %v6196_v18, %v1738_v26  ;;  %v1739_v13 = vadd.f32 %v1735_v32, %v1719_v1  ;;  %v2422_v42 = vsel %vm1894_vm3, %v2419_v39, %v8112_v34  ;;  %v2471_v18 = vmul.f32 %v5667_v63, %v5503_v3  ;;  %v8115_v1 = vld [vmem:[#allocation32_spill] sm:$0xff]  ;;  %v8116_v26 = vld [vmem:[#allocation69_spill] sm:$0xff] }
 0x2e3   : > { %v1479_v33 = vsel %vm1354_vm0, %v8114_v23, %v8113_v50  ;;  %v6316_v25 = vpop.permute.xlu1 %1744  ;;  %2425 = vrot.lane.b32.xlu0 %v2422_v42, %s4464_s7  ;;  %v1567_v32 = vadd.f32 %v8116_v26, %v8115_v1  ;;  %v8117_v23 = vld [vmem:[#allocation60_spill] sm:$0xff]  ;;  %v2459_v34 = vsel %vm1894_vm3, %v2457_v24, %v2458_v51  ;;  %v8122_v1 = vld [vmem:[#allocation78_spill] sm:$0xff]  ;;  %v2476_v39 = vrot.slane %v2470_v15, 3 }
 0x2e4   : > { %v1936_v5 = vadd.f32 %v6217_v36, %v1739_v13  ;;  %v8118_v0 = vrot.slane %v8117_v23, 3  ;;  %v8119_v42 = vld [vmem:[#allocation68_spill] sm:$0xff]  ;;  %v3225_v13 = vmul.f32 %v8121_v57, %v5855_v58  ;;  %v6345_v23 = vmul.f32 %v8121_v57, %v5323_v7 }
 0x2e5   : > { %2443 = vrot.lane.b32.xlu1 %v2440_v62, %s4464_s7  ;;  %v1747_v46 = vpop.permute.xlu0 %1746  ;;  %v8120_v50 = vrot.slane %v8119_v42, 2  ;;  %v1586_v26 = vadd.f32 %v8122_v1, %v1567_v32  ;;  %v2477_v24 = vrot.slane %v2471_v18, 3  ;;  %v2522_v42 = vrot.slane %v6153_v22, 4  ;;  %v8127_v32 = vld [vmem:[#allocation87_spill] sm:$0xff] }
 0x2e6   : > { %v2442_v63 = vsel %vm1919_vm4, %v2439_v10, %v8118_v0  ;;  %8123 = vst [vmem:[#allocation52_spill] sm:$0xff] %v6345_v23  ;;  %v2521_v0 = vrot.slane %v6149_v48, 4  ;;  %v3231_v1 = vrot.slane %v3225_v13, 6  ;;  %v7885_v57 = vrot.slane %v6345_v23, 6 }
 0x2e7   : > { %v1948_v36 = vsel %vm1894_vm3, %v7881_v54, %v8120_v50  ;;  %v6347_v10 = vpop.permute.xlu1 %1763  ;;  %2445 = vrot.lane.b32.xlu0 %v2442_v63, %s4464_s7  ;;  %v8124_v50 = vld [vmem:[#allocation71_spill] sm:$0xff]  ;;  %v6363_v18 = vadd.f32 %v6118_v8, %v8129_v30  ;;  %v1482_v63 = vadd.f32 %v6171_v52, %v6166_v31  ;;  %v1483_v44 = vadd.f32 %v1479_v33, %v1467_v37 }
 0x2e8   : > { %v1952_v62 = vadd.f32 %v1948_v36, %v1936_v5  ;;  %v8125_v54 = vrot.slane %v8124_v50, 3  ;;  %v1598_v5 = vadd.f32 %v8127_v32, %v1586_v26  ;;  %v8131_v26 = vld [vmem:[#allocation62_spill] sm:$0xff]  ;;  %v6379_v8 = vsel %vm3146_vm5, %v3231_v1, %v7885_v57  ;;  %v8140_v57 = vld [vmem:[#allocation91_spill] sm:$0xff] }
 0x2e9   : > { %2462 = vrot.lane.b32.xlu1 %v2459_v34, %s4464_s7  ;;  %v1766_v50 = vpop.permute.xlu0 %1765  ;;  %8133 = vst [vmem:[#allocation69_spill] sm:$0xff] %v6379_v8  ;;  %v2478_v52 = vsel %vm1919_vm4, %v2476_v39, %v2477_v24  ;;  %v2489_v30 = vmul.f32 %v8098_v14, %v5696_v41  ;;  %v2490_v37 = vmul.f32 %v8098_v14, %v5719_v6 }
 0x2ea   : > { %v1964_v15 = vsel %vm1919_vm4, %v8126_v4, %v8125_v54  ;;  %v6370_v4 = vmul.f32 %v5711_v2, %v5503_v3  ;;  %v1751_v54 = vadd.f32 %v1747_v46, %v1598_v5  ;;  %v2523_v33 = vsel %vm2520_vm7, %v2521_v0, %v2522_v42  ;;  %v8134_v46 = vld [vmem:[#allocation93_spill] sm:$0xff]  ;;  %v8136_v5 = vld [vmem:[#allocation95_spill] sm:$0xff] }
 0x2eb   : > { %v6358_v36 = vadd.f32 %v1964_v15, %v1952_v62  ;;  %v8132_v62 = vrot.slane %v8131_v26, 2  ;;  %v6381_v31 = vpop.permute.xlu1 %1775  ;;  %v3299_v34 = vmul.f32 %v8134_v46, %v5855_v58  ;;  %v6394_v32 = vmul.f32 %v8134_v46, %v5323_v7  ;;  %v8137_v26 = vld [vmem:[#allocation26_spill] sm:$0xff]  ;;  %v8139_v0 = vld [vmem:[#allocation49_spill] sm:$0xff] }
 0x2ec   : > { %8130 = vst [vmem:[#allocation32_spill] sm:$0xff] %v6370_v4  ;;  %v3194_v1 = vmul.f32 %v8136_v5, %v5855_v58  ;;  %v1613_v13 = vadd.f32 %v8140_v57, %v1482_v63  ;;  %v6425_v63 = vmul.f32 %v8136_v5, %v5323_v7 }
 0x2ed   : > { %8128 = vst [vmem:[#allocation59_spill] sm:$0xff] %v6358_v36  ;;  %v2461_v15 = vsel %vm1894_vm3, %v2458_v51, %v8132_v62  ;;  %v1770_v51 = vadd.f32 %v1766_v50, %v1751_v54  ;;  %8135 = vst [vmem:[#allocation60_spill] sm:$0xff] %v6394_v32  ;;  %2481 = vrot.lane.b32.xlu1 %v2478_v52, %s4464_s7  ;;  %v1778_v39 = vpop.permute.xlu0 %1777  ;;  %v8138_v62 = vrot.slane %v8137_v26, 3  ;;  %v3305_v23 = vrot.slane %v3299_v34, 6  ;;  %v8141_v26 = vld [vmem:[#allocation64_spill] sm:$0xff] }
 0x2ee   : > { %2464 = vrot.lane.b32.xlu0 %v2461_v15, %s4464_s7  ;;  %v2720_v50 = vmul.f32 %v8139_v0, %v6161_v60  ;;  %v6406_v54 = vmul.f32 %v8139_v0, %v6363_v18  ;;  %v8142_v8 = vrot.slane %v8141_v26, 2  ;;  %v6421_v15 = vsel %vm1326_vm1, %v2523_v33, 0.0  ;;  %8145 = vst [vmem:[#allocation68_spill] sm:$0xff] %v6425_v63  ;;  %v8150_v33 = vld [vmem:[#allocation55_spill] sm:$0xff] }
 0x2ef   : > { %v2480_v14 = vsel %vm1919_vm4, %v2477_v24, %v8138_v62  ;;  %v1782_v46 = vadd.f32 %v1778_v39, %v1770_v51  ;;  %v8143_v24 = vrot.slane %v6328_v11, 2  ;;  %v1792_v40 = vpop.permute.xlu1 %1791  ;;  %v3200_v57 = vrot.slane %v3194_v1, 6  ;;  %v8146_v51 = vld [vmem:[#allocation96_spill] sm:$0xff]  ;;  %v8147_v39 = vld [vmem:[#allocation11_spill] sm:$0xff] }
 0x2f0   : > { %v1614_v34 = vadd.f32 %v8146_v51, %v1483_v44  ;;  %v1626_v26 = vadd.f32 %v8147_v39, %v1613_v13  ;;  %v8148_v61 = vrot.slane %v6394_v32, 6  ;;  %v2726_v5 = vrot.slane %v2720_v50, 4  ;;  %v8159_v50 = vld [vmem:[#allocation51_spill] sm:$0xff] }
 0x2f1   : > { %v1979_v62 = vsel %vm1894_vm3, %v8143_v24, %v8142_v8  ;;  %2493 = vrot.lane.b32.xlu1 %v2489_v30, %s4464_s7  ;;  %v8151_v24 = vrot.slane %v8150_v33, 4  ;;  %v8154_v44 = vrot.slane %v6370_v4, 3  ;;  %v2727_v30 = vrot.slane %v6406_v54, 4 }
 0x2f2   : > { %2483 = vrot.lane.b32.xlu0 %v2480_v14, %s4464_s7  ;;  %v1983_v52 = vadd.f32 %v1979_v62, %v1782_v46  ;;  %v6432_v8 = vsel %vm3146_vm5, %v3305_v23, %v8148_v61  ;;  %v1794_v14 = vpop.permute.xlu0 %1793  ;;  %v7891_v46 = vrot.slane %v6425_v63, 6  ;;  %v8155_v62 = vld [vmem:[#allocation27_spill] sm:$0xff]  ;;  %v8156_v23 = vld [vmem:[#allocation44_spill] sm:$0xff]  ;;  %v8166_v63 = vld [vmem:[#allocation54_spill] sm:$0xff] }
 0x2f3   : > { %8149 = vst [vmem:[#allocation78_spill] sm:$0xff] %v6432_v8  ;;  %v6438_v1 = vsel %vm2520_vm7, %v2522_v42, %v8151_v24  ;;  %v1994_v13 = vsel %vm1919_vm4, %v8154_v44, %v8153_v12  ;;  %v1627_v61 = vadd.f32 %v8155_v62, %v1614_v34  ;;  %v1646_v51 = vadd.f32 %v8156_v23, %v1626_v26  ;;  %v1805_v32 = vpop.permute.xlu1 %1804  ;;  %v8158_v42 = vld [vmem:[#allocation47_spill] sm:$0xff] }
 0x2f4   : > { %v6449_v39 = vadd.f32 %v1994_v13, %v1983_v52  ;;  %v2707_v17 = vmul.f32 %v8158_v42, %v6421_v15  ;;  %v2740_v12 = vmul.f32 %v8159_v50, %v6149_v48  ;;  %v6459_v34 = vsel %vm3146_vm5, %v3200_v57, %v7891_v46  ;;  %v8162_v13 = vld [vmem:[#allocation48_spill] sm:$0xff] }
 0x2f5   : > { %8160 = vst [vmem:[#allocation87_spill] sm:$0xff] %v6459_v34  ;;  %v1647_v54 = vadd.f32 %v6088_v38, %v1627_v61  ;;  %v1797_v52 = vadd.f32 %v1792_v40, %v1646_v51  ;;  %v2741_v26 = vmul.f32 %v8159_v50, %v6153_v22  ;;  %v2007_v62 = vmul.f32 %v8162_v13, %v8065_v47  ;;  %v8163_v38 = vld [vmem:[#allocation53_spill] sm:$0xff] }
 0x2f6   : > { %8157 = vst [vmem:[#allocation71_spill] sm:$0xff] %v6449_v39  ;;  %2495 = vrot.lane.b32.xlu0 %v2490_v37, %s4464_s7  ;;  %v8161_v37 = vld [vmem:[#allocation79_spill] sm:$0xff]  ;;  %2711 = vrot.lane.b32.xlu1 %v2707_v17, %s4463_s12  ;;  %v1807_v44 = vpop.permute.xlu0 %1806  ;;  %v2708_v23 = vmul.f32 %v8158_v42, %v6438_v1  ;;  %v2759_v57 = vmul.f32 %v8158_v42, %v6161_v60  ;;  %v6478_v46 = vstv %s6411_s5  ;;  %v2746_v47 = vrot.slane %v2740_v12, 5  ;;  %s6721_s5 = sld [smem:[#allocation2 + $0x18]] }
 0x2f7   : > { %v2021_v24 = vrot.slane %v8161_v37, 2  ;;  %v6474_v40 = vmul.f32 %v8163_v38, %v5528_v16  ;;  %v1798_v61 = vadd.f32 %v1794_v14, %v1647_v54  ;;  %v1810_v51 = vadd.f32 %v1805_v32, %v1797_v52  ;;  %8165 = vst [vmem:[#allocation62_spill] sm:$0xff] %v6478_v46  ;;  %v1825_v17 = vpop.permute.xlu1 %1824 }
 0x2f8   : > { %v2728_v37 = vsel %vm2520_vm7, %v2726_v5, %v2727_v30  ;;  %v2760_v8 = vmul.f32 %v8158_v42, %v6363_v18  ;;  %v6485_v34 = vmul.f32 %v8166_v63, %v5503_v3  ;;  %v3268_v39 = vmul.f32 %v6478_v46, %v5855_v58 }
 0x2f9   : > { %8164 = vst [vmem:[#allocation77_spill] sm:$0xff] %v6474_v40  ;;  %v1811_v14 = vadd.f32 %v1807_v44, %v1798_v61  ;;  %v1830_v32 = vadd.f32 %v1825_v17, %v1810_v51  ;;  %v2747_v54 = vrot.slane %v2741_v26, 5  ;;  %v6491_v5 = vmul.f32 %v6478_v46, %v5323_v7  ;;  %v8171_v26 = vld [vmem:[#allocation65_spill] sm:$0xff] }
 0x2fa   : > { %2713 = vrot.lane.b32.xlu0 %v2708_v23, %s4463_s12  ;;  %8167 = vst [vmem:[#allocation26_spill] sm:$0xff] %v6485_v34  ;;  %2731 = vrot.lane.b32.xlu1 %v2728_v37, %s4463_s12  ;;  %v2008_v12 = vmul.f32 %v8162_v13, %v5558_v49  ;;  %v1827_v42 = vpop.permute.xlu0 %1826  ;;  %v8169_v23 = vld [vmem:[#allocation41_spill] sm:$0xff]  ;;  %v3274_v4 = vrot.slane %v3268_v39, 6  ;;  %v8172_v61 = vrot.slane %v8171_v26, 4  ;;  %v2765_v49 = vrot.slane %v2759_v57, 4 }
 0x2fb   : > { %8168 = vst [vmem:[#allocation49_spill] sm:$0xff] %v6491_v5  ;;  %v2030_v36 = vmul.f32 %v8166_v63, %v8169_v23  ;;  %v6499_v58 = vadd.f32 %v2007_v62, %v1830_v32  ;;  %v1831_v44 = vadd.f32 %v1827_v42, %v1811_v14  ;;  %v7896_v17 = vrot.slane %v6491_v5, 6  ;;  %v6505_v37 = vpop.permute.xlu1 %1836  ;;  %v8174_v62 = vld [vmem:[#allocation38_spill] sm:$0xff] }
 0x2fc   : > { %v2730_v51 = vsel %vm2520_vm7, %v2727_v30, %v8172_v61  ;;  %8173 = vst [vmem:[#allocation64_spill] sm:$0xff] %v6505_v37  ;;  %v2766_v46 = vrot.slane %v2760_v8, 4  ;;  %v2778_v52 = vmul.f32 %v8139_v0, %v6149_v48  ;;  %v1659_v14 = vadd.f32 %v6123_v56, %v8174_v62  ;;  %v8175_v61 = vld [vmem:[#allocation70_spill] sm:$0xff] }
 0x2fd   : > { %8170 = vst [vmem:[#allocation91_spill] sm:$0xff] %v6499_v58  ;;  %v2010_v32 = vadd.f32 %v2008_v12, %v1831_v44  ;;  %v2748_v42 = vsel %vm2545_vm8, %v2746_v47, %v2747_v54  ;;  %v2779_v30 = vmul.f32 %v8139_v0, %v6153_v22  ;;  %v2768_v57 = vrot.slane %v8175_v61, 4  ;;  %v8178_v0 = vld [vmem:[#allocation66_spill] sm:$0xff] }
 0x2fe   : > { %2733 = vrot.lane.b32.xlu0 %v2730_v51, %s4463_s12  ;;  %2751 = vrot.lane.b32.xlu1 %v2748_v42, %s4463_s12  ;;  %v1839_v26 = vpop.permute.xlu0 %1838  ;;  %v8176_v8 = vrot.slane %v6474_v40, 2  ;;  %v2037_v39 = vrot.slane %v2030_v36, 3  ;;  %v6526_v56 = vsel %vm3146_vm5, %v3274_v4, %v7896_v17  ;;  %v1678_v47 = vadd.f32 %v6158_v45, %v1659_v14 }
 0x2ff   : > { %8177 = vst [vmem:[#allocation96_spill] sm:$0xff] %v6526_v56  ;;  %v8179_v12 = vrot.slane %v8178_v0, 5  ;;  %v6534_v62 = vmul.f32 %v8162_v13, %v5528_v16  ;;  %v6536_v61 = vpop.permute.xlu1 %1855  ;;  %v2767_v36 = vsel %vm2520_vm7, %v2765_v49, %v2766_v46  ;;  %v2547_v4 = vrot.slane %v6363_v18, 5 }
 0x300   : > { %v2022_v51 = vsel %vm1894_vm3, %v8176_v8, %v2021_v24  ;;  %8180 = vst [vmem:[#allocation11_spill] sm:$0xff] %v6536_v61  ;;  %v2784_v24 = vrot.slane %v2778_v52, 5  ;;  %v8181_v45 = vrot.slane %v6485_v34, 3  ;;  %v2785_v8 = vrot.slane %v2779_v30, 5  ;;  %v8184_v52 = vld [vmem:[#allocation56_spill] sm:$0xff] }
 0x301   : > { %v2750_v44 = vsel %vm2545_vm8, %v2747_v54, %v8179_v12  ;;  %v2026_v42 = vadd.f32 %v2022_v51, %v2010_v32  ;;  %v1690_v54 = vadd.f32 %v6190_v28, %v1678_v47  ;;  %v2546_v16 = vrot.slane %v6161_v60, 5  ;;  %v8183_v51 = vld [vmem:[#allocation42_spill] sm:$0xff] }
 0x302   : > { %2753 = vrot.lane.b32.xlu0 %v2750_v44, %s4463_s12  ;;  %v2038_v14 = vsel %vm1919_vm4, %v8181_v45, %v2037_v39  ;;  %2770 = vrot.lane.b32.xlu1 %v2767_v36, %s4463_s12  ;;  %v1858_v32 = vpop.permute.xlu0 %1857  ;;  %v2045_v49 = vmul.f32 %v8162_v13, %v8183_v51  ;;  %v2549_v12 = vrot.slane %v8184_v52, 5  ;;  %v6554_v44 = vmul.f32 %v8163_v38, %v5503_v3  ;;  %v8187_v45 = vld [vmem:[#allocation75_spill] sm:$0xff] }
 0x303   : > { %v6546_v0 = vadd.f32 %v2038_v14, %v2026_v42  ;;  %v1843_v39 = vadd.f32 %v1839_v26, %v1690_v54  ;;  %v2769_v28 = vsel %vm2520_vm7, %v2766_v46, %v2768_v57  ;;  %v2060_v30 = vmul.f32 %v8163_v38, %v8169_v23  ;;  %v6563_v47 = vpop.permute.xlu1 %1867 }
 0x304   : > { %8185 = vst [vmem:[#allocation27_spill] sm:$0xff] %v6554_v44  ;;  %8186 = vst [vmem:[#allocation44_spill] sm:$0xff] %v6563_v47  ;;  %v7898_v42 = vrot.slane %v6534_v62, 2  ;;  %v2550_v3 = vsel %vm2545_vm8, %v2547_v4, %v2549_v12  ;;  %v2786_v26 = vsel %vm2545_vm8, %v2784_v24, %v2785_v8  ;;  %v2787_v46 = vrot.slane %v8187_v45, 5 }
 0x305   : > { %8182 = vst [vmem:[#allocation72_spill] sm:$0xff] %v6546_v0  ;;  %v1862_v36 = vadd.f32 %v1858_v32, %v1843_v39  ;;  %v6571_v57 = vsel %vm2545_vm8, %v2546_v16, %v2547_v4  ;;  %v2052_v14 = vrot.slane %v2045_v49, 2  ;;  %v6575_v54 = vstv %s6518_s30  ;;  %s6836_s30 = sld [smem:[#allocation2 + $0x39]] }
 0x306   : > { %2772 = vrot.lane.b32.xlu0 %v2769_v28, %s4463_s12  ;;  %2789 = vrot.lane.b32.xlu1 %v2786_v26, %s4463_s12  ;;  %v1870_v23 = vpop.permute.xlu0 %1869  ;;  %v7897_v51 = vrot.slane %v6554_v44, 3  ;;  %v2788_v32 = vsel %vm2545_vm8, %v2785_v8, %v2787_v46  ;;  %v6581_v24 = vsel %vm1335_vm2, %v2550_v3, 0.0  ;;  %v2067_v39 = vrot.slane %v2060_v30, 3 }
 0x307   : > { %v1874_v28 = vadd.f32 %v1870_v23, %v1862_v36  ;;  %v2053_v4 = vsel %vm1894_vm3, %v7898_v42, %v2052_v14  ;;  %v6586_v16 = vpop.permute.xlu1 %2085  ;;  %v2797_v49 = vmul.f32 %v8159_v50, %v6571_v57  ;;  %v2826_v36 = vmul.f32 %v6575_v54, %v6161_v60 }
 0x308   : > { %v2827_v8 = vmul.f32 %v6575_v54, %v6363_v18  ;;  %v2798_v26 = vmul.f32 %v8159_v50, %v6581_v24  ;;  %v2068_v45 = vsel %vm1919_vm4, %v7897_v51, %v2067_v39  ;;  %v2812_v46 = vstv %s6557_s6  ;;  %s6872_s6 = sld [smem:[#allocation2 + $0x3c]] }
 0x309   : > { %v2057_v3 = vadd.f32 %v2053_v4, %v1874_v28  ;;  %v6605_v14 = vstv %s6559_s8  ;;  %v2813_v28 = vmul.f32 %v2812_v46, %v6421_v15  ;;  %v2832_v4 = vrot.slane %v2826_v36, 4  ;;  %s4173_s8 = sld [smem:[#allocation2 + $0x46]] }
 0x30a   : > { %2791 = vrot.lane.b32.xlu0 %v2788_v32, %s4463_s12  ;;  %2801 = vrot.lane.b32.xlu1 %v2797_v49, %s4463_s12  ;;  %v6596_v30 = vpop.permute.xlu0 %2087  ;;  %v2833_v49 = vrot.slane %v2827_v8, 4  ;;  %v2828_v50 = vmul.f32 %v6575_v54, %v8184_v52  ;;  %v2846_v39 = vmul.f32 %v6605_v14, %v6149_v48  ;;  %v2847_v17 = vmul.f32 %v6605_v14, %v6153_v22 }
 0x30b   : > { %8189 = vst [vmem:[#allocation47_spill] sm:$0xff] %v6596_v30  ;;  %v6609_v23 = vadd.f32 %v2068_v45, %v2057_v3  ;;  %v6611_v32 = vpop.permute.xlu1 %2105  ;;  %v2865_v5 = vmul.f32 %v2812_v46, %v6161_v60  ;;  %v2866_v56 = vmul.f32 %v2812_v46, %v6363_v18  ;;  %v6658_v7 = vstv %s4158_s10  ;;  %v8225_v30 = vld [vmem:[#allocation80_spill] sm:$0xff]  ;;  %s7410_s10 = sld [smem:[#allocation2 + $0x47]] }
 0x30c   : > { %8191 = vst [vmem:[#allocation79_spill] sm:$0xff] %v6611_v32  ;;  %v2834_v8 = vsel %vm2520_vm7, %v2832_v4, %v2833_v49  ;;  %v2835_v45 = vrot.slane %v2828_v50, 4  ;;  %v2852_v51 = vrot.slane %v2846_v39, 5  ;;  %v2853_v42 = vrot.slane %v2847_v17, 5 }
 0x30d   : > { %8190 = vst [vmem:[#allocation51_spill] sm:$0xff] %v6609_v23  ;;  %v6648_v50 = vstv %s6607_s9  ;;  %v2872_v23 = vrot.slane %v2866_v56, 4  ;;  %v2885_v44 = vmul.f32 %v6575_v54, %v6153_v22  ;;  %v6674_v47 = vstv %s6629_s14  ;;  %s4164_s9 = sld [smem:[#allocation2 + $0x21]] }
 0x30e   : > { %2803 = vrot.lane.b32.xlu0 %v2798_v26, %s4463_s12  ;;  %2817 = vrot.lane.b32.xlu1 %v2813_v28, %s4463_s12  ;;  %v6622_v3 = vpop.permute.xlu0 %2107  ;;  %v2814_v26 = vmul.f32 %v2812_v46, %v6438_v1  ;;  %v2848_v28 = vmul.f32 %v6605_v14, %v8150_v33  ;;  %v2836_v4 = vsel %vm2520_vm7, %v2833_v49, %v2835_v45  ;;  %v2871_v45 = vrot.slane %v2865_v5, 4 }
 0x30f   : > { %8192 = vst [vmem:[#allocation48_spill] sm:$0xff] %v6622_v3  ;;  %v6631_v36 = vpop.permute.xlu1 %2125  ;;  %v2854_v49 = vsel %vm2545_vm8, %v2852_v51, %v2853_v42  ;;  %8197 = vst [vmem:[#allocation38_spill] sm:$0xff] %v6674_v47  ;;  %v2886_v56 = vmul.f32 %v6575_v54, %v8150_v33  ;;  %v6683_v51 = vmul.f32 %v6648_v50, %v8184_v52  ;;  %v2891_v61 = vrot.slane %v2885_v44, 5 }
 0x310   : > { %8193 = vst [vmem:[#allocation53_spill] sm:$0xff] %v6631_v36  ;;  %v2855_v39 = vrot.slane %v2848_v28, 5  ;;  %v6671_v28 = vstv %s6627_s13  ;;  %v6706_v58 = vstv %s6642_s21  ;;  %v6709_v37 = vstv %s6644_s22  ;;  %s4189_s21 = sshll.u32 %s4433_s18, 10 }
 0x311   : > { %8200 = vst [vmem:[#allocation42_spill] sm:$0xff] %v6706_v58  ;;  %8201 = vst [vmem:[#allocation75_spill] sm:$0xff] %v6709_v37  ;;  %v1436_v44 = vmul.f32 %v8070_v55, %v5225_v29 }
 0x312   : > { %2819 = vrot.lane.b32.xlu0 %v2814_v26, %s4463_s12  ;;  %2837 = vrot.lane.b32.xlu1 %v2834_v8, %s4463_s12  ;;  %v6640_v12 = vpop.permute.xlu0 %2127  ;;  %v2867_v26 = vmul.f32 %v2812_v46, %v8184_v52  ;;  %v2884_v8 = vmul.f32 %v6575_v54, %v6149_v48  ;;  %v2856_v46 = vsel %vm2545_vm8, %v2853_v42, %v2855_v39 }
 0x313   : > { %8194 = vst [vmem:[#allocation54_spill] sm:$0xff] %v6640_v12  ;;  %v6652_v17 = vpop.permute.xlu1 %2144  ;;  %v6687_v42 = vmul.f32 %v6658_v7, %v8150_v33  ;;  %v2873_v39 = vsel %vm2520_vm7, %v2871_v45, %v2872_v23  ;;  %v6716_v45 = vmul.f32 %v6671_v28, %v8184_v52  ;;  %v1442_v32 = vrot.slane %v1436_v44, 1 }
 0x314   : > { %8195 = vst [vmem:[#allocation41_spill] sm:$0xff] %v6652_v17  ;;  %v2874_v5 = vrot.slane %v2867_v26, 4  ;;  %v2904_v44 = vmul.f32 %v6605_v14, %v6581_v24 }
 0x315   : > { %8202 = vst [vmem:[#allocation98_spill] sm:$0xff] %v6716_v45  ;;  %v2932_v45 = vmul.f32 %v6648_v50, %v6161_v60 }
 0x316   : > { %2839 = vrot.lane.b32.xlu0 %v2836_v4, %s4463_s12  ;;  %2857 = vrot.lane.b32.xlu1 %v2854_v49, %s4463_s12  ;;  %v6664_v0 = vpop.permute.xlu0 %2146  ;;  %v6667_v4 = vstv %s6625_s11  ;;  %v2890_v49 = vrot.slane %v2884_v8, 5  ;;  %v2875_v8 = vsel %vm2520_vm7, %v2872_v23, %v2874_v5  ;;  %v2893_v23 = vrot.slane %v2886_v56, 5  ;;  %s4167_s11 = sld [smem:[#allocation2 + $0x45]] }
 0x317   : > { %8196 = vst [vmem:[#allocation65_spill] sm:$0xff] %v6664_v0  ;;  %v6676_v34 = vpop.permute.xlu1 %2163  ;;  %v6694_v26 = vmul.f32 %v6667_v4, %v8184_v52  ;;  %v6738_v5 = vmul.f32 %v6674_v47, %v8150_v33  ;;  %v2903_v56 = vmul.f32 %v6605_v14, %v6571_v57  ;;  %v2919_v14 = vmul.f32 %v6667_v4, %v6421_v15 }
 0x318   : > { %8198 = vst [vmem:[#allocation70_spill] sm:$0xff] %v6676_v34  ;;  %v8205_v34 = vld [vmem:[#allocation17_spill] sm:$0xff]  ;;  %v2892_v3 = vsel %vm2545_vm8, %v2890_v49, %v2891_v61  ;;  %v6752_v49 = vmul.f32 %v6706_v58, %v8184_v52 }
 0x319   : > { %v8206_v0 = vrot.slane %v8205_v34, 1  ;;  %8211 = vst [vmem:[#allocation101_spill] sm:$0xff] %v6738_v5  ;;  %v8223_v5 = vld [vmem:[#allocation73_spill] sm:$0xff] }
 0x31a   : > { %2859 = vrot.lane.b32.xlu0 %v2856_v46, %s4463_s12  ;;  %2876 = vrot.lane.b32.xlu1 %v2873_v39, %s4463_s12  ;;  %v6699_v54 = vpop.permute.xlu0 %2165  ;;  %v6703_v46 = vmul.f32 %v6648_v50, %v8150_v33  ;;  %v6719_v39 = vstv %s6650_s24  ;;  %8214 = vst [vmem:[#allocation102_spill] sm:$0xff] %v6752_v49 }
 0x31b   : > { %8199 = vst [vmem:[#allocation66_spill] sm:$0xff] %v6699_v54  ;;  %8203 = vst [vmem:[#allocation99_spill] sm:$0xff] %v6719_v39  ;;  %v8204_v54 = vld [vmem:[#allocation18_spill] sm:$0xff]  ;;  %v6733_v55 = vpop.permute.xlu1 %2175 }
 0x31c   : > { %v6726_v17 = vadd.f32 %v8206_v0, %v8204_v54  ;;  %v8208_v12 = vrot.slane %v8204_v54, 1  ;;  %8210 = vst [vmem:[#allocation100_spill] sm:$0xff] %v6733_v55  ;;  %v2894_v0 = vsel %vm2545_vm8, %v2891_v61, %v2893_v23  ;;  %v6772_v55 = vstv %s6689_s26  ;;  %v8219_v61 = vld [vmem:[#allocation28_spill] sm:$0xff]  ;;  %s7687_s26 = scalar_lea.hbm %s7750_s4, %s4189_s21 }
 0x31d   : > { %8218 = vst [vmem:[#allocation106_spill] sm:$0xff] %v6772_v55  ;;  %v8220_v23 = vrot.slane %v8219_v61, 1  ;;  %v2938_v61 = vrot.slane %v2932_v45, 4 }
 0x31e   : > { %8207 = vst [vmem:[#allocation18_spill] sm:$0xff] %v6726_v17  ;;  %v6731_v36 = vadd.f32 %v8208_v12, %v8205_v34  ;;  %2878 = vrot.lane.b32.xlu0 %v2875_v8, %s4463_s12  ;;  %v8212_v34 = vld [vmem:[#allocation29_spill] sm:$0xff]  ;;  %2895 = vrot.lane.b32.xlu1 %v2892_v3, %s4463_s12  ;;  %v6747_v54 = vpop.permute.xlu0 %2177  ;;  %v6756_v8 = vmul.f32 %v6709_v37, %v8184_v52  ;;  %v8221_v37 = vld [vmem:[#allocation30_spill] sm:$0xff] }
 0x31f   : > { %v1432_v12 = vmul.f32 %v8212_v34, %v8069_v21  ;;  %8213 = vst [vmem:[#allocation29_spill] sm:$0xff] %v6747_v54  ;;  %v6762_v3 = vmul.f32 %v6671_v28, %v8150_v33  ;;  %v6764_v40 = vpop.permute.xlu1 %2191  ;;  %v1444_v34 = vsel %vm1354_vm0, %v1442_v32, %v8220_v23  ;;  %v6811_v23 = vmul.f32 %v6772_v55, %v6726_v17 }
 0x320   : > { %8209 = vst [vmem:[#allocation17_spill] sm:$0xff] %v6731_v36  ;;  %8215 = vst [vmem:[#allocation103_spill] sm:$0xff] %v6756_v8  ;;  %v6795_v58 = vmul.f32 %v8223_v5, %v6731_v36  ;;  %v2920_v55 = vmul.f32 %v6667_v4, %v6438_v1  ;;  %v6844_v17 = vmul.f32 %v6719_v39, %v8184_v52 }
 0x321   : > { %8216 = vst [vmem:[#allocation104_spill] sm:$0xff] %v6762_v3  ;;  %8217 = vst [vmem:[#allocation105_spill] sm:$0xff] %v6764_v40  ;;  %v6782_v40 = vstv %s6696_s29  ;;  %v1434_v47 = vadd.f32 %v1432_v12, %v8221_v37  ;;  %v6799_v37 = vmul.f32 %v8225_v30, %v6731_v36  ;;  %v6802_v12 = vstv %s6721_s5  ;;  %v8230_v36 = vld [vmem:[#allocation31_spill] sm:$0xff] }
 0x322   : > { %2897 = vrot.lane.b32.xlu0 %v2894_v0, %s4463_s12  ;;  %v2933_v0 = vmul.f32 %v6648_v50, %v6363_v18  ;;  %2907 = vrot.lane.b32.xlu1 %v2903_v56, %s4463_s12  ;;  %v6786_v54 = vpop.permute.xlu0 %2193  ;;  %8224 = vst [vmem:[#allocation30_spill] sm:$0xff] %v6795_v58  ;;  %8228 = vst [vmem:[#allocation109_spill] sm:$0xff] %v6811_v23  ;;  %v6815_v32 = vmul.f32 %v6782_v40, %v8184_v52  ;;  %v8240_v52 = vrot.slane %v6683_v51, 4 }
 0x323   : > { %8222 = vst [vmem:[#allocation28_spill] sm:$0xff] %v6786_v54  ;;  %8226 = vst [vmem:[#allocation107_spill] sm:$0xff] %v6799_v37  ;;  %v1449_v56 = vadd.f32 %v1444_v34, %v1434_v47  ;;  %v6804_v54 = vpop.permute.xlu1 %2211  ;;  %v2952_v47 = vmul.f32 %v6658_v7, %v6149_v48  ;;  %v2953_v34 = vmul.f32 %v6658_v7, %v6153_v22 }
 0x324   : > { %8227 = vst [vmem:[#allocation108_spill] sm:$0xff] %v6804_v54  ;;  %v2939_v5 = vrot.slane %v2933_v0, 4  ;;  %v6830_v45 = vmul.f32 %v6802_v12, %v8150_v33  ;;  %v6834_v0 = vmul.f32 %v6782_v40, %v8150_v33  ;;  %8233 = vst [vmem:[#allocation110_spill] sm:$0xff] %v6844_v17  ;;  %v1938_v8 = vmul.f32 %v5711_v2, %v5285_v27 }
 0x325   : > { %v2971_v33 = vmul.f32 %v6667_v4, %v6161_v60  ;;  %v2972_v17 = vmul.f32 %v6667_v4, %v6363_v18 }
 0x326   : > { %2909 = vrot.lane.b32.xlu0 %v2904_v44, %s4463_s12  ;;  %v8229_v44 = vld [vmem:[#allocation23_spill] sm:$0xff]  ;;  %2923 = vrot.lane.b32.xlu1 %v2919_v14, %s4464_s7  ;;  %v6824_v54 = vpop.permute.xlu0 %2213  ;;  %8232 = vst [vmem:[#allocation31_spill] sm:$0xff] %v6834_v0  ;;  %v2959_v14 = vrot.slane %v2953_v34, 5  ;;  %v8239_v34 = vld [vmem:[#allocation34_spill] sm:$0xff] }
 0x327   : > { %v1451_v30 = vmul.f32 %v8230_v36, %v8229_v44  ;;  %8231 = vst [vmem:[#allocation23_spill] sm:$0xff] %v6824_v54  ;;  %v1488_v36 = vmul.f32 %v8090_v43, %v5225_v29  ;;  %v6848_v49 = vpop.permute.xlu1 %2231  ;;  %v2940_v43 = vsel %vm2520_vm7, %v2938_v61, %v2939_v5  ;;  %v2958_v54 = vrot.slane %v2952_v47, 5  ;;  %v8238_v61 = vld [vmem:[#allocation67_spill] sm:$0xff] }
 0x328   : > { %8234 = vst [vmem:[#allocation111_spill] sm:$0xff] %v6848_v49  ;;  %v1484_v23 = vmul.f32 %v8239_v34, %v8069_v21  ;;  %v2990_v21 = vmul.f32 %v6648_v50, %v6149_v48  ;;  %v1969_v29 = vmul.f32 %v5664_v20, %v5285_v27  ;;  %v8250_v49 = vrot.slane %v6687_v42, 5 }
 0x329   : > { %v1453_v3 = vadd.f32 %v1451_v30, %v1449_v56  ;;  %v8235_v30 = vld [vmem:[#allocation19_spill] sm:$0xff]  ;;  %v8236_v56 = vld [vmem:[#allocation50_spill] sm:$0xff]  ;;  %v1494_v4 = vrot.slane %v1488_v36, 1  ;;  %v2960_v51 = vsel %vm2545_vm8, %v2958_v54, %v2959_v14 }
 0x32a   : > { %2925 = vrot.lane.b32.xlu0 %v2920_v55, %s4464_s7  ;;  %v3134_v37 = vsel %vm1354_vm0, %v8236_v56, %v8235_v30  ;;  %2943 = vrot.lane.b32.xlu1 %v2940_v43, %s4464_s7  ;;  %v6861_v58 = vpop.permute.xlu0 %2233  ;;  %v2942_v56 = vsel %vm2520_vm7, %v2939_v5, %v8240_v52  ;;  %v1944_v43 = vrot.slane %v1938_v8, 2  ;;  %v1954_v55 = vmul.f32 %v8108_v19, %v5280_v9  ;;  %v8242_v36 = vld [vmem:[#allocation74_spill] sm:$0xff]  ;;  %v8243_v8 = vld [vmem:[#allocation24_spill] sm:$0xff] }
 0x32b   : > { %8237 = vst [vmem:[#allocation19_spill] sm:$0xff] %v6861_v58  ;;  %v1566_v47 = vadd.f32 %v8238_v61, %v1453_v3  ;;  %v6876_v39 = vpop.permute.xlu1 %2250  ;;  %v2977_v3 = vrot.slane %v2971_v33, 4  ;;  %v2978_v52 = vrot.slane %v2972_v17, 4  ;;  %v2991_v5 = vmul.f32 %v6648_v50, %v6153_v22  ;;  %v8246_v54 = vld [vmem:[#allocation82_spill] sm:$0xff]  ;;  %v8248_v50 = vld [vmem:[#allocation33_spill] sm:$0xff] }
 0x32c   : > { %8241 = vst [vmem:[#allocation50_spill] sm:$0xff] %v6876_v39  ;;  %v6886_v34 = vadd.f32 %v3134_v37, %v8243_v8  ;;  %v2043_v33 = vmul.f32 %v8162_v13, %v5285_v27  ;;  %v8249_v58 = vrot.slane %v8248_v50, 1  ;;  %v2962_v20 = vsel %vm2545_vm8, %v2959_v14, %v8250_v49 }
 0x32d   : > { %v1585_v61 = vadd.f32 %v8242_v36, %v1566_v47  ;;  %v6896_v47 = vstv %s6836_s30  ;;  %v8247_v36 = vld [vmem:[#allocation35_spill] sm:$0xff]  ;;  %v1960_v0 = vrot.slane %v1954_v55, 3  ;;  %v8251_v13 = vrot.slane %v6265_v35, 2  ;;  %s4465_s30 = smov [#allocation7]  }
 0x32e   : > { %2945 = vrot.lane.b32.xlu0 %v2942_v56, %s4464_s7  ;;  %2963 = vrot.lane.b32.xlu1 %v2960_v51, %s4464_s7  ;;  %v6893_v56 = vpop.permute.xlu0 %2252  ;;  %8245 = vst [vmem:[#allocation34_spill] sm:$0xff] %v6896_v47  ;;  %v1486_v39 = vadd.f32 %v1484_v23, %v8247_v36  ;;  %v1496_v37 = vsel %vm1354_vm0, %v1494_v4, %v8249_v58  ;;  %v2996_v23 = vrot.slane %v2990_v21, 5  ;;  %v2997_v14 = vrot.slane %v2991_v5, 5 }
 0x32f   : > { %8244 = vst [vmem:[#allocation67_spill] sm:$0xff] %v6893_v56  ;;  %v1597_v17 = vadd.f32 %v8246_v54, %v1585_v61  ;;  %v1946_v51 = vsel %vm1894_vm3, %v1944_v43, %v8251_v13  ;;  %v1984_v56 = vmul.f32 %v5711_v2, %v5280_v9  ;;  %v6911_v47 = vpop.permute.xlu1 %2269  ;;  %v2979_v49 = vsel %vm2520_vm7, %v2977_v3, %v2978_v52  ;;  %v8258_v13 = vld [vmem:[#allocation32_spill] sm:$0xff] }
 0x330   : > { %v1951_v42 = vadd.f32 %v1946_v51, %v6302_v59  ;;  %v1501_v55 = vadd.f32 %v1496_v37, %v1486_v39  ;;  %v1975_v35 = vrot.slane %v1969_v29, 2  ;;  %v2049_v4 = vrot.slane %v2043_v33, 2  ;;  %v8279_v29 = vld [vmem:[#allocation65_spill] sm:$0xff] }
 0x331   : > { %v1750_v58 = vadd.f32 %v6316_v25, %v1597_v17  ;;  %v2012_v43 = vmul.f32 %v8163_v38, %v5285_v27  ;;  %v6924_v21 = vadd.f32 %v8235_v30, %v8243_v8  ;;  %v8252_v59 = vrot.slane %v6694_v26, 4  ;;  %v8253_v27 = vld [vmem:[#allocation36_spill] sm:$0xff] }
 0x332   : > { %2965 = vrot.lane.b32.xlu0 %v2962_v20, %s4464_s7  ;;  %2982 = vrot.lane.b32.xlu1 %v2979_v49, %s4464_s7  ;;  %v6920_v2 = vpop.permute.xlu0 %2271  ;;  %v6931_v39 = vstv %s6872_s6  ;;  %v1503_v61 = vmul.f32 %v8253_v27, %v8229_v44  ;;  %v8254_v5 = vrot.slane %v6283_v53, 3  ;;  %v1990_v54 = vrot.slane %v1984_v56, 3  ;;  %s4359_s6 = sshll.u32 %s4465_s30, 4  ;;  %s4360_s6 = int_to_ptr.vmem [resolvable:$false] %s4359_s6 }
 0x333   : > { %v1769_v25 = vadd.f32 %v6347_v10, %v1750_v58  ;;  %v2981_v3 = vsel %vm2520_vm7, %v2978_v52, %v8252_v59  ;;  %v6939_v30 = vpop.permute.xlu1 %2281  ;;  %v6945_v52 = vmul.f32 %v8166_v63, %v5280_v9  ;;  %v2998_v8 = vsel %vm2545_vm8, %v2996_v23, %v2997_v14 }
 0x334   : > { %v1962_v33 = vsel %vm1919_vm4, %v1960_v0, %v8254_v5  ;;  %v1505_v17 = vadd.f32 %v1503_v61, %v1501_v55  ;;  %v8255_v44 = vrot.slane %v6328_v11, 2  ;;  %v8256_v0 = vrot.slane %v6534_v62, 2  ;;  %v8261_v55 = vld [vmem:[#allocation47_spill] sm:$0xff]  ;;  %v8265_v5 = vld [vmem:[#allocation42_spill] sm:$0xff] }
 0x335   : > { %v1781_v10 = vadd.f32 %v6381_v31, %v1769_v25  ;;  %v1967_v26 = vadd.f32 %v1962_v33, %v1951_v42  ;;  %v2018_v36 = vrot.slane %v2012_v43, 2  ;;  %v1999_v37 = vmul.f32 %v8108_v19, %v5696_v41  ;;  %v8263_v25 = vld [vmem:[#allocation77_spill] sm:$0xff] }
 0x336   : > { %2984 = vrot.lane.b32.xlu0 %v2981_v3, %s4464_s7  ;;  %v1977_v53 = vsel %vm1894_vm3, %v1975_v35, %v8255_v44  ;;  %v6954_v56 = vsel %vm1894_vm3, %v2049_v4, %v8256_v0  ;;  %3001 = vrot.lane.b32.xlu1 %v2998_v8, %s4464_s7  ;;  %v6957_v31 = vpop.permute.xlu0 %2283  ;;  %v2000_v11 = vmul.f32 %v8108_v19, %v5719_v6  ;;  %v8257_v20 = vrot.slane %v6703_v46, 5  ;;  %v8260_v46 = vld [vmem:[#allocation59_spill] sm:$0xff]  ;;  %v8268_v44 = vld [vmem:[#allocation53_spill] sm:$0xff] }
 0x337   : > { %v2091_v50 = vadd.f32 %v6586_v16, %v1967_v26  ;;  %v8259_v51 = vrot.slane %v8258_v13, 3  ;;  %v2298_v58 = vpop.permute.xlu1 %2297  ;;  %v3009_v16 = vmul.f32 %v6658_v7, %v6571_v57  ;;  %v3038_v42 = vmul.f32 %v6671_v28, %v6161_v60  ;;  %v8262_v35 = vld [vmem:[#allocation79_spill] sm:$0xff]  ;;  %v8267_v26 = vld [vmem:[#allocation48_spill] sm:$0xff] }
 0x338   : > { %v3000_v62 = vsel %vm2545_vm8, %v2997_v14, %v8257_v20  ;;  %v3039_v19 = vmul.f32 %v6671_v28, %v6363_v18  ;;  %v1982_v49 = vadd.f32 %v1977_v53, %v1781_v10  ;;  %v2092_v14 = vadd.f32 %v8261_v55, %v8260_v46 }
 0x339   : > { %v1992_v23 = vsel %vm1919_vm4, %v1990_v54, %v8259_v51  ;;  %v2111_v4 = vadd.f32 %v8262_v35, %v2091_v50  ;;  %v2034_v43 = vrot.slane %v6945_v52, 3  ;;  %v8264_v59 = vrot.slane %v8263_v25, 2  ;;  %v8266_v54 = vld [vmem:[#allocation38_spill] sm:$0xff] }
 0x33a   : > { %3003 = vrot.lane.b32.xlu0 %v3000_v62, %s4464_s7  ;;  %3013 = vrot.lane.b32.xlu1 %v3009_v16, %s4464_s7  ;;  %v2300_v27 = vpop.permute.xlu0 %2299  ;;  %v3010_v61 = vmul.f32 %v6658_v7, %v6581_v24  ;;  %v3025_v33 = vmul.f32 %v8265_v5, %v6421_v15  ;;  %v3058_v10 = vmul.f32 %v8266_v54, %v6149_v48  ;;  %v8269_v7 = vld [vmem:[#allocation75_spill] sm:$0xff]  ;;  %v3044_v13 = vrot.slane %v3038_v42, 4  ;;  %v8270_v16 = vld [vmem:[#allocation54_spill] sm:$0xff] }
 0x33b   : > { %v6984_v3 = vsel %vm1894_vm3, %v2018_v36, %v8264_v59  ;;  %v2112_v8 = vadd.f32 %v8267_v26, %v2092_v14  ;;  %v2131_v53 = vadd.f32 %v8268_v44, %v2111_v4  ;;  %v3059_v0 = vmul.f32 %v8266_v54, %v6153_v22  ;;  %v2318_v50 = vpop.permute.xlu1 %2317  ;;  %v8271_v26 = vld [vmem:[#allocation98_spill] sm:$0xff] }
 0x33c   : > { %v3077_v36 = vmul.f32 %v8265_v5, %v6161_v60  ;;  %v2559_v20 = vmul.f32 %v8269_v7, %v6421_v15  ;;  %v3026_v62 = vmul.f32 %v8265_v5, %v6438_v1  ;;  %v3045_v51 = vrot.slane %v3039_v19, 4 }
 0x33d   : > { %v2132_v46 = vadd.f32 %v8270_v16, %v2112_v8  ;;  %v1997_v55 = vadd.f32 %v1992_v23, %v1982_v49  ;;  %v2303_v14 = vadd.f32 %v2298_v58, %v2131_v53  ;;  %v7007_v35 = vmul.f32 %v8265_v5, %v6363_v18 }
 0x33e   : > { %3015 = vrot.lane.b32.xlu0 %v3010_v61, %s4464_s7  ;;  %3029 = vrot.lane.b32.xlu1 %v3025_v33, %s4464_s7  ;;  %v2320_v4 = vpop.permute.xlu0 %2319  ;;  %v2560_v25 = vmul.f32 %v8269_v7, %v6438_v1  ;;  %v3064_v59 = vrot.slane %v3058_v10, 5  ;;  %v7014_v61 = vmul.f32 %v8269_v7, %v6161_v60  ;;  %v7018_v42 = vmul.f32 %v6782_v40, %v6363_v18 }
 0x33f   : > { %v2304_v23 = vadd.f32 %v2300_v27, %v2132_v46  ;;  %v2323_v58 = vadd.f32 %v2318_v50, %v2303_v14  ;;  %v3065_v19 = vrot.slane %v3059_v0, 5  ;;  %v3083_v49 = vrot.slane %v3077_v36, 4  ;;  %v2338_v5 = vpop.permute.xlu1 %2337  ;;  %v8274_v14 = vld [vmem:[#allocation41_spill] sm:$0xff] }
 0x340   : > { %v3046_v33 = vsel %vm2520_vm7, %v3044_v13, %v3045_v51  ;;  %v8272_v8 = vrot.slane %v8271_v26, 4  ;;  %v7027_v44 = vmul.f32 %v8269_v7, %v6363_v18  ;;  %v7031_v53 = vmul.f32 %v6802_v12, %v6153_v22  ;;  %v8277_v26 = vld [vmem:[#allocation101_spill] sm:$0xff] }
 0x341   : > { %v2001_v27 = vadd.f32 %v1999_v37, %v1997_v55  ;;  %v2324_v0 = vadd.f32 %v2320_v4, %v2304_v23  ;;  %v2343_v36 = vadd.f32 %v2338_v5, %v2323_v58  ;;  %v3084_v50 = vrot.slane %v7007_v35, 4  ;;  %v8275_v55 = vld [vmem:[#allocation71_spill] sm:$0xff] }
 0x342   : > { %3031 = vrot.lane.b32.xlu0 %v3026_v62, %s4464_s7  ;;  %v3048_v10 = vsel %vm2520_vm7, %v3045_v51, %v8272_v8  ;;  %v8273_v62 = vld [vmem:[#allocation13_spill] sm:$0xff]  ;;  %3049 = vrot.lane.b32.xlu1 %v3046_v33, %s4464_s7  ;;  %v2340_v13 = vpop.permute.xlu0 %2339  ;;  %v3096_v51 = vmul.f32 %v6671_v28, %v6149_v48  ;;  %v7040_v7 = vmul.f32 %v6671_v28, %v6153_v22  ;;  %v2571_v46 = vrot.slane %v7018_v42, 4 }
 0x343   : > { %v1658_v16 = vadd.f32 %v8273_v62, %v1505_v17  ;;  %v2150_v37 = vadd.f32 %v8274_v14, %v2001_v27  ;;  %v2002_v4 = vadd.f32 %v2000_v11, %v8275_v55  ;;  %v7045_v23 = vadd.f32 %v2559_v20, %v2343_v36  ;;  %v8276_v17 = vld [vmem:[#allocation97_spill] sm:$0xff]  ;;  %v2357_v5 = vpop.permute.xlu1 %2356  ;;  %v8280_v14 = vld [vmem:[#allocation70_spill] sm:$0xff]  ;;  %v8281_v36 = vld [vmem:[#allocation39_spill] sm:$0xff] }
 0x344   : > { %v2344_v35 = vadd.f32 %v2340_v13, %v2324_v0  ;;  %v3066_v33 = vsel %vm2545_vm8, %v3064_v59, %v3065_v19  ;;  %v8278_v8 = vrot.slane %v8277_v26, 5  ;;  %v2587_v62 = vrot.slane %v7031_v53, 5 }
 0x345   : > { %v1677_v58 = vadd.f32 %v8276_v17, %v1658_v16  ;;  %v2151_v27 = vadd.f32 %v8279_v29, %v2002_v4  ;;  %v2169_v11 = vadd.f32 %v8280_v14, %v2150_v37  ;;  %v3085_v0 = vsel %vm2520_vm7, %v3083_v49, %v3084_v50  ;;  %v8283_v29 = vld [vmem:[#allocation66_spill] sm:$0xff]  ;;  %v8284_v37 = vld [vmem:[#allocation100_spill] sm:$0xff] }
 0x346   : > { %3051 = vrot.lane.b32.xlu0 %v3048_v10, %s4464_s7  ;;  %v3068_v28 = vsel %vm2545_vm8, %v3065_v19, %v8278_v8  ;;  %v2562_v20 = vadd.f32 %v2560_v25, %v2344_v35  ;;  %3069 = vrot.lane.b32.xlu1 %v3066_v33, %s4464_s7  ;;  %v2359_v10 = vpop.permute.xlu0 %2358  ;;  %v3102_v13 = vrot.slane %v3096_v51, 5  ;;  %v3103_v59 = vrot.slane %v7040_v7, 5  ;;  %v8285_v35 = vld [vmem:[#allocation21_spill] sm:$0xff] }
 0x347   : > { %v1689_v16 = vadd.f32 %v8281_v36, %v1677_v58  ;;  %v8282_v55 = vrot.slane %v6815_v32, 4  ;;  %v2170_v4 = vadd.f32 %v8283_v29, %v2151_v27  ;;  %v2181_v25 = vadd.f32 %v8284_v37, %v2169_v11  ;;  %v8286_v58 = vld [vmem:[#allocation64_spill] sm:$0xff]  ;;  %v2376_v33 = vpop.permute.xlu1 %2375  ;;  %v8288_v27 = vld [vmem:[#allocation29_spill] sm:$0xff]  ;;  %v8289_v11 = vld [vmem:[#allocation91_spill] sm:$0xff] }
 0x348   : > { %v3148_v49 = vrot.slane %v8285_v35, 6  ;;  %v8287_v51 = vrot.slane %v6830_v45, 5  ;;  %v2610_v7 = vmul.f32 %v6782_v40, %v6149_v48  ;;  %v2611_v8 = vmul.f32 %v6782_v40, %v6153_v22 }
 0x349   : > { %v2574_v19 = vsel %vm2520_vm7, %v2571_v46, %v8282_v55  ;;  %v1842_v26 = vadd.f32 %v8286_v58, %v1689_v16  ;;  %v2182_v14 = vadd.f32 %v8288_v27, %v2170_v4  ;;  %v2362_v36 = vadd.f32 %v2357_v5, %v2181_v25  ;;  %v8291_v58 = vld [vmem:[#allocation26_spill] sm:$0xff] }
 0x34a   : > { %v2578_v17 = vadd.f32 %v2574_v19, %v2562_v20  ;;  %3071 = vrot.lane.b32.xlu0 %v3068_v28, %s4464_s7  ;;  %v2590_v32 = vsel %vm2545_vm8, %v2587_v62, %v8287_v51  ;;  %v2025_v20 = vadd.f32 %v6984_v3, %v8289_v11  ;;  %v8290_v28 = vld [vmem:[#allocation11_spill] sm:$0xff]  ;;  %v2058_v55 = vmul.f32 %v8163_v38, %v5280_v9  ;;  %v2378_v19 = vpop.permute.xlu0 %2377  ;;  %v8295_v9 = vld [vmem:[#allocation44_spill] sm:$0xff] }
 0x34b   : > { %v1861_v45 = vadd.f32 %v8290_v28, %v1842_v26  ;;  %3088 = vrot.lane.b32.xlu1 %v3085_v0, %s4464_s7  ;;  %v2601_v29 = vrot.slane %v7014_v61, 4  ;;  %v2602_v37 = vrot.slane %v7027_v44, 4  ;;  %v8292_v4 = vrot.slane %v8291_v58, 3  ;;  %v2388_v0 = vpop.permute.xlu1 %2387 }
 0x34c   : > { %v7082_v16 = vadd.f32 %v2590_v32, %v2578_v17  ;;  %v2363_v5 = vadd.f32 %v2359_v10, %v2182_v14  ;;  %v2381_v25 = vadd.f32 %v2376_v33, %v2362_v36  ;;  %v8293_v17 = vld [vmem:[#allocation102_spill] sm:$0xff]  ;;  %v3104_v61 = vsel %vm2545_vm8, %v3102_v13, %v3103_v59 }
 0x34d   : > { %v2036_v3 = vsel %vm1919_vm4, %v2034_v43, %v8292_v4  ;;  %v8294_v26 = vrot.slane %v8293_v17, 4  ;;  %v1873_v38 = vadd.f32 %v8295_v9, %v1861_v45  ;;  %v2616_v44 = vrot.slane %v2610_v7, 5  ;;  %v8299_v7 = vld [vmem:[#allocation105_spill] sm:$0xff]  ;;  %v8303_v17 = vld [vmem:[#allocation72_spill] sm:$0xff] }
 0x34e   : > { %v2617_v32 = vrot.slane %v2611_v8, 5  ;;  %v2041_v27 = vadd.f32 %v2036_v3, %v2025_v20  ;;  %v2382_v11 = vadd.f32 %v2378_v19, %v2363_v5  ;;  %v2393_v52 = vadd.f32 %v2388_v0, %v2381_v25  ;;  %v2390_v45 = vpop.permute.xlu0 %2389  ;;  %v8305_v9 = vld [vmem:[#allocation108_spill] sm:$0xff]  ;;  %v8316_v3 = vld [vmem:[#allocation19_spill] sm:$0xff] }
 0x34f   : > { %v3087_v51 = vsel %vm2520_vm7, %v3084_v50, %v8294_v26  ;;  %v8296_v43 = vrot.slane %v6886_v34, 6  ;;  %v2064_v33 = vrot.slane %v2058_v55, 3  ;;  %v2603_v14 = vsel %vm2520_vm7, %v2601_v29, %v2602_v37  ;;  %3107 = vrot.lane.b32.xlu1 %v3104_v61, %s4464_s7  ;;  %v8297_v50 = vld [vmem:[#allocation103_spill] sm:$0xff]  ;;  %v8300_v34 = vld [vmem:[#allocation104_spill] sm:$0xff]  ;;  %v2404_v4 = vpop.permute.xlu1 %2403 }
 0x350   : > { %3090 = vrot.lane.b32.xlu0 %v3087_v51, %s4464_s7  ;;  %v8298_v36 = vrot.slane %v8297_v50, 4  ;;  %v3115_v13 = vmul.f32 %v8266_v54, %v6571_v57  ;;  %v2197_v8 = vadd.f32 %v8299_v7, %v2041_v27  ;;  %v2608_v20 = vadd.f32 %v2603_v14, %v2393_v52  ;;  %v8304_v26 = vld [vmem:[#allocation28_spill] sm:$0xff]  ;;  %v8306_v27 = vld [vmem:[#allocation18_spill] sm:$0xff]  ;;  %v8308_v52 = vld [vmem:[#allocation31_spill] sm:$0xff] }
 0x351   : > { %v3149_v10 = vsel %vm3146_vm5, %v8296_v43, %v3148_v49  ;;  %v2394_v19 = vadd.f32 %v2390_v45, %v2382_v11  ;;  %v8301_v58 = vrot.slane %v8300_v34, 5  ;;  %v2056_v29 = vadd.f32 %v6954_v56, %v1873_v38  ;;  %v8310_v50 = vld [vmem:[#allocation23_spill] sm:$0xff]  ;;  %v8315_v34 = vld [vmem:[#allocation106_spill] sm:$0xff] }
 0x352   : > { %v2605_v28 = vsel %vm2520_vm7, %v2602_v37, %v8298_v36  ;;  %v7119_v37 = vsel %vm1326_vm1, %v3149_v10, 0.0  ;;  %v2618_v5 = vsel %vm2545_vm8, %v2616_v44, %v2617_v32  ;;  %v2625_v25 = vmul.f32 %v6802_v12, %v6571_v57  ;;  %v2406_v56 = vpop.permute.xlu0 %2405 }
 0x353   : > { %v3106_v55 = vsel %vm2545_vm8, %v3103_v59, %v8301_v58  ;;  %v2198_v51 = vadd.f32 %v8304_v26, %v8303_v17  ;;  %v2217_v0 = vadd.f32 %v8305_v9, %v2197_v8  ;;  %v2609_v59 = vadd.f32 %v2605_v28, %v2394_v19  ;;  %3119 = vrot.lane.b32.xlu1 %v3115_v13, %s4464_s7  ;;  %v8311_v28 = vld [vmem:[#allocation111_spill] sm:$0xff]  ;;  %v8314_v19 = vld [vmem:[#allocation80_spill] sm:$0xff]  ;;  %v8317_v9 = vld [vmem:[#allocation17_spill] sm:$0xff] }
 0x354   : > { %3109 = vrot.lane.b32.xlu0 %v3106_v55, %s4464_s7  ;;  %v2623_v61 = vadd.f32 %v2618_v5, %v2608_v20  ;;  %v3116_v38 = vmul.f32 %v8266_v54, %v6581_v24  ;;  %v8307_v11 = vrot.slane %v8306_v27, 6  ;;  %v8309_v43 = vrot.slane %v8308_v52, 5  ;;  %v8312_v54 = vld [vmem:[#allocation27_spill] sm:$0xff] }
 0x355   : > { %v2626_v14 = vmul.f32 %v6802_v12, %v6581_v24  ;;  %v2218_v36 = vadd.f32 %v8310_v50, %v2198_v51  ;;  %v2237_v45 = vadd.f32 %v8311_v28, %v2217_v0  ;;  %v8313_v8 = vrot.slane %v8312_v54, 3  ;;  %v8318_v0 = vld [vmem:[#allocation81_spill] sm:$0xff]  ;;  %v8322_v28 = vld [vmem:[#allocation99_spill] sm:$0xff] }
 0x356   : > { %v7133_v44 = vsel %vm3146_vm5, %v3148_v49, %v8307_v11  ;;  %v2620_v10 = vsel %vm2545_vm8, %v2617_v32, %v8309_v43  ;;  %v7142_v13 = vadd.f32 %v2625_v25, %v2623_v61  ;;  %v2424_v49 = vpop.permute.xlu1 %2423  ;;  %v3337_v32 = vmul.f32 %v8314_v19, %v7119_v37  ;;  %v8319_v61 = vld [vmem:[#allocation34_spill] sm:$0xff]  ;;  %v8320_v11 = vld [vmem:[#allocation56_spill] sm:$0xff] }
 0x357   : > { %v2624_v7 = vadd.f32 %v2620_v10, %v2609_v59  ;;  %v2066_v20 = vsel %vm1919_vm4, %v2064_v33, %v8313_v8  ;;  %v3370_v58 = vmul.f32 %v8315_v34, %v6924_v21  ;;  %v3371_v55 = vmul.f32 %v8315_v34, %v8285_v35  ;;  %v2426_v33 = vpop.permute.xlu0 %2425  ;;  %v8321_v10 = vld [vmem:[#allocation55_spill] sm:$0xff] }
 0x358   : > { %3121 = vrot.lane.b32.xlu0 %v3116_v38, %s4464_s7  ;;  %v2238_v5 = vadd.f32 %v8316_v3, %v2218_v36  ;;  %v2071_v25 = vadd.f32 %v2066_v20, %v2056_v29  ;;  %v2409_v17 = vadd.f32 %v2404_v4, %v2237_v45  ;;  %3341 = vrot.lane.b32.xlu1 %v3337_v32, %s4463_s12  ;;  %v8326_v32 = vld [vmem:[#allocation76_spill] sm:$0xff] }
 0x359   : > { %v7155_v26 = vadd.f32 %v2626_v14, %v2624_v7  ;;  %v3338_v51 = vmul.f32 %v8314_v19, %v7133_v44  ;;  %v7162_v59 = vmul.f32 %v8318_v0, %v8317_v9  ;;  %v7166_v38 = vmul.f32 %v8319_v61, %v6363_v18  ;;  %v8324_v19 = vld [vmem:[#allocation30_spill] sm:$0xff] }
 0x35a   : > { %v2640_v29 = vmul.f32 %v8319_v61, %v8320_v11  ;;  %v2073_v4 = vmul.f32 %v8166_v63, %v5696_v41  ;;  %v2410_v52 = vadd.f32 %v2406_v56, %v2238_v5  ;;  %v2429_v43 = vadd.f32 %v2424_v49, %v2409_v17  ;;  %v2444_v36 = vpop.permute.xlu1 %2443  ;;  %v8323_v49 = vld [vmem:[#allocation88_spill] sm:$0xff]  ;;  %v8328_v17 = vld [vmem:[#allocation50_spill] sm:$0xff] }
 0x35b   : > { %v2656_v14 = vmul.f32 %v6931_v39, %v8321_v10  ;;  %v2074_v50 = vmul.f32 %v8166_v63, %v5719_v6  ;;  %v2633_v45 = vmul.f32 %v8322_v28, %v6421_v15  ;;  %v3376_v7 = vrot.slane %v3370_v58, 7  ;;  %v2446_v63 = vpop.permute.xlu0 %2445 }
 0x35c   : > { %3343 = vrot.lane.b32.xlu0 %v3338_v51, %s4463_s12  ;;  %v7181_v54 = vmul.f32 %v6931_v39, %v6153_v22  ;;  %v2075_v41 = vadd.f32 %v2073_v4, %v2071_v25  ;;  %v2430_v56 = vadd.f32 %v2426_v33, %v2410_v52  ;;  %v2449_v8 = vadd.f32 %v2444_v36, %v2429_v43  ;;  %v8329_v33 = vld [vmem:[#allocation51_spill] sm:$0xff] }
 0x35d   : > { %v3377_v20 = vrot.slane %v3371_v55, 7  ;;  %3361 = vrot.lane.b32.xlu1 %v8323_v49, %s4463_s12  ;;  %v2634_v6 = vmul.f32 %v8322_v28, %v6438_v1  ;;  %v8325_v15 = vrot.slane %v8324_v19, 6  ;;  %v8327_v3 = vrot.slane %v8326_v32, 6 }
 0x35e   : > { %v2564_v5 = vmul.f32 %v6782_v40, %v6161_v60  ;;  %v2645_v25 = vrot.slane %v7166_v38, 4  ;;  %v2256_v55 = vadd.f32 %v8328_v17, %v2075_v41  ;;  %v2076_v51 = vadd.f32 %v2074_v50, %v8329_v33  ;;  %v2463_v1 = vpop.permute.xlu1 %2462  ;;  %v8330_v40 = vld [vmem:[#allocation67_spill] sm:$0xff] }
 0x35f   : > { %v3360_v58 = vsel %vm3146_vm5, %v8327_v3, %v8325_v15  ;;  %v7197_v11 = vadd.f32 %v2633_v45, %v2449_v8  ;;  %v2450_v4 = vadd.f32 %v2446_v63, %v2430_v56  ;;  %v2669_v52 = vmul.f32 %v8322_v28, %v6161_v60 }
 0x360   : > { %3363 = vrot.lane.b32.xlu0 %v3360_v58, %s4463_s12  ;;  %v2661_v43 = vrot.slane %v7181_v54, 5  ;;  %v2647_v36 = vrot.slane %v2640_v29, 4  ;;  %v2663_v49 = vrot.slane %v2656_v14, 5  ;;  %v2257_v19 = vadd.f32 %v8330_v40, %v2076_v51  ;;  %v2465_v45 = vpop.permute.xlu0 %2464 }
 0x361   : > { %v2275_v15 = vadd.f32 %v6911_v47, %v2256_v55  ;;  %v2636_v41 = vadd.f32 %v2634_v6, %v2450_v4  ;;  %v3378_v50 = vsel %vm3175_vm6, %v3376_v7, %v3377_v20  ;;  %v2670_v56 = vmul.f32 %v8322_v28, %v6363_v18  ;;  %v8331_v6 = vld [vmem:[#allocation109_spill] sm:$0xff]  ;;  %v8333_v55 = vld [vmem:[#allocation94_spill] sm:$0xff] }
 0x362   : > { %3381 = vrot.lane.b32.xlu1 %v3378_v50, %s4463_s12  ;;  %v2570_v8 = vrot.slane %v2564_v5, 4  ;;  %v2580_v63 = vmul.f32 %v6802_v12, %v6149_v48  ;;  %v2648_v29 = vsel %vm2520_vm7, %v2645_v25, %v2647_v36  ;;  %v2276_v14 = vadd.f32 %v6920_v2, %v2257_v19  ;;  %v2482_v58 = vpop.permute.xlu1 %2481  ;;  %v8338_v50 = vld [vmem:[#allocation73_spill] sm:$0xff] }
 0x363   : > { %v2287_v47 = vadd.f32 %v6939_v30, %v2275_v15  ;;  %v8332_v7 = vrot.slane %v8331_v6, 7  ;;  %v2652_v3 = vadd.f32 %v2648_v29, %v2636_v41  ;;  %v2664_v18 = vsel %vm2545_vm8, %v2661_v43, %v2663_v49  ;;  %v8339_v29 = vld [vmem:[#allocation110_spill] sm:$0xff] }
 0x364   : > { %v2684_v12 = vmul.f32 %v8319_v61, %v6149_v48  ;;  %v2685_v2 = vmul.f32 %v8319_v61, %v6153_v22  ;;  %v2686_v30 = vmul.f32 %v8319_v61, %v8321_v10  ;;  %v2288_v28 = vadd.f32 %v6957_v31, %v2276_v14  ;;  %v2484_v33 = vpop.permute.xlu0 %2483  ;;  %v8334_v31 = vld [vmem:[#allocation107_spill] sm:$0xff] }
 0x365   : > { %v3380_v32 = vsel %vm3175_vm6, %v3377_v20, %v8332_v7  ;;  %v2468_v20 = vadd.f32 %v2463_v1, %v2287_v47  ;;  %v2675_v5 = vrot.slane %v2669_v52, 4  ;;  %v7230_v17 = vadd.f32 %v2664_v18, %v2652_v3  ;;  %v8336_v52 = vld [vmem:[#allocation86_spill] sm:$0xff] }
 0x366   : > { %3383 = vrot.lane.b32.xlu0 %v3380_v32, %s4463_s12  ;;  %3400 = vrot.lane.b32.xlu1 %v8333_v55, %s4463_s12  ;;  %v2676_v51 = vrot.slane %v2670_v56, 4  ;;  %v3443_v4 = vmul.f32 %v8318_v0, %v7119_v37  ;;  %v2586_v36 = vrot.slane %v2580_v63, 5  ;;  %v2572_v22 = vsel %vm2520_vm7, %v2570_v8, %v2571_v46  ;;  %v2494_v41 = vpop.permute.xlu1 %2493 }
 0x367   : > { %v2469_v10 = vadd.f32 %v2465_v45, %v2288_v28  ;;  %v2487_v49 = vadd.f32 %v2482_v58, %v2468_v20  ;;  %v8335_v1 = vrot.slane %v8334_v31, 6  ;;  %v8337_v40 = vrot.slane %v8336_v52, 6 }
 0x368   : > { %v2577_v15 = vadd.f32 %v2572_v22, %v7045_v23  ;;  %v3408_v56 = vmul.f32 %v8338_v50, %v6924_v21  ;;  %v3409_v42 = vmul.f32 %v8338_v50, %v8285_v35  ;;  %v2690_v46 = vrot.slane %v2684_v12, 5  ;;  %v2496_v6 = vpop.permute.xlu0 %2495 }
 0x369   : > { %v3399_v19 = vsel %vm3146_vm5, %v8337_v40, %v8335_v1  ;;  %v2691_v45 = vrot.slane %v2685_v2, 5  ;;  %v2488_v8 = vadd.f32 %v2484_v33, %v2469_v10  ;;  %v2499_v63 = vadd.f32 %v2494_v41, %v2487_v49 }
 0x36a   : > { %3402 = vrot.lane.b32.xlu0 %v3399_v19, %s4463_s12  ;;  %v2678_v14 = vrot.slane %v8339_v29, 4  ;;  %v3410_v47 = vmul.f32 %v8338_v50, %v8306_v27  ;;  %v2677_v23 = vsel %vm2520_vm7, %v2675_v5, %v2676_v51  ;;  %3447 = vrot.lane.b32.xlu1 %v3443_v4, %s4463_s12  ;;  %v2588_v7 = vsel %vm2545_vm8, %v2586_v36, %v2587_v62  ;;  %v2712_v20 = vpop.permute.xlu1 %2711 }
 0x36b   : > { %v3444_v32 = vmul.f32 %v8318_v0, %v7133_v44  ;;  %v3504_v3 = vrot.slane %v7162_v59, 6  ;;  %v2682_v58 = vadd.f32 %v2677_v23, %v2499_v63  ;;  %v2500_v18 = vadd.f32 %v2496_v6, %v2488_v8  ;;  %v8340_v59 = vld [vmem:[#allocation25_spill] sm:$0xff]  ;;  %v8344_v6 = vld [vmem:[#allocation14_spill] sm:$0xff] }
 0x36c   : > { %v2593_v12 = vadd.f32 %v2588_v7, %v2577_v15  ;;  %v2693_v2 = vrot.slane %v2686_v30, 5  ;;  %v2679_v28 = vsel %vm2520_vm7, %v2676_v51, %v2678_v14  ;;  %v3414_v5 = vrot.slane %v3408_v56, 7  ;;  %v2714_v36 = vpop.permute.xlu0 %2713  ;;  %v8341_v30 = vld [vmem:[#allocation43_spill] sm:$0xff] }
 0x36d   : > { %v3415_v55 = vrot.slane %v3409_v42, 7  ;;  %v2692_v53 = vsel %vm2545_vm8, %v2690_v46, %v2691_v45  ;;  %v2683_v33 = vadd.f32 %v2679_v28, %v2500_v18  ;;  %v2699_v0 = vmul.f32 %v6931_v39, %v6571_v57  ;;  %v8343_v15 = vld [vmem:[#allocation83_spill] sm:$0xff]  ;;  %v8345_v18 = vld [vmem:[#allocation16_spill] sm:$0xff] }
 0x36e   : > { %3449 = vrot.lane.b32.xlu0 %v3444_v32, %s4463_s12  ;;  %v2717_v62 = vadd.f32 %v2712_v20, %v2593_v12  ;;  %v2697_v4 = vadd.f32 %v2692_v53, %v2682_v58  ;;  %3506 = vrot.lane.b32.xlu1 %v8340_v59, %s4463_s12  ;;  %v8342_v22 = vrot.slane %v8341_v30, 6  ;;  %v2694_v10 = vsel %vm2545_vm8, %v2691_v45, %v2693_v2  ;;  %v2732_v40 = vpop.permute.xlu1 %2731 }
 0x36f   : > { %v2718_v49 = vadd.f32 %v2714_v36, %v7082_v16  ;;  %v2698_v1 = vadd.f32 %v2694_v10, %v2683_v33  ;;  %v2700_v52 = vmul.f32 %v6931_v39, %v6581_v24  ;;  %v3416_v57 = vsel %vm3175_vm6, %v3414_v5, %v3415_v55  ;;  %v8347_v5 = vld [vmem:[#allocation20_spill] sm:$0xff] }
 0x370   : > { %v3505_v51 = vsel %vm3146_vm5, %v8342_v22, %v3504_v3  ;;  %v7273_v31 = vadd.f32 %v2699_v0, %v2697_v4  ;;  %v3417_v19 = vrot.slane %v3410_v47, 7  ;;  %v3458_v41 = vmul.f32 %v8343_v15, %v8317_v9  ;;  %v2734_v24 = vpop.permute.xlu0 %2733 }
 0x371   : > { %v2737_v50 = vadd.f32 %v2732_v40, %v2717_v62  ;;  %v3514_v16 = vmul.f32 %v8343_v15, %v6924_v21  ;;  %v3515_v56 = vmul.f32 %v8343_v15, %v8285_v35  ;;  %v7285_v42 = vadd.f32 %v2700_v52, %v2698_v1 }
 0x372   : > { %3508 = vrot.lane.b32.xlu0 %v3505_v51, %s4463_s12  ;;  %3419 = vrot.lane.b32.xlu1 %v3416_v57, %s4463_s12  ;;  %v2738_v46 = vadd.f32 %v2734_v24, %v2718_v49  ;;  %v3418_v45 = vsel %vm3175_vm6, %v3415_v55, %v3417_v19  ;;  %v2752_v8 = vpop.permute.xlu1 %2751  ;;  %v3516_v63 = vmul.f32 %v8343_v15, %v8306_v27  ;;  %v3465_v14 = vrot.slane %v3458_v41, 6  ;;  %v8350_v49 = vld [vmem:[#allocation40_spill] sm:$0xff] }
 0x373   : > { %v7292_v29 = vadd.f32 %v2752_v8, %v2737_v50  ;;  %v3520_v47 = vrot.slane %v3514_v16, 7  ;;  %v3521_v23 = vrot.slane %v3515_v56, 7  ;;  %v3179_v32 = vrot.slane %v8317_v9, 7 }
 0x374   : > { %v2754_v7 = vpop.permute.xlu0 %2753  ;;  %v2638_v3 = vmul.f32 %v8319_v61, %v6161_v60  ;;  %v8346_v12 = vrot.slane %v8345_v18, 6  ;;  %v3523_v20 = vrot.slane %v3516_v63, 7  ;;  %v8348_v55 = vrot.slane %v8347_v5, 7  ;;  %v8352_v5 = vld [vmem:[#allocation37_spill] sm:$0xff] }
 0x375   : > { %v7299_v58 = vadd.f32 %v2754_v7, %v2738_v46  ;;  %v3475_v33 = vstv %s4173_s8  ;;  %v3522_v4 = vsel %vm3175_vm6, %v3520_v47, %v3521_v23  ;;  %v2654_v36 = vmul.f32 %v6931_v39, %v6149_v48  ;;  %s4361_s8 = scalar_lea.vmem %s4360_s6, 2048 }
 0x376   : > { %3421 = vrot.lane.b32.xlu0 %v3418_v45, %s4463_s12  ;;  %3467 = vrot.lane.b32.xlu1 %v8344_v6, %s4463_s12  ;;  %v3466_v2 = vsel %vm3146_vm5, %v8346_v12, %v3465_v14  ;;  %v2771_v28 = vpop.permute.xlu1 %2770  ;;  %v3180_v53 = vsel %vm3175_vm6, %v8348_v55, %v3179_v32  ;;  %v3476_v60 = vmul.f32 %v3475_v33, %v6924_v21  ;;  %v2644_v59 = vrot.slane %v2638_v3, 4 }
 0x377   : > { %v2776_v62 = vadd.f32 %v2771_v28, %v7142_v13  ;;  %v3477_v61 = vmul.f32 %v3475_v33, %v8285_v35  ;;  %v3524_v22 = vsel %vm3175_vm6, %v3521_v23, %v3523_v20  ;;  %v7319_v13 = vsel %vm1335_vm2, %v3180_v53, 0.0 }
 0x378   : > { %v2773_v0 = vpop.permute.xlu0 %2772  ;;  %v3427_v1 = vmul.f32 %v8315_v34, %v8350_v49  ;;  %v3482_v40 = vrot.slane %v3476_v60, 7  ;;  %v3478_v19 = vmul.f32 %v3475_v33, %v8306_v27  ;;  %v3428_v39 = vmul.f32 %v8315_v34, %v7319_v13 }
 0x379   : > { %v2777_v30 = vadd.f32 %v2773_v0, %v7155_v26  ;;  %v3483_v57 = vrot.slane %v3477_v61, 7  ;;  %v2646_v26 = vsel %vm2520_vm7, %v2644_v59, %v2645_v25  ;;  %v2660_v15 = vrot.slane %v2654_v36, 5  ;;  %v8355_v61 = vld [vmem:[#allocation85_spill] sm:$0xff] }
 0x37a   : > { %3469 = vrot.lane.b32.xlu0 %v3466_v2, %s4463_s12  ;;  %3525 = vrot.lane.b32.xlu1 %v3522_v4, %s4463_s12  ;;  %v2790_v10 = vpop.permute.xlu1 %2789  ;;  %v2651_v50 = vadd.f32 %v2646_v26, %v7197_v11  ;;  %v3485_v46 = vrot.slane %v3478_v19, 7  ;;  %v3533_v63 = vmul.f32 %v3475_v33, %v8350_v49  ;;  %v3534_v23 = vmul.f32 %v3475_v33, %v7319_v13  ;;  %v8353_v33 = vld [vmem:[#allocation22_spill] sm:$0xff] }
 0x37b   : > { %v2795_v52 = vadd.f32 %v2790_v10, %v2776_v62  ;;  %v3484_v24 = vsel %vm3175_vm6, %v3482_v40, %v3483_v57  ;;  %v2662_v34 = vsel %vm2545_vm8, %v2660_v15, %v2661_v43  ;;  %v8351_v43 = vld [vmem:[#allocation84_spill] sm:$0xff]  ;;  %v8354_v62 = vrot.slane %v8353_v33, 6 }
 0x37c   : > { %v2792_v48 = vpop.permute.xlu0 %2791  ;;  %v2667_v25 = vadd.f32 %v2662_v34, %v2651_v50  ;;  %v3486_v11 = vsel %vm3175_vm6, %v3483_v57, %v3485_v46  ;;  %v3549_v7 = vmul.f32 %v8351_v43, %v7119_v37  ;;  %v3603_v3 = vmul.f32 %v8351_v43, %v8317_v9 }
 0x37d   : > { %v2796_v41 = vadd.f32 %v2792_v48, %v2777_v30  ;;  %v3550_v12 = vmul.f32 %v8351_v43, %v7133_v44  ;;  %v3655_v0 = vmul.f32 %v8355_v61, %v7119_v37  ;;  %v3709_v36 = vmul.f32 %v8355_v61, %v8317_v9  ;;  %v8357_v48 = vld [vmem:[#allocation58_spill] sm:$0xff] }
 0x37e   : > { %3527 = vrot.lane.b32.xlu0 %v3524_v22, %s4463_s12  ;;  %3431 = vrot.lane.b32.xlu1 %v3427_v1, %s4463_s12  ;;  %v2802_v16 = vpop.permute.xlu1 %2801  ;;  %v3610_v20 = vrot.slane %v3603_v3, 6  ;;  %v3656_v22 = vmul.f32 %v8355_v61, %v7133_v44  ;;  %v8356_v1 = vld [vmem:[#allocation89_spill] sm:$0xff]  ;;  %v7423_v61 = vstv %s4164_s9 }
 0x37f   : > { %v7333_v56 = vadd.f32 %v2802_v16, %v2795_v52  ;;  %v3564_v52 = vmul.f32 %v8356_v1, %v8317_v9  ;;  %v3716_v57 = vrot.slane %v3709_v36, 6  ;;  %v3621_v19 = vmul.f32 %v8356_v1, %v8285_v35 }
 0x380   : > { %v2804_v45 = vpop.permute.xlu0 %2803  ;;  %v3611_v4 = vsel %vm3146_vm5, %v8354_v62, %v3610_v20  ;;  %v3622_v16 = vmul.f32 %v8356_v1, %v8306_v27  ;;  %v3210_v36 = vmul.f32 %v7423_v61, %v6924_v21 }
 0x381   : > { %v7340_v38 = vadd.f32 %v2804_v45, %v2796_v41  ;;  %v3571_v46 = vrot.slane %v3564_v52, 6  ;;  %v3627_v34 = vrot.slane %v3621_v19, 7  ;;  %v8367_v19 = vld [vmem:[#allocation95_spill] sm:$0xff] }
 0x382   : > { %3433 = vrot.lane.b32.xlu0 %v3428_v39, %s4463_s12  ;;  %3487 = vrot.lane.b32.xlu1 %v3484_v24, %s4463_s12  ;;  %v2818_v8 = vpop.permute.xlu1 %2817 }
 0x383   : > { %v2823_v14 = vadd.f32 %v2818_v8, %v2667_v25  ;;  %v8360_v25 = vld [vmem:[#allocation61_spill] sm:$0xff] }
 0x384   : > { %v2820_v47 = vpop.permute.xlu0 %2819 }
 0x385   : > { %v2824_v54 = vadd.f32 %v2820_v47, %v7230_v17 }
 0x386   : > { %3489 = vrot.lane.b32.xlu0 %v3486_v11, %s4463_s12  ;;  %3537 = vrot.lane.b32.xlu1 %v3533_v63, %s4463_s12  ;;  %v2838_v6 = vpop.permute.xlu1 %2837  ;;  %v8361_v63 = vld [vmem:[#allocation57_spill] sm:$0xff] }
 0x387   : > { %v2843_v32 = vadd.f32 %v2838_v6, %v2823_v14  ;;  %v8362_v14 = vrot.slane %v8361_v63, 6  ;;  %v8363_v6 = vld [vmem:[#allocation90_spill] sm:$0xff] }
 0x388   : > { %v2840_v18 = vpop.permute.xlu0 %2839  ;;  %v3670_v43 = vmul.f32 %v8363_v6, %v8317_v9  ;;  %v3726_v3 = vmul.f32 %v8363_v6, %v6924_v21 }
 0x389   : > { %v2844_v2 = vadd.f32 %v2840_v18, %v2824_v54  ;;  %v3572_v47 = vsel %vm3146_vm5, %v8362_v14, %v3571_v46  ;;  %v3629_v54 = vrot.slane %v3622_v16, 7  ;;  %v3727_v18 = vmul.f32 %v8363_v6, %v8285_v35 }
 0x38a   : > { %3539 = vrot.lane.b32.xlu0 %v3534_v23, %s4463_s12  ;;  %3553 = vrot.lane.b32.xlu1 %v3549_v7, %s4464_s7  ;;  %v2858_v28 = vpop.permute.xlu1 %2857  ;;  %s4176_s12 = sld [smem:[#allocation2 + $0x23]]  ;;  %v7446_v16 = vstv %s7410_s10  ;;  %v3216_v46 = vrot.slane %v3210_v36, 7 }
 0x38b   : > { %v7357_v17 = vadd.f32 %v2858_v28, %v2843_v32  ;;  %v3630_v28 = vsel %vm3175_vm6, %v3627_v34, %v3629_v54  ;;  %v3688_v54 = vmul.f32 %v7446_v16, %v6924_v21 }
 0x38c   : > { %v2860_v55 = vpop.permute.xlu0 %2859 }
 0x38d   : > { %v7361_v53 = vadd.f32 %v2860_v55, %v2844_v2  ;;  %v3728_v55 = vmul.f32 %v8363_v6, %v8306_v27 }
 0x38e   : > { %3555 = vrot.lane.b32.xlu0 %v3550_v12, %s4464_s7  ;;  %3612 = vrot.lane.b32.xlu1 %v8352_v5, %s4464_s7  ;;  %v2877_v60 = vpop.permute.xlu1 %2876  ;;  %v3677_v5 = vrot.slane %v3670_v43, 6 }
 0x38f   : > { %v2882_v59 = vadd.f32 %v2877_v60, %v7273_v31  ;;  %v3620_v31 = vmul.f32 %v8356_v1, %v6924_v21  ;;  %v3732_v60 = vrot.slane %v3726_v3, 7  ;;  %v8369_v3 = vld [vmem:[#allocation87_spill] sm:$0xff] }
 0x390   : > { %v2879_v30 = vpop.permute.xlu0 %2878  ;;  %v7414_v20 = vstv %s4176_s12 }
 0x391   : > { %v2883_v51 = vadd.f32 %v2879_v30, %v7285_v42  ;;  %v8358_v42 = vld [vmem:[#allocation45_spill] sm:$0xff]  ;;  %v3626_v45 = vrot.slane %v3620_v31, 7  ;;  %v3582_v33 = vmul.f32 %v7414_v20, %v6924_v21  ;;  %v3583_v62 = vmul.f32 %v7414_v20, %v8285_v35 }
 0x392   : > { %3614 = vrot.lane.b32.xlu0 %v3611_v4, %s4464_s7  ;;  %3659 = vrot.lane.b32.xlu1 %v3655_v0, %s4464_s7  ;;  %v2896_v10 = vpop.permute.xlu1 %2895  ;;  %v8359_v15 = vrot.slane %v8358_v42, 6  ;;  %v8364_v0 = vld [vmem:[#allocation63_spill] sm:$0xff]  ;;  %v7431_v30 = vmul.f32 %v7423_v61, %v8285_v35  ;;  %v3584_v31 = vmul.f32 %v7414_v20, %v8306_v27 }
 0x393   : > { %v2901_v40 = vadd.f32 %v2896_v10, %v2882_v59  ;;  %v3628_v32 = vsel %vm3175_vm6, %v3626_v45, %v3627_v34 }
 0x394   : > { %v2898_v39 = vpop.permute.xlu0 %2897  ;;  %v3717_v41 = vsel %vm3146_vm5, %v8359_v15, %v3716_v57  ;;  %v3589_v57 = vrot.slane %v3583_v62, 7  ;;  %v3217_v45 = vrot.slane %v7431_v30, 7 }
 0x395   : > { %v2902_v26 = vadd.f32 %v2898_v39, %v2883_v51  ;;  %v8365_v51 = vld [vmem:[#allocation46_spill] sm:$0xff] }
 0x396   : > { %3661 = vrot.lane.b32.xlu0 %v3656_v22, %s4464_s7  ;;  %3718 = vrot.lane.b32.xlu1 %v8357_v48, %s4464_s7  ;;  %v2908_v50 = vpop.permute.xlu1 %2907  ;;  %v8366_v10 = vrot.slane %v8365_v51, 6  ;;  %v3196_v48 = vmul.f32 %v8367_v19, %v8317_v9 }
 0x397   : > { %v7391_v24 = vadd.f32 %v2908_v50, %v2901_v40  ;;  %v3588_v40 = vrot.slane %v3582_v33, 7 }
 0x398   : > { %v2910_v11 = vpop.permute.xlu0 %2909  ;;  %v3678_v1 = vsel %vm3146_vm5, %v8366_v10, %v3677_v5  ;;  %v3203_v6 = vrot.slane %v3196_v48, 6  ;;  %v3640_v10 = vmul.f32 %v7414_v20, %v7319_v13  ;;  %v3242_v48 = vmul.f32 %v8367_v19, %v8306_v27 }
 0x399   : > { %v7395_v8 = vadd.f32 %v2910_v11, %v2902_v26  ;;  %v8368_v26 = vld [vmem:[#allocation92_spill] sm:$0xff] }
 0x39a   : > { %3720 = vrot.lane.b32.xlu0 %v3717_v41, %s4464_s7  ;;  %3573 = vrot.lane.b32.xlu1 %v8360_v25, %s4464_s7  ;;  %v2924_v23 = vpop.permute.xlu1 %2923  ;;  %v3189_v42 = vmul.f32 %v8368_v26, %v7119_v37  ;;  %v3735_v41 = vrot.slane %v3728_v55, 7  ;;  %v3190_v25 = vmul.f32 %v8368_v26, %v7133_v44 }
 0x39b   : > { %v2929_v7 = vadd.f32 %v2924_v23, %v7292_v29  ;;  %v3591_v23 = vrot.slane %v3584_v31, 7 }
 0x39c   : > { %v2926_v12 = vpop.permute.xlu0 %2925 }
 0x39d   : > { %v2930_v2 = vadd.f32 %v2926_v12, %v7299_v58  ;;  %v3733_v58 = vrot.slane %v3727_v18, 7 }
 0x39e   : > { %3575 = vrot.lane.b32.xlu0 %v3572_v47, %s4464_s7  ;;  %3631 = vrot.lane.b32.xlu1 %v3628_v32, %s4464_s7  ;;  %v2944_v29 = vpop.permute.xlu1 %2943  ;;  %v3590_v47 = vsel %vm3175_vm6, %v3588_v40, %v3589_v57  ;;  %v3689_v32 = vmul.f32 %v7446_v16, %v8285_v35 }
 0x39f   : > { %v2949_v4 = vadd.f32 %v2944_v29, %v2929_v7  ;;  %v3734_v15 = vsel %vm3175_vm6, %v3732_v60, %v3733_v58  ;;  %v3736_v63 = vsel %vm3175_vm6, %v3733_v58, %v3735_v41  ;;  %v3639_v60 = vmul.f32 %v7414_v20, %v8350_v49 }
 0x3a0   : > { %v2946_v59 = vpop.permute.xlu0 %2945  ;;  %v3240_v58 = vmul.f32 %v8367_v19, %v6924_v21  ;;  %v3695_v36 = vrot.slane %v3689_v32, 7 }
 0x3a1   : > { %v2950_v22 = vadd.f32 %v2946_v59, %v2930_v2  ;;  %v3218_v2 = vsel %vm3175_vm6, %v3216_v46, %v3217_v45 }
 0x3a2   : > { %3633 = vrot.lane.b32.xlu0 %v3630_v28, %s4464_s7  ;;  %3679 = vrot.lane.b32.xlu1 %v8364_v0, %s4464_s7  ;;  %v2964_v52 = vpop.permute.xlu1 %2963  ;;  %v8370_v28 = vld [vmem:[#allocation68_spill] sm:$0xff]  ;;  %v3241_v0 = vmul.f32 %v8367_v19, %v8285_v35  ;;  %v3745_v19 = vmul.f32 %v7446_v16, %v8350_v49 }
 0x3a3   : > { %v2969_v39 = vadd.f32 %v2964_v52, %v2949_v4  ;;  %v8371_v29 = vrot.slane %v8370_v28, 6 }
 0x3a4   : > { %v2966_v50 = vpop.permute.xlu0 %2965  ;;  %v3247_v31 = vrot.slane %v3241_v0, 7  ;;  %v8375_v0 = vld [vmem:[#allocation62_spill] sm:$0xff] }
 0x3a5   : > { %v3191_v34 = vadd.f32 %v3189_v42, %v2969_v39  ;;  %v2970_v11 = vadd.f32 %v2966_v50, %v2950_v22  ;;  %v3204_v5 = vsel %vm3146_vm5, %v8371_v29, %v3203_v6  ;;  %v3690_v22 = vmul.f32 %v7446_v16, %v8306_v27  ;;  %v8372_v50 = vld [vmem:[#allocation69_spill] sm:$0xff] }
 0x3a6   : > { %3681 = vrot.lane.b32.xlu0 %v3678_v1, %s4464_s7  ;;  %3737 = vrot.lane.b32.xlu1 %v3734_v15, %s4464_s7  ;;  %v2983_v14 = vpop.permute.xlu1 %2982  ;;  %v3227_v1 = vmul.f32 %v8368_v26, %v8317_v9 }
 0x3a7   : > { %v3192_v43 = vadd.f32 %v3190_v25, %v2970_v11  ;;  %v2988_v7 = vadd.f32 %v2983_v14, %v7333_v56  ;;  %v3207_v18 = vadd.f32 %v8369_v3, %v3191_v34  ;;  %v3592_v56 = vsel %vm3175_vm6, %v3589_v57, %v3591_v23  ;;  %v8373_v25 = vld [vmem:[#allocation52_spill] sm:$0xff] }
 0x3a8   : > { %v2985_v12 = vpop.permute.xlu0 %2984  ;;  %v3246_v57 = vrot.slane %v3240_v58, 7  ;;  %v3697_v15 = vrot.slane %v3690_v22, 7  ;;  %v3234_v20 = vrot.slane %v3227_v1, 6  ;;  %v8374_v11 = vrot.slane %v8373_v25, 6 }
 0x3a9   : > { %v2989_v55 = vadd.f32 %v2985_v12, %v7340_v38  ;;  %v7469_v33 = vadd.f32 %v3218_v2, %v3207_v18  ;;  %v7471_v62 = vadd.f32 %v3204_v5, %v3192_v43  ;;  %v3694_v38 = vrot.slane %v3688_v54, 7 }
 0x3aa   : > { %3739 = vrot.lane.b32.xlu0 %v3736_v63, %s4464_s7  ;;  %3593 = vrot.lane.b32.xlu1 %v3590_v47, %s4464_s7  ;;  %v3002_v4 = vpop.permute.xlu1 %3001  ;;  %v3698_v34 = vsel %vm3175_vm6, %v3695_v36, %v3697_v15  ;;  %v3235_v63 = vsel %vm3146_vm5, %v8374_v11, %v3234_v20  ;;  %v3248_v47 = vsel %vm3175_vm6, %v3246_v57, %v3247_v31  ;;  %v3249_v23 = vrot.slane %v3242_v48, 7  ;;  %v8377_v15 = vld [vmem:[#allocation96_spill] sm:$0xff] }
 0x3ab   : > { %v3007_v59 = vadd.f32 %v3002_v4, %v2988_v7  ;;  %v3696_v42 = vsel %vm3175_vm6, %v3694_v38, %v3695_v36  ;;  %v3255_v7 = vmul.f32 %v7423_v61, %v8350_v49  ;;  %v3746_v3 = vmul.f32 %v7446_v16, %v7319_v13  ;;  %v8376_v36 = vld [vmem:[#allocation93_spill] sm:$0xff] }
 0x3ac   : > { %v3004_v51 = vpop.permute.xlu0 %3003  ;;  %v3250_v18 = vsel %vm3175_vm6, %v3247_v31, %v3249_v23  ;;  %v3263_v22 = vmul.f32 %v8376_v36, %v7119_v37  ;;  %v3212_v23 = vmul.f32 %v7423_v61, %v8306_v27 }
 0x3ad   : > { %v3008_v52 = vadd.f32 %v3004_v51, %v2989_v55 }
 0x3ae   : > { %3595 = vrot.lane.b32.xlu0 %v3592_v56, %s4464_s7  ;;  %3643 = vrot.lane.b32.xlu1 %v3639_v60, %s4464_s7  ;;  %v3014_v40 = vpop.permute.xlu1 %3013  ;;  %v7516_v56 = vstv %s4167_s11 }
 0x3af   : > { %v3019_v39 = vadd.f32 %v3014_v40, %v3007_v59  ;;  %v3284_v16 = vmul.f32 %v7516_v56, %v6924_v21  ;;  %v3270_v59 = vmul.f32 %v8375_v0, %v8317_v9  ;;  %v3264_v40 = vmul.f32 %v8376_v36, %v7133_v44 }
 0x3b0   : > { %v3016_v41 = vpop.permute.xlu0 %3015 }
 0x3b1   : > { %v3238_v26 = vadd.f32 %v8372_v50, %v3019_v39  ;;  %v3020_v46 = vadd.f32 %v3016_v41, %v3008_v52  ;;  %v3277_v48 = vrot.slane %v3270_v59, 6  ;;  %v8378_v50 = vld [vmem:[#allocation49_spill] sm:$0xff] }
 0x3b2   : > { %3645 = vrot.lane.b32.xlu0 %v3640_v10, %s4464_s7  ;;  %3699 = vrot.lane.b32.xlu1 %v3696_v42, %s4464_s7  ;;  %v3030_v14 = vpop.permute.xlu1 %3029  ;;  %v3290_v10 = vrot.slane %v3284_v16, 7  ;;  %v3329_v16 = vmul.f32 %v7516_v56, %v8350_v49 }
 0x3b3   : > { %v3239_v54 = vadd.f32 %v3235_v63, %v3020_v46  ;;  %v3035_v6 = vadd.f32 %v3030_v14, %v7357_v17  ;;  %v3253_v43 = vadd.f32 %v3248_v47, %v3238_v26  ;;  %v3256_v17 = vmul.f32 %v7423_v61, %v7319_v13 }
 0x3b4   : > { %v3032_v32 = vpop.permute.xlu0 %3031  ;;  %v8379_v26 = vrot.slane %v8378_v50, 6  ;;  %v3314_v63 = vmul.f32 %v8375_v0, %v6924_v21 }
 0x3b5   : > { %v3036_v12 = vadd.f32 %v3032_v32, %v7361_v53  ;;  %v7509_v2 = vadd.f32 %v3255_v7, %v3253_v43  ;;  %v3254_v28 = vadd.f32 %v3250_v18, %v3239_v54  ;;  %v7522_v53 = vmul.f32 %v7516_v56, %v8285_v35 }
 0x3b6   : > { %3701 = vrot.lane.b32.xlu0 %v3698_v34, %s4464_s7  ;;  %3749 = vrot.lane.b32.xlu1 %v3745_v19, %s4464_s7  ;;  %v3050_v29 = vpop.permute.xlu1 %3049  ;;  %v3278_v46 = vsel %vm3146_vm5, %v8379_v26, %v3277_v48  ;;  %v3301_v19 = vmul.f32 %v8376_v36, %v8317_v9  ;;  %v3316_v7 = vmul.f32 %v8375_v0, %v8306_v27  ;;  %v3219_v18 = vrot.slane %v3212_v23, 7 }
 0x3b7   : > { %v3055_v5 = vadd.f32 %v3050_v29, %v3035_v6  ;;  %v7514_v55 = vadd.f32 %v3256_v17, %v3254_v28  ;;  %v3291_v1 = vrot.slane %v7522_v53, 7  ;;  %v8381_v28 = vld [vmem:[#allocation60_spill] sm:$0xff] }
 0x3b8   : > { %v3052_v4 = vpop.permute.xlu0 %3051  ;;  %v3308_v21 = vrot.slane %v3301_v19, 6  ;;  %v8382_v17 = vrot.slane %v8381_v28, 6  ;;  %v3220_v61 = vsel %vm3175_vm6, %v3217_v45, %v3219_v18  ;;  %v3330_v45 = vmul.f32 %v7516_v56, %v7319_v13 }
 0x3b9   : > { %v3056_v60 = vadd.f32 %v3052_v4, %v3036_v12  ;;  %v3292_v37 = vsel %vm3175_vm6, %v3290_v10, %v3291_v1  ;;  %v3224_v59 = vadd.f32 %v3220_v61, %v7471_v62  ;;  %v3286_v62 = vmul.f32 %v7516_v56, %v8306_v27 }
 0x3ba   : > { %3751 = vrot.lane.b32.xlu0 %v3746_v3, %s4464_s7  ;;  %v3070_v58 = vpop.permute.xlu1 %3069  ;;  %v3309_v9 = vsel %vm3146_vm5, %v8382_v17, %v3308_v21  ;;  %s239_s7 = sand.u32 1, %s4425_s16  }
 0x3bb   : > { %v3075_v38 = vadd.f32 %v3070_v58, %v3055_v5  ;;  %s4088_s13 = sshll.u32 %s239_s7, 6  ;;  %s7700_s29 = scalar_lea.sflag [#allocation3], %s239_s7 }
 0x3bc   : > { %v3072_v51 = vpop.permute.xlu0 %3071  ;;  %s7620_s14 = scalar_lea.vmem [#allocation7], %s4088_s13 }
 0x3bd   : > { %v3265_v52 = vadd.f32 %v3263_v22, %v3075_v38  ;;  %v3076_v57 = vadd.f32 %v3072_v51, %v3056_v60  ;;  %v3323_v60 = vrot.slane %v3316_v7, 7  ;;  %s3975_s22 = sshll.u32 %s7620_s14, 4  ;;  %s7689_s22 = int_to_ptr.vmem [resolvable:$true] %s3975_s22 }
 0x3be   : > { %v3089_v31 = vpop.permute.xlu1 %3088  ;;  %s4355_s5 = scalar_lea.vmem %s7689_s22, 1024  ;;  %p4362_p1 = scmp.lt.s32.totalorder %s7689_s22, %s4360_s6 }
 0x3bf   : > { %v3266_v39 = vadd.f32 %v3264_v40, %v3076_v57  ;;  %v3094_v42 = vadd.f32 %v3089_v31, %v7391_v24  ;;  %v3281_v20 = vadd.f32 %v8377_v15, %v3265_v52  ;;  %v3315_v24 = vmul.f32 %v8375_v0, %v8285_v35  ;;  %v8380_v35 = vld [vmem:[#allocation78_spill] sm:$0xff]  ;;  %p4356_p8 = scmp.ne.s32.totalorder %s7689_s22, %s4355_s5  ;;  %p4363_p6 = scmp.lt.s32.totalorder %s4361_s8, %s4355_s5 }
 0x3c1   : > { %v3297_v44 = vadd.f32 %v3292_v37, %v3281_v20  ;;  %v3282_v25 = vadd.f32 %v3278_v46, %v3266_v39  ;;  %v3321_v43 = vrot.slane %v3315_v24, 7  ;;  %p4357_p11 = pnand %p4356_p8, %p8383_p10  ;;  %p4364_p7 = por %p4363_p6, %p4362_p1 }
 0x3c2   : > { %v3091_v41 = vpop.permute.xlu0 %3090  ;;  %v3108_v11 = vpop.permute.xlu1 %3107 }
 0x3c3   : > { %v3095_v34 = vadd.f32 %v3091_v41, %v7395_v8  ;;  %v3113_v14 = vadd.f32 %v3108_v11, %v3094_v42  ;;  %v3320_v8 = vrot.slane %v3314_v63, 7  ;;  %v3324_v22 = vsel %vm3175_vm6, %v3321_v43, %v3323_v60  ;;  %p4358_p13 = pneg %p4357_p11 }
 0x3c4   : > { %v3293_v41 = vrot.slane %v3286_v62, 7 }
 0x3c5   : > { %v3322_v4 = vsel %vm3175_vm6, %v3320_v8, %v3321_v43  ;;  %p4365_p9 = pnand %p4364_p7, %p4358_p13 }
 0x3c6   : > { %v3110_v47 = vpop.permute.xlu0 %3109  ;;  %v3120_v6 = vpop.permute.xlu1 %3119  ;;  %v3294_v13 = vsel %vm3175_vm6, %v3291_v1, %v3293_v41 }
 0x3c7   : > { %v3114_v54 = vadd.f32 %v3110_v47, %v3095_v34  ;;  %v3125_v32 = vadd.f32 %v3120_v6, %v3113_v14  ;;  %v3298_v26 = vadd.f32 %v3294_v13, %v3282_v25 }
 0x3c9   : > { %v3312_v12 = vadd.f32 %v8380_v35, %v3125_v32 }
 0x3ca   : > { %v3122_v3 = vpop.permute.xlu0 %3121  ;;  %v3342_v5 = vpop.permute.xlu1 %3341 }
 0x3cb   : > { %v3126_v29 = vadd.f32 %v3122_v3, %v3114_v54  ;;  %v3347_v0 = vadd.f32 %v3342_v5, %v7469_v33  ;;  %v3327_v38 = vadd.f32 %v3322_v4, %v3312_v12 }
 0x3cd   : > { %v3313_v58 = vadd.f32 %v3309_v9, %v3126_v29  ;;  %v3331_v10 = vadd.f32 %v3329_v16, %v3327_v38 }
 0x3ce   : > { %v3344_v36 = vpop.permute.xlu0 %3343 }
 0x3cf   : > { %v3348_v51 = vadd.f32 %v3344_v36, %v3224_v59  ;;  %v3328_v30 = vadd.f32 %v3324_v22, %v3313_v58  ;;  %v3362_v52 = vpop.permute.xlu1 %3361 }
 0x3d0   : > { %v3367_v40 = vadd.f32 %v3362_v52, %v3347_v0 }
 0x3d1   : > { %v3332_v57 = vadd.f32 %v3330_v45, %v3328_v30 }
 0x3d2   : > { %v3364_v49 = vpop.permute.xlu0 %3363 }
 0x3d3   : > { %v3368_v31 = vadd.f32 %v3364_v49, %v3348_v51 }
 0x3d4   : > { %v3382_v48 = vpop.permute.xlu1 %3381 }
 0x3d5   : > { %v3387_v39 = vadd.f32 %v3382_v48, %v3367_v40 }
 0x3d8   : > { %v3384_v33 = vpop.permute.xlu0 %3383  ;;  %v3401_v15 = vpop.permute.xlu1 %3400 }
 0x3d9   : > { %v3388_v42 = vadd.f32 %v3384_v33, %v3368_v31  ;;  %v3406_v60 = vadd.f32 %v3401_v15, %v7509_v2 }
 0x3dc   : > { %v3403_v20 = vpop.permute.xlu0 %3402  ;;  %v3448_v37 = vpop.permute.xlu1 %3447 }
 0x3dd   : > { %v3453_v50 = vadd.f32 %v3448_v37, %v3297_v44  ;;  %v3407_v38 = vadd.f32 %v3403_v20, %v7514_v55 }
 0x3e0   : > { %v3450_v46 = vpop.permute.xlu0 %3449  ;;  %v3507_v11 = vpop.permute.xlu1 %3506 }
 0x3e1   : > { %v3454_v34 = vadd.f32 %v3450_v46, %v3298_v26  ;;  %v3512_v63 = vadd.f32 %v3507_v11, %v3331_v10 }
 0x3e4   : > { %v3509_v24 = vpop.permute.xlu0 %3508  ;;  %v3420_v19 = vpop.permute.xlu1 %3419 }
 0x3e5   : > { %v3513_v14 = vadd.f32 %v3509_v24, %v3332_v57  ;;  %v3425_v0 = vadd.f32 %v3420_v19, %v3406_v60 }
 0x3e8   : > { %v3422_v47 = vpop.permute.xlu0 %3421  ;;  %v3468_v27 = vpop.permute.xlu1 %3467 }
 0x3e9   : > { %v3473_v56 = vadd.f32 %v3468_v27, %v3453_v50  ;;  %v3426_v30 = vadd.f32 %v3422_v47, %v3407_v38 }
 0x3ec   : > { %v3470_v23 = vpop.permute.xlu0 %3469  ;;  %v3526_v6 = vpop.permute.xlu1 %3525 }
 0x3ed   : > { %v3474_v54 = vadd.f32 %v3470_v23, %v3454_v34  ;;  %v3531_v49 = vadd.f32 %v3526_v6, %v3512_v63 }
 0x3f0   : > { %v3528_v8 = vpop.permute.xlu0 %3527  ;;  %v3432_v43 = vpop.permute.xlu1 %3431 }
 0x3f1   : > { %v3437_v22 = vadd.f32 %v3432_v43, %v3425_v0  ;;  %v3532_v31 = vadd.f32 %v3528_v8, %v3513_v14 }
 0x3f4   : > { %v3434_v53 = vpop.permute.xlu0 %3433  ;;  %v3488_v7 = vpop.permute.xlu1 %3487 }
 0x3f5   : > { %v3438_v48 = vadd.f32 %v3434_v53, %v3426_v30  ;;  %v3493_v2 = vadd.f32 %v3488_v7, %v3473_v56 }
 0x3f8   : > { %v3490_v1 = vpop.permute.xlu0 %3489  ;;  %v3538_v44 = vpop.permute.xlu1 %3537 }
 0x3f9   : > { %v3494_v41 = vadd.f32 %v3490_v1, %v3474_v54  ;;  %v3543_v55 = vadd.f32 %v3538_v44, %v3531_v49 }
 0x3fc   : > { %v3540_v25 = vpop.permute.xlu0 %3539  ;;  %v3554_v32 = vpop.permute.xlu1 %3553 }
 0x3fd   : > { %v3559_v59 = vadd.f32 %v3554_v32, %v3387_v39  ;;  %v3544_v20 = vadd.f32 %v3540_v25, %v3532_v31 }
 0x400   : > { %v3556_v21 = vpop.permute.xlu0 %3555  ;;  %v3613_v3 = vpop.permute.xlu1 %3612 }
 0x401   : > { %v3560_v51 = vadd.f32 %v3556_v21, %v3388_v42  ;;  %v3618_v52 = vadd.f32 %v3613_v3, %v3437_v22 }
 0x404   : > { %v3615_v18 = vpop.permute.xlu0 %3614  ;;  %v3660_v35 = vpop.permute.xlu1 %3659 }
 0x405   : > { %v3619_v37 = vadd.f32 %v3615_v18, %v3438_v48  ;;  %v3665_v42 = vadd.f32 %v3660_v35, %v3493_v2 }
 0x408   : > { %v3662_v12 = vpop.permute.xlu0 %3661  ;;  %v3719_v28 = vpop.permute.xlu1 %3718 }
 0x409   : > { %v3666_v34 = vadd.f32 %v3662_v12, %v3494_v41  ;;  %v3724_v11 = vadd.f32 %v3719_v28, %v3543_v55 }
 0x40c   : > { %v3721_v17 = vpop.permute.xlu0 %3720  ;;  %v3574_v9 = vpop.permute.xlu1 %3573 }
 0x40d   : > { %v3579_v10 = vadd.f32 %v3574_v9, %v3559_v59  ;;  %v7576_v24 = vadd.f32 %v3721_v17, %v3544_v20 }
 0x410   : > { %v3576_v29 = vpop.permute.xlu0 %3575  ;;  %v3632_v5 = vpop.permute.xlu1 %3631 }
 0x411   : > { %v3580_v40 = vadd.f32 %v3576_v29, %v3560_v51  ;;  %v3637_v62 = vadd.f32 %v3632_v5, %v3618_v52 }
 0x414   : > { %v3634_v61 = vpop.permute.xlu0 %3633  ;;  %v3680_v4 = vpop.permute.xlu1 %3679 }
 0x415   : > { %v3638_v14 = vadd.f32 %v3634_v61, %v3619_v37  ;;  %v3685_v19 = vadd.f32 %v3680_v4, %v3665_v42 }
 0x418   : > { %v3682_v16 = vpop.permute.xlu0 %3681  ;;  %v3738_v58 = vpop.permute.xlu1 %3737 }
 0x419   : > { %v3686_v47 = vadd.f32 %v3682_v16, %v3666_v34  ;;  %v3743_v27 = vadd.f32 %v3738_v58, %v3724_v11 }
 0x41c   : > { %v7572_v36 = vpop.permute.xlu0 %3739  ;;  %v3594_v45 = vpop.permute.xlu1 %3593 }
 0x41d   : > { %v3599_v57 = vadd.f32 %v3594_v45, %v3579_v10 }
 0x41f   : > { %v3757_v15 = vmul.f32 0.1, %v3599_v57 }
 0x420   : > { %v3596_v33 = vpop.permute.xlu0 %3595  ;;  %v3644_v13 = vpop.permute.xlu1 %3643 }
 0x421   : > { %v3600_v39 = vadd.f32 %v3596_v33, %v3580_v40  ;;  %v7574_v50 = vmax.f32 %v3599_v57, %v3757_v15  ;;  %v3649_v46 = vadd.f32 %v3644_v13, %v3637_v62 }
 0x423   : > { %v3758_v26 = vmul.f32 0.1, %v3600_v39  ;;  %v3769_v56 = vrot.slane %v7574_v50, 7  ;;  %v3773_v6 = vrot.slane %v7574_v50, 6  ;;  %v3761_v8 = vmul.f32 0.1, %v3649_v46 }
 0x424   : > { %v3646_v63 = vpop.permute.xlu0 %3645  ;;  %v3700_v54 = vpop.permute.xlu1 %3699  ;;  %v3777_v7 = vrot.slane %v7574_v50, 5  ;;  %v3781_v1 = vrot.slane %v7574_v50, 4  ;;  %v3785_v44 = vrot.slane %v7574_v50, 3  ;;  %v3789_v25 = vrot.slane %v7574_v50, 2 }
 0x425   : > { %v7579_v23 = vmax.f32 %v3600_v39, %v3758_v26  ;;  %v3650_v43 = vadd.f32 %v3646_v63, %v3638_v14  ;;  %v7582_v53 = vadd.f32 %v3700_v54, %v3685_v19  ;;  %v3793_v21 = vrot.slane %v7574_v50, 1 }
 0x426   : > { %v3763_v35 = vmax.f32 %v3649_v46, %v3761_v8 }
 0x427   : > { %v3813_v3 = vrot.slane %v7579_v23, 7  ;;  %v3817_v18 = vrot.slane %v7579_v23, 6  ;;  %v3821_v12 = vrot.slane %v7579_v23, 5  ;;  %v3825_v28 = vrot.slane %v7579_v23, 4 }
 0x428   : > { %v3702_v32 = vpop.permute.xlu0 %3701  ;;  %v3762_v17 = vmul.f32 0.1, %v3650_v43  ;;  %v3829_v29 = vrot.slane %v7579_v23, 3  ;;  %v3833_v5 = vrot.slane %v7579_v23, 2  ;;  %v3766_v61 = vrot.slane %v3763_v35, 7  ;;  %v3750_v59 = vpop.permute.xlu1 %3749 }
 0x429   : > { %v3706_v9 = vadd.f32 %v3702_v32, %v3686_v47  ;;  %v3858_v4 = vmul.f32 0.1, %v7582_v53  ;;  %v3771_v16 = vrot.slane %v3763_v35, 6  ;;  %v3775_v60 = vrot.slane %v3763_v35, 5 }
 0x42a   : > { %v3783_v58 = vrot.slane %v3763_v35, 3  ;;  %v3764_v0 = vmax.f32 %v3650_v43, %v3762_v17  ;;  %v3779_v38 = vrot.slane %v3763_v35, 4  ;;  %v3787_v22 = vrot.slane %v3763_v35, 2 }
 0x42b   : > { %v3791_v51 = vrot.slane %v3763_v35, 1  ;;  %v3795_v10 = vsel %vm3175_vm6, %v7574_v50, %v3766_v61  ;;  %v3859_v40 = vmul.f32 0.1, %v3706_v9  ;;  %v3755_v48 = vadd.f32 %v3750_v59, %v3743_v27 }
 0x42c   : > { %v3796_v30 = vsel %vm3146_vm5, %v3795_v10, %v3769_v56  ;;  %v3802_v45 = vsel %vm3175_vm6, %v3781_v1, %v3783_v58  ;;  %v3810_v52 = vrot.slane %v3764_v0, 7  ;;  %v3815_v31 = vrot.slane %v3764_v0, 6  ;;  %v3752_v8 = vpop.permute.xlu0 %3751 }
 0x42d   : > { %v3797_v57 = vsel %vm2545_vm8, %v3796_v30, %v3771_v16  ;;  %v3803_v49 = vsel %vm3146_vm5, %v3802_v45, %v3785_v44  ;;  %v3819_v62 = vrot.slane %v3764_v0, 5  ;;  %v3827_v15 = vrot.slane %v3764_v0, 3 }
 0x42e   : > { %v3798_v33 = vsel %vm2520_vm7, %v3797_v57, %v3773_v6  ;;  %v3804_v2 = vsel %vm2545_vm8, %v3803_v49, %v3787_v22  ;;  %v3831_v55 = vrot.slane %v3764_v0, 2  ;;  %v3839_v20 = vsel %vm3175_vm6, %v7579_v23, %v3810_v52 }
 0x42f   : > { %v3799_v39 = vsel %vm1919_vm4, %v3798_v33, %v3775_v60  ;;  %v3805_v41 = vsel %vm2520_vm7, %v3804_v2, %v3789_v25  ;;  %v3840_v42 = vsel %vm3146_vm5, %v3839_v20, %v3813_v3  ;;  %v3846_v50 = vsel %vm3175_vm6, %v3825_v28, %v3827_v15 }
 0x430   : > { %v3800_v37 = vsel %vm1894_vm3, %v3799_v39, %v3777_v7  ;;  %v3806_v13 = vsel %vm1919_vm4, %v3805_v41, %v3791_v51  ;;  %v3841_v34 = vsel %vm2545_vm8, %v3840_v42, %v3815_v31  ;;  %v3847_v11 = vsel %vm3146_vm5, %v3846_v50, %v3829_v29 }
 0x431   : > { %v3801_v26 = vsel %vm1354_vm0, %v3800_v37, %v3779_v38  ;;  %v3807_v46 = vsel %vm1894_vm3, %v3806_v13, %v3793_v21  ;;  %v3835_v14 = vrot.slane %v3764_v0, 1  ;;  %v3842_v19 = vsel %vm2520_vm7, %v3841_v34, %v3817_v18 }
 0x432   : > { %v3808_v63 = vsel %vm1354_vm0, %v3807_v46, %v3763_v35  ;;  %3854 = vst.msk [vmem:[%s7620_s14] sm:$0xff] %vm3853_vm9, %v3801_v26  ;;  %v3848_v47 = vsel %vm2545_vm8, %v3847_v11, %v3831_v55  ;;  %v3837_v27 = vrot.slane %v7579_v23, 1  ;;  %v3823_v56 = vrot.slane %v3764_v0, 4 }
 0x433   : > { %3855 = vst.msk [vmem:[%s7620_s14 + $0x8] sm:$0xff] %vm3853_vm9, %v3808_v63  ;;  %v3843_v54 = vsel %vm1919_vm4, %v3842_v19, %v3819_v62  ;;  %v3849_v6 = vsel %vm2520_vm7, %v3848_v47, %v3833_v5  ;;  %v3744_v43 = vadd.f32 %v7572_v36, %v7576_v24  ;;  %v3860_v44 = vmax.f32 %v7582_v53, %v3858_v4 }
 0x434   : > { %v3844_v7 = vsel %vm1894_vm3, %v3843_v54, %v3821_v12  ;;  %v3850_v1 = vsel %vm1919_vm4, %v3849_v6, %v3835_v14  ;;  %v7641_v21 = vmax.f32 %v3706_v9, %v3859_v40  ;;  %v3862_v3 = vmul.f32 0.1, %v3755_v48 }
 0x435   : > { %v3845_v23 = vsel %vm1354_vm0, %v3844_v7, %v3823_v56  ;;  %v3851_v25 = vsel %vm1894_vm3, %v3850_v1, %v3837_v27  ;;  %v3756_v18 = vadd.f32 %v3752_v8, %v3744_v43  ;;  %v3870_v36 = vrot.slane %v3860_v44, 7 }
 0x436   : > { %v3852_v32 = vsel %vm1354_vm0, %v3851_v25, %v3764_v0  ;;  %3856 = vst.msk [vmem:[%s7620_s14 + $0x10] sm:$0xff] %vm3853_vm9, %v3845_v23  ;;  %v3874_v24 = vrot.slane %v3860_v44, 6  ;;  %v3878_v35 = vrot.slane %v3860_v44, 5  ;;  %v3882_v12 = vrot.slane %v3860_v44, 4 }
 0x437   : > { %3857 = vst.msk [vmem:[%s7620_s14 + $0x18] sm:$0xff] %vm3853_vm9, %v3852_v32  ;;  %v3886_v28 = vrot.slane %v3860_v44, 3  ;;  %v3864_v53 = vmax.f32 %v3755_v48, %v3862_v3  ;;  %v3890_v17 = vrot.slane %v3860_v44, 2  ;;  %v3894_v29 = vrot.slane %v3860_v44, 1 }
 0x438   : > { %v3914_v5 = vrot.slane %v7641_v21, 7  ;;  %v3863_v61 = vmul.f32 0.1, %v3756_v18  ;;  %v3918_v4 = vrot.slane %v7641_v21, 6  ;;  %v3922_v9 = vrot.slane %v7641_v21, 5 }
 0x439   : > { %v3926_v16 = vrot.slane %v7641_v21, 4  ;;  %v3867_v60 = vrot.slane %v3864_v53, 7  ;;  %v3930_v58 = vrot.slane %v7641_v21, 3  ;;  %v3934_v0 = vrot.slane %v7641_v21, 2 }
 0x43a   : > { %v3884_v59 = vrot.slane %v3864_v53, 3  ;;  %v3865_v38 = vmax.f32 %v3756_v18, %v3863_v61  ;;  %v3872_v22 = vrot.slane %v3864_v53, 6  ;;  %v3876_v51 = vrot.slane %v3864_v53, 5 }
 0x43b   : > { %v3880_v10 = vrot.slane %v3864_v53, 4  ;;  %v3896_v30 = vsel %vm3175_vm6, %v3860_v44, %v3867_v60  ;;  %v3888_v45 = vrot.slane %v3864_v53, 2  ;;  %v3892_v49 = vrot.slane %v3864_v53, 1 }
 0x43c   : > { %v3897_v52 = vsel %vm3146_vm5, %v3896_v30, %v3870_v36  ;;  %v3903_v40 = vsel %vm3175_vm6, %v3882_v12, %v3884_v59  ;;  %v3911_v57 = vrot.slane %v3865_v38, 7  ;;  %v3916_v33 = vrot.slane %v3865_v38, 6 }
 0x43d   : > { %v3898_v31 = vsel %vm2545_vm8, %v3897_v52, %v3872_v22  ;;  %v3904_v48 = vsel %vm3146_vm5, %v3903_v40, %v3886_v28  ;;  %v3920_v15 = vrot.slane %v3865_v38, 5  ;;  %v3928_v39 = vrot.slane %v3865_v38, 3 }
 0x43e   : > { %v3899_v2 = vsel %vm2520_vm7, %v3898_v31, %v3874_v24  ;;  %v3905_v62 = vsel %vm2545_vm8, %v3904_v48, %v3888_v45  ;;  %v3932_v20 = vrot.slane %v3865_v38, 2  ;;  %v3940_v37 = vsel %vm3175_vm6, %v7641_v21, %v3911_v57 }
 0x43f   : > { %v3900_v41 = vsel %vm1919_vm4, %v3899_v2, %v3876_v51  ;;  %v3906_v55 = vsel %vm2520_vm7, %v3905_v62, %v3890_v17  ;;  %v3941_v50 = vsel %vm3146_vm5, %v3940_v37, %v3914_v5  ;;  %v3947_v26 = vsel %vm3175_vm6, %v3926_v16, %v3928_v39 }
 0x440   : > { %v3901_v13 = vsel %vm1894_vm3, %v3900_v41, %v3878_v35  ;;  %v3907_v42 = vsel %vm1919_vm4, %v3906_v55, %v3892_v49  ;;  %v3942_v11 = vsel %vm2545_vm8, %v3941_v50, %v3916_v33  ;;  %v3948_v63 = vsel %vm3146_vm5, %v3947_v26, %v3930_v58 }
 0x441   : > { %v3902_v46 = vsel %vm1354_vm0, %v3901_v13, %v3880_v10  ;;  %v3908_v34 = vsel %vm1894_vm3, %v3907_v42, %v3894_v29  ;;  %v3936_v19 = vrot.slane %v3865_v38, 1  ;;  %v3943_v47 = vsel %vm2520_vm7, %v3942_v11, %v3918_v4 }
 0x442   : > { %v3909_v14 = vsel %vm1354_vm0, %v3908_v34, %v3864_v53  ;;  %4180 = vst.msk [vmem:[%s7620_s14 + $0x20] sm:$0xff] %vm3853_vm9, %v3902_v46  ;;  %v3949_v27 = vsel %vm2545_vm8, %v3948_v63, %v3932_v20  ;;  %v3938_v56 = vrot.slane %v7641_v21, 1  ;;  %v3924_v54 = vrot.slane %v3865_v38, 4 }
 0x443   : > { %4181 = vst.msk [vmem:[%s7620_s14 + $0x28] sm:$0xff] %vm3853_vm9, %v3909_v14  ;;  %v3944_v6 = vsel %vm1919_vm4, %v3943_v47, %v3920_v15  ;;  %v3950_v8 = vsel %vm2520_vm7, %v3949_v27, %v3934_v0 }
 0x444   : > { %v3945_v43 = vsel %vm1894_vm3, %v3944_v6, %v3922_v9  ;;  %v3951_v7 = vsel %vm1919_vm4, %v3950_v8, %v3936_v19 }
 0x445   : > { %v3946_v1 = vsel %vm1354_vm0, %v3945_v43, %v3924_v54  ;;  %v3952_v44 = vsel %vm1894_vm3, %v3951_v7, %v3938_v56 }
 0x446   : > { %v3953_v23 = vsel %vm1354_vm0, %v3952_v44, %v3865_v38  ;;  %4182 = vst.msk [vmem:[%s7620_s14 + $0x30] sm:$0xff] %vm3853_vm9, %v3946_v1 }
 0x447   : > { %4183 = vst.msk [vmem:[%s7620_s14 + $0x38] sm:$0xff] %vm3853_vm9, %v3953_v23 }
 0x448   : > { %4368 = shalt.err (!%p4365_p9)
}
 0x449   : > { %s4369_s12 = scalar_lea.hbm %s7687_s26, 1024  ;;  %s4373_s11 = scalar_lea.hbm %s7750_s4, 2048 }
 0x44a   : > { %p4370_p12 = scmp.ne.s32.totalorder %s7687_s26, %s4369_s12  ;;  %p4374_p3 = scmp.lt.u32.totalorder %s7687_s26, %s7750_s4 }
 0x44b   : > { %p4375_p5 = scmp.lt.u32.totalorder %s4373_s11, %s4369_s12  ;;  %p4377_p8 = scmp.lt.u32.totalorder %s4369_s12, %s7687_s26 }
 0x44c   : > { %p4371_p0 = pnand %p4370_p12, %p8383_p10 }
 0x44d   : > { %p4376_p4 = por %p4375_p5, %p4374_p3 }
 0x44e   : > { %p4372_p2 = pneg %p4371_p0 }
 0x44f   : > { %p4378_p11 = por %p4377_p8, %p4376_p4 }
 0x451   : > { %p4379_p13 = pnand %p4378_p11, %p4372_p2 }
 0x453   : > { %4382 = shalt.err (!%p4379_p13)
}
 0x454   : > { %s4466_s14 = smov 128   ;;  %s4467_s21 = smov 8  }
 0x455   : > { %4199 = dma.vmem_to_hbm [thread:$0]  (%p8383_p10), %s7689_s22, 1024, %s7687_s26, %s7700_s29, %s4466_s14, %s4466_s14, %s4467_s21  }
 0x456 PF: > { %p4216_p1 = scmp.ge.s32.totalorder %s4441_s20, 2  ;;  %s3990_s18 = sand.u32 1, %s4421_s15  }
 0x457   : > { %p8384_p6 = scmp.ne.s32.totalorder %s7931_s27, 0  ;;  %s3991_s24 = scalar_lea.sflag [#allocation3], %s3990_s18 }
 0x459   : > { %p4209_p7 = pnand %p4216_p1, %p8384_p6 }
 0x45b   : > { %4416 = dma.done.wait (!%p4209_p7), %s3991_s24, 1024  }
 0x45c   : > { %4418 = vsyncadd (!%p4209_p7), %s3991_s24, 4294966272  ;;  %s19_s20 = sadd.s32 1, %s4441_s20   ;;  %s8385_s15 = smov %s4425_s16 }
 0x45d   : > { %p16_p9 = scmp.ge.s32.totalorder %s19_s20, 4   ;;  %s8386_s16 = smov %s4429_s17 }
 0x45e   : > { %s8387_s17 = smov %s4546_s28  ;;  %s8388_s18 = smov %s4437_s19 }
 0x45f   : > { %s8389_s19 = smov %s8391_s23  ;;  %18 = sbr.rel (!%p16_p9) target bundleno = 6 (0x6), region = 81 }
 0x466   :  { %3996 = vsyncpa [#allocation3], 1 }
 0x467   :  { %3998 = vsyncpa [#allocation3 + $0x1], 1 }
 0x468   :  { %3999 = vsyncpa [#allocation4], 1 }
 0x469   :  { %4001 = vsyncpa [#allocation4 + $0x1], 1 }
 0x46a   :  { %4002 = vsyncpa [#allocation6], 1 }

</bundles_post_ra>
